<compile_context>
chip_gen: v7x
topology: tpu7x:2x2x1
jax: 0.10.0
libtpu: 0.0.40
codegen_flags: <defaults>
</compile_context>

<pallas_src>
import math
import functools

import jax
import jax.numpy as jnp
from jax.experimental import pallas as pl
from jax.experimental.pallas import tpu as pltpu


# ------------------------------ kernel helpers ------------------------------

def _layer_norm(x, gamma, beta, eps=1e-5):
    mu = jnp.mean(x, axis=-1, keepdims=True)
    var = jnp.mean((x - mu) ** 2, axis=-1, keepdims=True)
    return (x - mu) * jax.lax.rsqrt(var + eps) * gamma + beta


def _mha_core(q_full, k_full, v_full, wo, bo, num_heads, head_dim):
    """Multi-head attention on already-projected activations.

    q_full [nq, C], k_full/v_full [Lk, C].  The Q/K/V projections are fused
    [C, C] matmuls done by the caller; only the small per-head attention
    matmuls remain here, followed by a single fused [C, C] output projection
    on the concatenated heads.
    """
    scale = 1.0 / math.sqrt(head_dim)
    cdt = k_full.dtype
    heads = []
    for h in range(num_heads):
        sl = slice(h * head_dim, (h + 1) * head_dim)
        qh = (q_full[:, sl] * scale).astype(cdt)
        kh = k_full[:, sl]
        vh = v_full[:, sl]
        logits = jax.lax.dot_general(                     # qh @ kh.T
            qh, kh, (((1,), (1,)), ((), ())),
            preferred_element_type=jnp.float32)
        m = jnp.max(logits, axis=-1, keepdims=True)
        p = jnp.exp(logits - m)
        denom = jnp.sum(p, axis=-1, keepdims=True)
        o = jnp.dot(p.astype(cdt), vh, preferred_element_type=jnp.float32)
        heads.append(o * pl.reciprocal(denom, approx=True))
    o_full = jnp.concatenate(heads, axis=-1)              # [nq, C]
    return jnp.dot(o_full, wo, preferred_element_type=jnp.float32) + bo


# ----------------------------- fused decoder kernel -----------------------------

def decoder_fused_kernel(
    # data tiles
    q_ref, qp_ref, kc_ref, vc_ref, mb_ref,
    # cross-attention params (K/V projection hoisted outside the kernel)
    cwq_ref, cbq_ref, cwo_ref, cbo_ref, ln1g_ref, ln1b_ref,
    # self-attention params
    swq_ref, sbq_ref, swk_ref, sbk_ref, swv_ref, sbv_ref, swo_ref, sbo_ref,
    ln2g_ref, ln2b_ref,
    # FFN params
    w1_ref, b1_ref, w2_ref, b2_ref, ln3g_ref, ln3b_ref,
    # output
    out_ref,
    # scratch
    x_scr, qc_scr, m_scr, l_scr, acc_scr,
    *, num_heads, head_dim):
    layer = pl.program_id(1)
    t = pl.program_id(2)
    n_kv = pl.num_programs(2)
    scale = 1.0 / math.sqrt(head_dim)

    # ---- layer-carry init on the first grid step for this batch element ----
    @pl.when(jnp.logical_and(layer == 0, t == 0))
    def _init_carry():
        x_scr[...] = q_ref[0]

    # ---- per-layer init: online-softmax state + fused cross-attn Q proj ----
    @pl.when(t == 0)
    def _init_layer():
        m_scr[...] = jnp.full(m_scr.shape, -jnp.inf, m_scr.dtype)
        l_scr[...] = jnp.zeros(l_scr.shape, l_scr.dtype)
        acc_scr[...] = jnp.zeros(acc_scr.shape, acc_scr.dtype)
        x0 = x_scr[...]
        qc_scr[...] = (jnp.dot(x0 + qp_ref[0], cwq_ref[...],
                               preferred_element_type=jnp.float32)
                       + cbq_ref[...]) * scale

    # ---- masked cross-attention: online softmax over this KV tile ----
    kt = kc_ref[0]            # [TKV, C] bf16 projected keys (hoisted)
    vt = vc_ref[0]            # [TKV, C] bf16 projected values (hoisted)
    mb = mb_ref[0]            # [nq, TKV] f32 additive mask bias
    qc = qc_scr[...]          # [nq, C]  f32, already scaled

    for h in range(num_heads):
        sl = slice(h * head_dim, (h + 1) * head_dim)
        qh = qc[:, sl].astype(kt.dtype)
        logits = jax.lax.dot_general(                     # qh @ kt[:, sl].T
            qh, kt[:, sl], (((1,), (1,)), ((), ())),
            preferred_element_type=jnp.float32) + mb
        m_prev = m_scr[h]
        m_new = jnp.maximum(m_prev, jnp.max(logits, axis=-1, keepdims=True))
        alpha = jnp.exp(m_prev - m_new)
        p = jnp.exp(logits - m_new)
        l_scr[h] = alpha * l_scr[h] + jnp.sum(p, axis=-1, keepdims=True)
        acc_scr[h] = alpha * acc_scr[h] + jnp.dot(
            p.astype(vt.dtype), vt[:, sl], preferred_element_type=jnp.float32)
        m_scr[h] = m_new

    # ---- last KV tile: finish cross-attn, then self-attn + FFN ----
    @pl.when(t == n_kv - 1)
    def _finish_layer():
        x0 = x_scr[...]
        qp = qp_ref[0]
        heads = [acc_scr[h] * pl.reciprocal(l_scr[h], approx=True)
                 for h in range(num_heads)]
        o_full = jnp.concatenate(heads, axis=-1)                      # [nq, C]
        ca = jnp.dot(o_full, cwo_ref[...],
                     preferred_element_type=jnp.float32) + cbo_ref[...]
        x1 = _layer_norm(x0 + ca, ln1g_ref[...], ln1b_ref[...])

        # self-attention over queries, fused [C, C] projections
        xq = x1 + qp
        qs = jnp.dot(xq, swq_ref[...],
                     preferred_element_type=jnp.float32) + sbq_ref[...]
        ks = jnp.dot(xq, swk_ref[...],
                     preferred_element_type=jnp.float32) + sbk_ref[...]
        vs = jnp.dot(x1, swv_ref[...],
                     preferred_element_type=jnp.float32) + sbv_ref[...]
        sa = _mha_core(qs, ks, vs, swo_ref[...], sbo_ref[...],
                       num_heads, head_dim)
        x2 = _layer_norm(x1 + sa, ln2g_ref[...], ln2b_ref[...])

        # FFN
        hidden = jnp.maximum(
            jnp.dot(x2, w1_ref[...], preferred_element_type=jnp.float32)
            + b1_ref[...], 0.0)
        ff = jnp.dot(hidden, w2_ref[...],
                     preferred_element_type=jnp.float32) + b2_ref[...]
        x3 = _layer_norm(x2 + ff, ln3g_ref[...], ln3b_ref[...])

        x_scr[...] = x3
        out_ref[0] = x3.astype(out_ref.dtype)


# ------------------------------ pallas_call builder ------------------------------

def _const_index_map(ndim):
    return lambda b, l, t: (0,) * ndim


def _choose_kv_block(L, target):
    """Largest KV tile that is a multiple of 128 (lane-aligned mask tile),
    divides L and is <= target; falls back to a single full-L tile."""
    if L % 128 != 0:
        return L
    best = None
    cand = 128
    while cand <= min(target, L):
        if L % cand == 0:
            best = cand
        cand += 128
    return best if best is not None else L


def build_decoder_call(B, nq, L, C, num_heads, num_layers, kv_block, param_list):
    head_dim = C // num_heads
    n_kv = L // kv_block

    data_specs = [
        pl.BlockSpec((1, nq, C), lambda b, l, t: (b, 0, 0)),          # query
        pl.BlockSpec((1, nq, C), lambda b, l, t: (b, 0, 0)),          # query pos
        pl.BlockSpec((1, kv_block, C), lambda b, l, t: (b, t, 0)),    # K proj (bf16)
        pl.BlockSpec((1, kv_block, C), lambda b, l, t: (b, t, 0)),    # V proj (bf16)
        pl.BlockSpec((1, nq, kv_block), lambda b, l, t: (b, 0, t)),   # mask bias
    ]
    weight_specs = [pl.BlockSpec(p.shape, _const_index_map(p.ndim))
                    for p in param_list]

    return pl.pallas_call(
        functools.partial(decoder_fused_kernel,
                          num_heads=num_heads, head_dim=head_dim),
        out_shape=jax.ShapeDtypeStruct((B, nq, C), jnp.float32),
        grid_spec=pltpu.PrefetchScalarGridSpec(
            num_scalar_prefetch=0,
            grid=(B, num_layers, n_kv),
            in_specs=data_specs + weight_specs,
            out_specs=pl.BlockSpec((1, nq, C), lambda b, l, t: (b, 0, 0)),
            scratch_shapes=[
                pltpu.VMEM((nq, C), jnp.float32),                    # x carry
                pltpu.VMEM((nq, C), jnp.float32),                    # scaled Qc
                pltpu.VMEM((num_heads, nq, 1), jnp.float32),         # online max
                pltpu.VMEM((num_heads, nq, 1), jnp.float32),         # online sum
                pltpu.VMEM((num_heads, nq, head_dim), jnp.float32),  # online acc
            ]),
        compiler_params=pltpu.CompilerParams(
            dimension_semantics=("parallel", "arbitrary", "arbitrary"),
            vmem_limit_bytes=32 * 1024 * 1024),
    )


# ------------------------------- parameters -------------------------------

def init_params(rng_key, C, F):
    ks = iter(jax.random.split(rng_key, 40))

    def w(shape, scale=0.05):
        return scale * jax.random.normal(next(ks), shape, jnp.float32)

    def attn_block():
        return dict(
            wq=w((C, C)), bq=w((1, C), 0.01),
            wk=w((C, C)), bk=w((1, C), 0.01),
            wv=w((C, C)), bv=w((1, C), 0.01),
            wo=w((C, C)), bo=w((1, C), 0.01),
            ln_g=jnp.ones((1, C), jnp.float32),
            ln_b=jnp.zeros((1, C), jnp.float32))

    return dict(
        cross=attn_block(),
        self=attn_block(),
        ffn=dict(w1=w((C, F)), b1=w((1, F), 0.01),
                 w2=w((F, C)), b2=w((1, C), 0.01),
                 ln_g=jnp.ones((1, C), jnp.float32),
                 ln_b=jnp.zeros((1, C), jnp.float32)))


def kernel_param_list(p):
    c, s, f = p["cross"], p["self"], p["ffn"]
    return [c["wq"], c["bq"], c["wo"], c["bo"], c["ln_g"], c["ln_b"],
            s["wq"], s["bq"], s["wk"], s["bk"], s["wv"], s["bv"],
            s["wo"], s["bo"], s["ln_g"], s["ln_b"],
            f["w1"], f["b1"], f["w2"], f["b2"], f["ln_g"], f["ln_b"]]


def _project_cross_kv(params, key, key_pos_embed, value):
    """Layer-shared cross-attention K/V projections, hoisted out of the layer
    loop (plain XLA matmuls) and cast to bf16 for streaming into the kernel."""
    c = params["cross"]
    k_in = key + key_pos_embed
    kc = (jnp.einsum("blc,cd->bld", k_in, c["wk"]) + c["bk"]).astype(jnp.bfloat16)
    vc = (jnp.einsum("blc,cd->bld", value, c["wv"]) + c["bv"]).astype(jnp.bfloat16)
    return kc, vc


def _mask_bias(intermediate_mask_preds, B, nq, L):
    if intermediate_mask_preds is not None:
        Bm, nqm, Hm, Wm = intermediate_mask_preds.shape
        mask_flat = intermediate_mask_preds.reshape(Bm, nqm, Hm * Wm)
        if mask_flat.shape[-1] != L:
            print(f"Warning: Mask shape {mask_flat.shape} mismatch with key "
                  f"shape L={L}. Skipping mask.")
            return jnp.zeros((B, nq, L), jnp.float32)
        return jnp.where(mask_flat < 0.5, jnp.float32(-1e9), jnp.float32(0.0))
    return jnp.zeros((B, nq, L), jnp.float32)


# ------------------------------ decoder forward ------------------------------

def mask2former_decoder_forward(params, num_layers, num_heads,
                                query, query_pos_embed, key, key_pos_embed,
                                value, intermediate_mask_preds=None,
                                kv_block_target=1024):
    B, nq, C = query.shape
    L = key.shape[1]

    # attention-mask bias: layer-invariant in the reference module -> once.
    mask_bias = _mask_bias(intermediate_mask_preds, B, nq, L)

    # hoisted cross-attention K/V projections (layers share weights).
    kc, vc = _project_cross_kv(params, key, key_pos_embed, value)

    kv_block = _choose_kv_block(L, kv_block_target)
    plist = kernel_param_list(params)
    call = build_decoder_call(B, nq, L, C, num_heads, num_layers, kv_block, plist)
    return call(query, query_pos_embed, kc, vc, mask_bias, *plist)


# ------------------------- pure-JAX reference check -------------------------
# The reference mirrors the kernel's mixed-precision choices (bf16 projected
# K/V, bf16 Q/P in the cross-attention) so the check validates the kernel
# mechanics tightly; accumulation and everything else is f32.

def _ref_ln(x, g, b, eps=1e-5):
    mu = jnp.mean(x, axis=-1, keepdims=True)
    var = jnp.mean((x - mu) ** 2, axis=-1, keepdims=True)
    return (x - mu) / jnp.sqrt(var + eps) * g + b


def _ref_mha(qf, kf, vf, mask_bias, wo, bo, num_heads, head_dim, compute_dtype):
    scale = 1.0 / math.sqrt(head_dim)
    outs = []
    for h in range(num_heads):
        sl = slice(h * head_dim, (h + 1) * head_dim)
        qh = (qf[:, sl] * scale).astype(compute_dtype).astype(jnp.float32)
        kh = kf[:, sl].astype(jnp.float32)
        vh = vf[:, sl].astype(jnp.float32)
        logits = qh @ kh.T
        if mask_bias is not None:
            logits = logits + mask_bias
        p = jnp.exp(logits - jnp.max(logits, axis=-1, keepdims=True))
        denom = jnp.sum(p, axis=-1, keepdims=True)
        o = (p.astype(compute_dtype).astype(jnp.float32) @ vh) / denom
        outs.append(o)
    return jnp.concatenate(outs, axis=-1) @ wo + bo


def _ref_layer(params, num_heads, x, qp, kc, vc, mbias):
    C = x.shape[-1]
    hd = C // num_heads
    c, s, f = params["cross"], params["self"], params["ffn"]

    qc = (x + qp) @ c["wq"] + c["bq"]
    ca = _ref_mha(qc, kc, vc, mbias, c["wo"], c["bo"], num_heads, hd, jnp.bfloat16)
    x = _ref_ln(x + ca, c["ln_g"], c["ln_b"])

    xq = x + qp
    qs = xq @ s["wq"] + s["bq"]
    ks = xq @ s["wk"] + s["bk"]
    vs = x @ s["wv"] + s["bv"]
    sa = _ref_mha(qs, ks, vs, None, s["wo"], s["bo"], num_heads, hd, jnp.float32)
    x = _ref_ln(x + sa, s["ln_g"], s["ln_b"])

    h = jnp.maximum(x @ f["w1"] + f["b1"], 0.0)
    y = h @ f["w2"] + f["b2"]
    return _ref_ln(x + y, f["ln_g"], f["ln_b"])


def ref_forward(params, num_layers, num_heads, query, query_pos, key, key_pos,
                value, intermediate_mask_preds):
    B, nq, C = query.shape
    L = key.shape[1]
    mbias = _mask_bias(intermediate_mask_preds, B, nq, L)
    kc, vc = _project_cross_kv(params, key, key_pos, value)
    out = query
    for _ in range(num_layers):
        out = jnp.stack([
            _ref_layer(params, num_heads, out[b], query_pos[b],
                       kc[b], vc[b], mbias[b]) for b in range(B)])
    return out


# ----------------------------------- main -----------------------------------

if __name__ == "__main__":
    B, nq, C = 2, 8, 32
    num_heads = 4
    ffn_dim = 64
    num_layers = 2
    Hm = Wm = 16                 # mask / feature-map spatial size
    L = Hm * Wm                  # 256 -> two KV tiles of 128 (exercises online softmax)

    root = jax.random.PRNGKey(0)
    k_par, k_q, k_qp, k_k, k_kp, k_m = jax.random.split(root, 6)

    params = init_params(k_par, C, ffn_dim)

    query = jax.random.normal(k_q, (B, nq, C), jnp.float32)
    query_pos = jax.random.normal(k_qp, (B, nq, C), jnp.float32)
    key = jax.random.normal(k_k, (B, L, C), jnp.float32)
    key_pos = jax.random.normal(k_kp, (B, L, C), jnp.float32)
    value = key                   # "usually same as key"
    mask_preds = jax.random.uniform(k_m, (B, nq, Hm, Wm), jnp.float32)

    out = mask2former_decoder_forward(
        params, num_layers, num_heads,
        query, query_pos, key, key_pos, value,
        intermediate_mask_preds=mask_preds,
        kv_block_target=128)      # force 2 KV tiles at this toy size
    out = jax.block_until_ready(out)

    ref = ref_forward(params, num_layers, num_heads,
                      query, query_pos, key, key_pos, value, mask_preds)
    ref = jax.block_until_ready(ref)

    assert out.shape == (B, nq, C)
    err = jnp.max(jnp.abs(out - ref))
    assert jnp.allclose(out, ref, rtol=1e-2, atol=1e-2), f"max abs err {err}"

    print("KERNEL_OK")
</pallas_src>

<mosaic_0001>
module attributes {stable_mosaic.version = 11 : i64} {
  func.func @decoder_fused_kernel(%arg0: i32, %arg1: i32, %arg2: i32, %arg3: memref<1x8x32xf32, #tpu.memory_space<vmem>>, %arg4: memref<1x8x32xf32, #tpu.memory_space<vmem>>, %arg5: memref<1x128x32xbf16, #tpu.memory_space<vmem>>, %arg6: memref<1x128x32xbf16, #tpu.memory_space<vmem>>, %arg7: memref<1x8x128xf32, #tpu.memory_space<vmem>>, %arg8: memref<32x32xf32, #tpu.memory_space<vmem>>, %arg9: memref<1x32xf32, #tpu.memory_space<vmem>>, %arg10: memref<32x32xf32, #tpu.memory_space<vmem>>, %arg11: memref<1x32xf32, #tpu.memory_space<vmem>>, %arg12: memref<1x32xf32, #tpu.memory_space<vmem>>, %arg13: memref<1x32xf32, #tpu.memory_space<vmem>>, %arg14: memref<32x32xf32, #tpu.memory_space<vmem>>, %arg15: memref<1x32xf32, #tpu.memory_space<vmem>>, %arg16: memref<32x32xf32, #tpu.memory_space<vmem>>, %arg17: memref<1x32xf32, #tpu.memory_space<vmem>>, %arg18: memref<32x32xf32, #tpu.memory_space<vmem>>, %arg19: memref<1x32xf32, #tpu.memory_space<vmem>>, %arg20: memref<32x32xf32, #tpu.memory_space<vmem>>, %arg21: memref<1x32xf32, #tpu.memory_space<vmem>>, %arg22: memref<1x32xf32, #tpu.memory_space<vmem>>, %arg23: memref<1x32xf32, #tpu.memory_space<vmem>>, %arg24: memref<32x64xf32, #tpu.memory_space<vmem>>, %arg25: memref<1x64xf32, #tpu.memory_space<vmem>>, %arg26: memref<64x32xf32, #tpu.memory_space<vmem>>, %arg27: memref<1x32xf32, #tpu.memory_space<vmem>>, %arg28: memref<1x32xf32, #tpu.memory_space<vmem>>, %arg29: memref<1x32xf32, #tpu.memory_space<vmem>>, %arg30: memref<1x8x32xf32, #tpu.memory_space<vmem>>, %arg31: memref<8x32xf32, #tpu.memory_space<vmem>>, %arg32: memref<8x32xf32, #tpu.memory_space<vmem>>, %arg33: memref<4x8x1xf32, #tpu.memory_space<vmem>>, %arg34: memref<4x8x1xf32, #tpu.memory_space<vmem>>, %arg35: memref<4x8x8xf32, #tpu.memory_space<vmem>>) attributes {dimension_semantics = [#tpu.dimension_semantics<parallel>, #tpu.dimension_semantics<arbitrary>, #tpu.dimension_semantics<arbitrary>], iteration_bounds = array<i64: 2, 2, 2>, scalar_prefetch = 0 : i64, scratch_operands = 5 : i64, tpu.core_type = #tpu.core_type<tc>, window_params = [{transform_indices = @transform_0, window_bounds = array<i64: 1, 8, 32>}, {transform_indices = @transform_1, window_bounds = array<i64: 1, 8, 32>}, {transform_indices = @transform_2, window_bounds = array<i64: 1, 128, 32>}, {transform_indices = @transform_3, window_bounds = array<i64: 1, 128, 32>}, {transform_indices = @transform_4, window_bounds = array<i64: 1, 8, 128>}, {pipeline_mode = #tpu.pipeline_mode<synchronous>, transform_indices = @transform_5, window_bounds = array<i64: 32, 32>}, {pipeline_mode = #tpu.pipeline_mode<synchronous>, transform_indices = @transform_6, window_bounds = array<i64: 1, 32>}, {pipeline_mode = #tpu.pipeline_mode<synchronous>, transform_indices = @transform_7, window_bounds = array<i64: 32, 32>}, {pipeline_mode = #tpu.pipeline_mode<synchronous>, transform_indices = @transform_8, window_bounds = array<i64: 1, 32>}, {pipeline_mode = #tpu.pipeline_mode<synchronous>, transform_indices = @transform_9, window_bounds = array<i64: 1, 32>}, {pipeline_mode = #tpu.pipeline_mode<synchronous>, transform_indices = @transform_10, window_bounds = array<i64: 1, 32>}, {pipeline_mode = #tpu.pipeline_mode<synchronous>, transform_indices = @transform_11, window_bounds = array<i64: 32, 32>}, {pipeline_mode = #tpu.pipeline_mode<synchronous>, transform_indices = @transform_12, window_bounds = array<i64: 1, 32>}, {pipeline_mode = #tpu.pipeline_mode<synchronous>, transform_indices = @transform_13, window_bounds = array<i64: 32, 32>}, {pipeline_mode = #tpu.pipeline_mode<synchronous>, transform_indices = @transform_14, window_bounds = array<i64: 1, 32>}, {pipeline_mode = #tpu.pipeline_mode<synchronous>, transform_indices = @transform_15, window_bounds = array<i64: 32, 32>}, {pipeline_mode = #tpu.pipeline_mode<synchronous>, transform_indices = @transform_16, window_bounds = array<i64: 1, 32>}, {pipeline_mode = #tpu.pipeline_mode<synchronous>, transform_indices = @transform_17, window_bounds = array<i64: 32, 32>}, {pipeline_mode = #tpu.pipeline_mode<synchronous>, transform_indices = @transform_18, window_bounds = array<i64: 1, 32>}, {pipeline_mode = #tpu.pipeline_mode<synchronous>, transform_indices = @transform_19, window_bounds = array<i64: 1, 32>}, {pipeline_mode = #tpu.pipeline_mode<synchronous>, transform_indices = @transform_20, window_bounds = array<i64: 1, 32>}, {pipeline_mode = #tpu.pipeline_mode<synchronous>, transform_indices = @transform_21, window_bounds = array<i64: 32, 64>}, {pipeline_mode = #tpu.pipeline_mode<synchronous>, transform_indices = @transform_22, window_bounds = array<i64: 1, 64>}, {pipeline_mode = #tpu.pipeline_mode<synchronous>, transform_indices = @transform_23, window_bounds = array<i64: 64, 32>}, {pipeline_mode = #tpu.pipeline_mode<synchronous>, transform_indices = @transform_24, window_bounds = array<i64: 1, 32>}, {pipeline_mode = #tpu.pipeline_mode<synchronous>, transform_indices = @transform_25, window_bounds = array<i64: 1, 32>}, {pipeline_mode = #tpu.pipeline_mode<synchronous>, transform_indices = @transform_26, window_bounds = array<i64: 1, 32>}, {transform_indices = @transform_27, window_bounds = array<i64: 1, 8, 32>}]} {
    %c0_i32 = arith.constant 0 : i32
    %0 = arith.cmpi eq, %arg1, %c0_i32 : i32
    %c0_i32_0 = arith.constant 0 : i32
    %1 = arith.cmpi eq, %arg2, %c0_i32_0 : i32
    %2 = arith.andi %0, %1 : i1
    %3 = arith.extui %2 : i1 to i32
    %c0_i32_1 = arith.constant 0 : i32
    %4 = arith.cmpi ne, %3, %c0_i32_1 : i32
    scf.if %4 {
      %c0_99 = arith.constant 0 : index
      %c0_100 = arith.constant 0 : index
      %c0_101 = arith.constant 0 : index
      %170 = vector.load %arg3[%c0_99, %c0_100, %c0_101] : memref<1x8x32xf32, #tpu.memory_space<vmem>>, vector<1x8x32xf32>
      %171 = vector.shape_cast %170 : vector<1x8x32xf32> to vector<8x32xf32>
      %c0_102 = arith.constant 0 : index
      %c0_103 = arith.constant 0 : index
      %172 = vector.load %arg31[%c0_102, %c0_103] : memref<8x32xf32, #tpu.memory_space<vmem>>, vector<8x32xf32>
      tpu.vector_store %arg31[%c0_102, %c0_103], %171 {strides = array<i32>} : memref<8x32xf32, #tpu.memory_space<vmem>>, vector<8x32xf32>,
    } else {
    }
    %c0_i32_2 = arith.constant 0 : i32
    %5 = arith.cmpi eq, %arg2, %c0_i32_2 : i32
    %6 = arith.extui %5 : i1 to i32
    %c0_i32_3 = arith.constant 0 : i32
    %7 = arith.cmpi ne, %6, %c0_i32_3 : i32
    scf.if %7 {
      %cst_99 = arith.constant 0xFF800000 : f32
      %170 = vector.broadcast %cst_99 : f32 to vector<4x8x1xf32>
      %c0_100 = arith.constant 0 : index
      %c0_101 = arith.constant 0 : index
      %c0_102 = arith.constant 0 : index
      %171 = vector.load %arg33[%c0_100, %c0_101, %c0_102] : memref<4x8x1xf32, #tpu.memory_space<vmem>>, vector<4x8x1xf32>
      tpu.vector_store %arg33[%c0_100, %c0_101, %c0_102], %170 {strides = array<i32>} : memref<4x8x1xf32, #tpu.memory_space<vmem>>, vector<4x8x1xf32>,
      %cst_103 = arith.constant 0.000000e+00 : f32
      %172 = vector.broadcast %cst_103 : f32 to vector<4x8x1xf32>
      %c0_104 = arith.constant 0 : index
      %c0_105 = arith.constant 0 : index
      %c0_106 = arith.constant 0 : index
      %173 = vector.load %arg34[%c0_104, %c0_105, %c0_106] : memref<4x8x1xf32, #tpu.memory_space<vmem>>, vector<4x8x1xf32>
      tpu.vector_store %arg34[%c0_104, %c0_105, %c0_106], %172 {strides = array<i32>} : memref<4x8x1xf32, #tpu.memory_space<vmem>>, vector<4x8x1xf32>,
      %cst_107 = arith.constant 0.000000e+00 : f32
      %174 = vector.broadcast %cst_107 : f32 to vector<4x8x8xf32>
      %c0_108 = arith.constant 0 : index
      %c0_109 = arith.constant 0 : index
      %c0_110 = arith.constant 0 : index
      %175 = vector.load %arg35[%c0_108, %c0_109, %c0_110] : memref<4x8x8xf32, #tpu.memory_space<vmem>>, vector<4x8x8xf32>
      tpu.vector_store %arg35[%c0_108, %c0_109, %c0_110], %174 {strides = array<i32>} : memref<4x8x8xf32, #tpu.memory_space<vmem>>, vector<4x8x8xf32>,
      %c0_111 = arith.constant 0 : index
      %c0_112 = arith.constant 0 : index
      %176 = vector.load %arg31[%c0_111, %c0_112] : memref<8x32xf32, #tpu.memory_space<vmem>>, vector<8x32xf32>
      %c0_113 = arith.constant 0 : index
      %c0_114 = arith.constant 0 : index
      %c0_115 = arith.constant 0 : index
      %177 = vector.load %arg4[%c0_113, %c0_114, %c0_115] : memref<1x8x32xf32, #tpu.memory_space<vmem>>, vector<1x8x32xf32>
      %178 = vector.shape_cast %177 : vector<1x8x32xf32> to vector<8x32xf32>
      %179 = arith.addf %176, %178 : vector<8x32xf32>
      %c0_116 = arith.constant 0 : index
      %c0_117 = arith.constant 0 : index
      %180 = vector.load %arg8[%c0_116, %c0_117] : memref<32x32xf32, #tpu.memory_space<vmem>>, vector<32x32xf32>
      %cst_118 = arith.constant dense<0.000000e+00> : vector<8x32xf32>
      %181 = tpu.matmul %179, %180, %cst_118 {dimension_numbers = #tpu.dot_dimension_numbers<[1], [0], [0], [1], [0, 0, 1, 1], [], []>} : vector<8x32xf32>, vector<32x32xf32>, vector<8x32xf32> -> vector<8x32xf32>
      %c0_119 = arith.constant 0 : index
      %c0_120 = arith.constant 0 : index
      %182 = vector.load %arg9[%c0_119, %c0_120] : memref<1x32xf32, #tpu.memory_space<vmem>>, vector<1x32xf32>
      %183 = vector.broadcast %182 : vector<1x32xf32> to vector<8x32xf32>
      %184 = arith.addf %181, %183 : vector<8x32xf32>
      %cst_121 = arith.constant 0.353553385 : f32
      %185 = vector.broadcast %cst_121 : f32 to vector<8x32xf32>
      %186 = arith.mulf %184, %185 : vector<8x32xf32>
      %c0_122 = arith.constant 0 : index
      %c0_123 = arith.constant 0 : index
      %187 = vector.load %arg32[%c0_122, %c0_123] : memref<8x32xf32, #tpu.memory_space<vmem>>, vector<8x32xf32>
      tpu.vector_store %arg32[%c0_122, %c0_123], %186 {strides = array<i32>} : memref<8x32xf32, #tpu.memory_space<vmem>>, vector<8x32xf32>,
    } else {
    }
    %c0 = arith.constant 0 : index
    %c0_4 = arith.constant 0 : index
    %c0_5 = arith.constant 0 : index
    %8 = vector.load %arg5[%c0, %c0_4, %c0_5] : memref<1x128x32xbf16, #tpu.memory_space<vmem>>, vector<1x128x32xbf16>
    %9 = vector.shape_cast %8 : vector<1x128x32xbf16> to vector<128x32xbf16>
    %c0_6 = arith.constant 0 : index
    %c0_7 = arith.constant 0 : index
    %c0_8 = arith.constant 0 : index
    %10 = vector.load %arg6[%c0_6, %c0_7, %c0_8] : memref<1x128x32xbf16, #tpu.memory_space<vmem>>, vector<1x128x32xbf16>
    %11 = vector.shape_cast %10 : vector<1x128x32xbf16> to vector<128x32xbf16>
    %c0_9 = arith.constant 0 : index
    %c0_10 = arith.constant 0 : index
    %c0_11 = arith.constant 0 : index
    %12 = vector.load %arg7[%c0_9, %c0_10, %c0_11] : memref<1x8x128xf32, #tpu.memory_space<vmem>>, vector<1x8x128xf32>
    %13 = vector.shape_cast %12 : vector<1x8x128xf32> to vector<8x128xf32>
    %c0_12 = arith.constant 0 : index
    %c0_13 = arith.constant 0 : index
    %14 = vector.load %arg32[%c0_12, %c0_13] : memref<8x32xf32, #tpu.memory_space<vmem>>, vector<8x32xf32>
    %15 = vector.extract_strided_slice %14 {offsets = [0, 0], sizes = [8, 8], strides = [1, 1]} : vector<8x32xf32> to vector<8x8xf32>
    %16 = arith.truncf %15 : vector<8x8xf32> to vector<8x8xbf16>
    %17 = vector.extract_strided_slice %9 {offsets = [0, 0], sizes = [128, 8], strides = [1, 1]} : vector<128x32xbf16> to vector<128x8xbf16>
    %cst = arith.constant dense<0.000000e+00> : vector<8x128xf32>
    %18 = tpu.matmul %16, %17, %cst {dimension_numbers = #tpu.dot_dimension_numbers<[1], [1], [0], [0], [0, 0, 1, 0], [], []>} : vector<8x8xbf16>, vector<128x8xbf16>, vector<8x128xf32> -> vector<8x128xf32>
    %19 = arith.addf %18, %13 : vector<8x128xf32>
    %c0_14 = arith.constant 0 : index
    %c0_15 = arith.constant 0 : index
    %c0_16 = arith.constant 0 : index
    %20 = vector.load %arg33[%c0_14, %c0_15, %c0_16] : memref<4x8x1xf32, #tpu.memory_space<vmem>>, vector<1x8x1xf32>
    %21 = vector.shape_cast %20 : vector<1x8x1xf32> to vector<8x1xf32>
    %cst_17 = arith.constant dense<0xFF800000> : vector<8xf32>
    %22 = vector.multi_reduction <maximumf>, %19, %cst_17 [1] : vector<8x128xf32> to vector<8xf32>
    %23 = vector.shape_cast %22 : vector<8xf32> to vector<8x1xf32>
    %24 = arith.maximumf %21, %23 : vector<8x1xf32>
    %25 = arith.subf %21, %24 : vector<8x1xf32>
    %26 = math.exp %25 : vector<8x1xf32>
    %27 = vector.broadcast %24 : vector<8x1xf32> to vector<8x128xf32>
    %28 = arith.subf %19, %27 : vector<8x128xf32>
    %29 = math.exp %28 : vector<8x128xf32>
    %c0_18 = arith.constant 0 : index
    %c0_19 = arith.constant 0 : index
    %c0_20 = arith.constant 0 : index
    %30 = vector.load %arg34[%c0_18, %c0_19, %c0_20] : memref<4x8x1xf32, #tpu.memory_space<vmem>>, vector<1x8x1xf32>
    %31 = vector.shape_cast %30 : vector<1x8x1xf32> to vector<8x1xf32>
    %32 = arith.mulf %26, %31 : vector<8x1xf32>
    %cst_21 = arith.constant dense<0.000000e+00> : vector<8xf32>
    %33 = vector.multi_reduction <add>, %29, %cst_21 [1] : vector<8x128xf32> to vector<8xf32>
    %34 = vector.shape_cast %33 : vector<8xf32> to vector<8x1xf32>
    %35 = arith.addf %32, %34 : vector<8x1xf32>
    %c0_22 = arith.constant 0 : index
    %c0_23 = arith.constant 0 : index
    %c0_24 = arith.constant 0 : index
    %36 = vector.load %arg34[%c0_22, %c0_23, %c0_24] : memref<4x8x1xf32, #tpu.memory_space<vmem>>, vector<1x8x1xf32>
    %37 = vector.shape_cast %36 : vector<1x8x1xf32> to vector<8x1xf32>
    %38 = vector.shape_cast %35 : vector<8x1xf32> to vector<1x8x1xf32>
    tpu.vector_store %arg34[%c0_22, %c0_23, %c0_24], %38 {strides = array<i32>} : memref<4x8x1xf32, #tpu.memory_space<vmem>>, vector<1x8x1xf32>,
    %c0_25 = arith.constant 0 : index
    %c0_26 = arith.constant 0 : index
    %c0_27 = arith.constant 0 : index
    %39 = vector.load %arg35[%c0_25, %c0_26, %c0_27] : memref<4x8x8xf32, #tpu.memory_space<vmem>>, vector<1x8x8xf32>
    %40 = vector.shape_cast %39 : vector<1x8x8xf32> to vector<8x8xf32>
    %41 = vector.broadcast %26 : vector<8x1xf32> to vector<8x8xf32>
    %42 = arith.mulf %41, %40 : vector<8x8xf32>
    %43 = arith.truncf %29 : vector<8x128xf32> to vector<8x128xbf16>
    %44 = vector.extract_strided_slice %11 {offsets = [0, 0], sizes = [128, 8], strides = [1, 1]} : vector<128x32xbf16> to vector<128x8xbf16>
    %cst_28 = arith.constant dense<0.000000e+00> : vector<8x8xf32>
    %45 = tpu.matmul %43, %44, %cst_28 {dimension_numbers = #tpu.dot_dimension_numbers<[1], [0], [0], [1], [0, 0, 1, 1], [], []>} : vector<8x128xbf16>, vector<128x8xbf16>, vector<8x8xf32> -> vector<8x8xf32>
    %46 = arith.addf %42, %45 : vector<8x8xf32>
    %c0_29 = arith.constant 0 : index
    %c0_30 = arith.constant 0 : index
    %c0_31 = arith.constant 0 : index
    %47 = vector.load %arg35[%c0_29, %c0_30, %c0_31] : memref<4x8x8xf32, #tpu.memory_space<vmem>>, vector<1x8x8xf32>
    %48 = vector.shape_cast %47 : vector<1x8x8xf32> to vector<8x8xf32>
    %49 = vector.shape_cast %46 : vector<8x8xf32> to vector<1x8x8xf32>
    tpu.vector_store %arg35[%c0_29, %c0_30, %c0_31], %49 {strides = array<i32>} : memref<4x8x8xf32, #tpu.memory_space<vmem>>, vector<1x8x8xf32>,
    %c0_32 = arith.constant 0 : index
    %c0_33 = arith.constant 0 : index
    %c0_34 = arith.constant 0 : index
    %50 = vector.load %arg33[%c0_32, %c0_33, %c0_34] : memref<4x8x1xf32, #tpu.memory_space<vmem>>, vector<1x8x1xf32>
    %51 = vector.shape_cast %50 : vector<1x8x1xf32> to vector<8x1xf32>
    %52 = vector.shape_cast %24 : vector<8x1xf32> to vector<1x8x1xf32>
    tpu.vector_store %arg33[%c0_32, %c0_33, %c0_34], %52 {strides = array<i32>} : memref<4x8x1xf32, #tpu.memory_space<vmem>>, vector<1x8x1xf32>,
    %53 = vector.extract_strided_slice %14 {offsets = [0, 8], sizes = [8, 8], strides = [1, 1]} : vector<8x32xf32> to vector<8x8xf32>
    %54 = arith.truncf %53 : vector<8x8xf32> to vector<8x8xbf16>
    %55 = vector.extract_strided_slice %9 {offsets = [0, 8], sizes = [128, 8], strides = [1, 1]} : vector<128x32xbf16> to vector<128x8xbf16>
    %cst_35 = arith.constant dense<0.000000e+00> : vector<8x128xf32>
    %56 = tpu.matmul %54, %55, %cst_35 {dimension_numbers = #tpu.dot_dimension_numbers<[1], [1], [0], [0], [0, 0, 1, 0], [], []>} : vector<8x8xbf16>, vector<128x8xbf16>, vector<8x128xf32> -> vector<8x128xf32>
    %57 = arith.addf %56, %13 : vector<8x128xf32>
    %c1 = arith.constant 1 : index
    %c0_36 = arith.constant 0 : index
    %c0_37 = arith.constant 0 : index
    %58 = vector.load %arg33[%c1, %c0_36, %c0_37] : memref<4x8x1xf32, #tpu.memory_space<vmem>>, vector<1x8x1xf32>
    %59 = vector.shape_cast %58 : vector<1x8x1xf32> to vector<8x1xf32>
    %cst_38 = arith.constant dense<0xFF800000> : vector<8xf32>
    %60 = vector.multi_reduction <maximumf>, %57, %cst_38 [1] : vector<8x128xf32> to vector<8xf32>
    %61 = vector.shape_cast %60 : vector<8xf32> to vector<8x1xf32>
    %62 = arith.maximumf %59, %61 : vector<8x1xf32>
    %63 = arith.subf %59, %62 : vector<8x1xf32>
    %64 = math.exp %63 : vector<8x1xf32>
    %65 = vector.broadcast %62 : vector<8x1xf32> to vector<8x128xf32>
    %66 = arith.subf %57, %65 : vector<8x128xf32>
    %67 = math.exp %66 : vector<8x128xf32>
    %c1_39 = arith.constant 1 : index
    %c0_40 = arith.constant 0 : index
    %c0_41 = arith.constant 0 : index
    %68 = vector.load %arg34[%c1_39, %c0_40, %c0_41] : memref<4x8x1xf32, #tpu.memory_space<vmem>>, vector<1x8x1xf32>
    %69 = vector.shape_cast %68 : vector<1x8x1xf32> to vector<8x1xf32>
    %70 = arith.mulf %64, %69 : vector<8x1xf32>
    %cst_42 = arith.constant dense<0.000000e+00> : vector<8xf32>
    %71 = vector.multi_reduction <add>, %67, %cst_42 [1] : vector<8x128xf32> to vector<8xf32>
    %72 = vector.shape_cast %71 : vector<8xf32> to vector<8x1xf32>
    %73 = arith.addf %70, %72 : vector<8x1xf32>
    %c1_43 = arith.constant 1 : index
    %c0_44 = arith.constant 0 : index
    %c0_45 = arith.constant 0 : index
    %74 = vector.load %arg34[%c1_43, %c0_44, %c0_45] : memref<4x8x1xf32, #tpu.memory_space<vmem>>, vector<1x8x1xf32>
    %75 = vector.shape_cast %74 : vector<1x8x1xf32> to vector<8x1xf32>
    %76 = vector.shape_cast %73 : vector<8x1xf32> to vector<1x8x1xf32>
    tpu.vector_store %arg34[%c1_43, %c0_44, %c0_45], %76 {strides = array<i32>} : memref<4x8x1xf32, #tpu.memory_space<vmem>>, vector<1x8x1xf32>,
    %c1_46 = arith.constant 1 : index
    %c0_47 = arith.constant 0 : index
    %c0_48 = arith.constant 0 : index
    %77 = vector.load %arg35[%c1_46, %c0_47, %c0_48] : memref<4x8x8xf32, #tpu.memory_space<vmem>>, vector<1x8x8xf32>
    %78 = vector.shape_cast %77 : vector<1x8x8xf32> to vector<8x8xf32>
    %79 = vector.broadcast %64 : vector<8x1xf32> to vector<8x8xf32>
    %80 = arith.mulf %79, %78 : vector<8x8xf32>
    %81 = arith.truncf %67 : vector<8x128xf32> to vector<8x128xbf16>
    %82 = vector.extract_strided_slice %11 {offsets = [0, 8], sizes = [128, 8], strides = [1, 1]} : vector<128x32xbf16> to vector<128x8xbf16>
    %cst_49 = arith.constant dense<0.000000e+00> : vector<8x8xf32>
    %83 = tpu.matmul %81, %82, %cst_49 {dimension_numbers = #tpu.dot_dimension_numbers<[1], [0], [0], [1], [0, 0, 1, 1], [], []>} : vector<8x128xbf16>, vector<128x8xbf16>, vector<8x8xf32> -> vector<8x8xf32>
    %84 = arith.addf %80, %83 : vector<8x8xf32>
    %c1_50 = arith.constant 1 : index
    %c0_51 = arith.constant 0 : index
    %c0_52 = arith.constant 0 : index
    %85 = vector.load %arg35[%c1_50, %c0_51, %c0_52] : memref<4x8x8xf32, #tpu.memory_space<vmem>>, vector<1x8x8xf32>
    %86 = vector.shape_cast %85 : vector<1x8x8xf32> to vector<8x8xf32>
    %87 = vector.shape_cast %84 : vector<8x8xf32> to vector<1x8x8xf32>
    tpu.vector_store %arg35[%c1_50, %c0_51, %c0_52], %87 {strides = array<i32>} : memref<4x8x8xf32, #tpu.memory_space<vmem>>, vector<1x8x8xf32>,
    %c1_53 = arith.constant 1 : index
    %c0_54 = arith.constant 0 : index
    %c0_55 = arith.constant 0 : index
    %88 = vector.load %arg33[%c1_53, %c0_54, %c0_55] : memref<4x8x1xf32, #tpu.memory_space<vmem>>, vector<1x8x1xf32>
    %89 = vector.shape_cast %88 : vector<1x8x1xf32> to vector<8x1xf32>
    %90 = vector.shape_cast %62 : vector<8x1xf32> to vector<1x8x1xf32>
    tpu.vector_store %arg33[%c1_53, %c0_54, %c0_55], %90 {strides = array<i32>} : memref<4x8x1xf32, #tpu.memory_space<vmem>>, vector<1x8x1xf32>,
    %91 = vector.extract_strided_slice %14 {offsets = [0, 16], sizes = [8, 8], strides = [1, 1]} : vector<8x32xf32> to vector<8x8xf32>
    %92 = arith.truncf %91 : vector<8x8xf32> to vector<8x8xbf16>
    %93 = vector.extract_strided_slice %9 {offsets = [0, 16], sizes = [128, 8], strides = [1, 1]} : vector<128x32xbf16> to vector<128x8xbf16>
    %cst_56 = arith.constant dense<0.000000e+00> : vector<8x128xf32>
    %94 = tpu.matmul %92, %93, %cst_56 {dimension_numbers = #tpu.dot_dimension_numbers<[1], [1], [0], [0], [0, 0, 1, 0], [], []>} : vector<8x8xbf16>, vector<128x8xbf16>, vector<8x128xf32> -> vector<8x128xf32>
    %95 = arith.addf %94, %13 : vector<8x128xf32>
    %c2 = arith.constant 2 : index
    %c0_57 = arith.constant 0 : index
    %c0_58 = arith.constant 0 : index
    %96 = vector.load %arg33[%c2, %c0_57, %c0_58] : memref<4x8x1xf32, #tpu.memory_space<vmem>>, vector<1x8x1xf32>
    %97 = vector.shape_cast %96 : vector<1x8x1xf32> to vector<8x1xf32>
    %cst_59 = arith.constant dense<0xFF800000> : vector<8xf32>
    %98 = vector.multi_reduction <maximumf>, %95, %cst_59 [1] : vector<8x128xf32> to vector<8xf32>
    %99 = vector.shape_cast %98 : vector<8xf32> to vector<8x1xf32>
    %100 = arith.maximumf %97, %99 : vector<8x1xf32>
    %101 = arith.subf %97, %100 : vector<8x1xf32>
    %102 = math.exp %101 : vector<8x1xf32>
    %103 = vector.broadcast %100 : vector<8x1xf32> to vector<8x128xf32>
    %104 = arith.subf %95, %103 : vector<8x128xf32>
    %105 = math.exp %104 : vector<8x128xf32>
    %c2_60 = arith.constant 2 : index
    %c0_61 = arith.constant 0 : index
    %c0_62 = arith.constant 0 : index
    %106 = vector.load %arg34[%c2_60, %c0_61, %c0_62] : memref<4x8x1xf32, #tpu.memory_space<vmem>>, vector<1x8x1xf32>
    %107 = vector.shape_cast %106 : vector<1x8x1xf32> to vector<8x1xf32>
    %108 = arith.mulf %102, %107 : vector<8x1xf32>
    %cst_63 = arith.constant dense<0.000000e+00> : vector<8xf32>
    %109 = vector.multi_reduction <add>, %105, %cst_63 [1] : vector<8x128xf32> to vector<8xf32>
    %110 = vector.shape_cast %109 : vector<8xf32> to vector<8x1xf32>
    %111 = arith.addf %108, %110 : vector<8x1xf32>
    %c2_64 = arith.constant 2 : index
    %c0_65 = arith.constant 0 : index
    %c0_66 = arith.constant 0 : index
    %112 = vector.load %arg34[%c2_64, %c0_65, %c0_66] : memref<4x8x1xf32, #tpu.memory_space<vmem>>, vector<1x8x1xf32>
    %113 = vector.shape_cast %112 : vector<1x8x1xf32> to vector<8x1xf32>
    %114 = vector.shape_cast %111 : vector<8x1xf32> to vector<1x8x1xf32>
    tpu.vector_store %arg34[%c2_64, %c0_65, %c0_66], %114 {strides = array<i32>} : memref<4x8x1xf32, #tpu.memory_space<vmem>>, vector<1x8x1xf32>,
    %c2_67 = arith.constant 2 : index
    %c0_68 = arith.constant 0 : index
    %c0_69 = arith.constant 0 : index
    %115 = vector.load %arg35[%c2_67, %c0_68, %c0_69] : memref<4x8x8xf32, #tpu.memory_space<vmem>>, vector<1x8x8xf32>
    %116 = vector.shape_cast %115 : vector<1x8x8xf32> to vector<8x8xf32>
    %117 = vector.broadcast %102 : vector<8x1xf32> to vector<8x8xf32>
    %118 = arith.mulf %117, %116 : vector<8x8xf32>
    %119 = arith.truncf %105 : vector<8x128xf32> to vector<8x128xbf16>
    %120 = vector.extract_strided_slice %11 {offsets = [0, 16], sizes = [128, 8], strides = [1, 1]} : vector<128x32xbf16> to vector<128x8xbf16>
    %cst_70 = arith.constant dense<0.000000e+00> : vector<8x8xf32>
    %121 = tpu.matmul %119, %120, %cst_70 {dimension_numbers = #tpu.dot_dimension_numbers<[1], [0], [0], [1], [0, 0, 1, 1], [], []>} : vector<8x128xbf16>, vector<128x8xbf16>, vector<8x8xf32> -> vector<8x8xf32>
    %122 = arith.addf %118, %121 : vector<8x8xf32>
    %c2_71 = arith.constant 2 : index
    %c0_72 = arith.constant 0 : index
    %c0_73 = arith.constant 0 : index
    %123 = vector.load %arg35[%c2_71, %c0_72, %c0_73] : memref<4x8x8xf32, #tpu.memory_space<vmem>>, vector<1x8x8xf32>
    %124 = vector.shape_cast %123 : vector<1x8x8xf32> to vector<8x8xf32>
    %125 = vector.shape_cast %122 : vector<8x8xf32> to vector<1x8x8xf32>
    tpu.vector_store %arg35[%c2_71, %c0_72, %c0_73], %125 {strides = array<i32>} : memref<4x8x8xf32, #tpu.memory_space<vmem>>, vector<1x8x8xf32>,
    %c2_74 = arith.constant 2 : index
    %c0_75 = arith.constant 0 : index
    %c0_76 = arith.constant 0 : index
    %126 = vector.load %arg33[%c2_74, %c0_75, %c0_76] : memref<4x8x1xf32, #tpu.memory_space<vmem>>, vector<1x8x1xf32>
    %127 = vector.shape_cast %126 : vector<1x8x1xf32> to vector<8x1xf32>
    %128 = vector.shape_cast %100 : vector<8x1xf32> to vector<1x8x1xf32>
    tpu.vector_store %arg33[%c2_74, %c0_75, %c0_76], %128 {strides = array<i32>} : memref<4x8x1xf32, #tpu.memory_space<vmem>>, vector<1x8x1xf32>,
    %129 = vector.extract_strided_slice %14 {offsets = [0, 24], sizes = [8, 8], strides = [1, 1]} : vector<8x32xf32> to vector<8x8xf32>
    %130 = arith.truncf %129 : vector<8x8xf32> to vector<8x8xbf16>
    %131 = vector.extract_strided_slice %9 {offsets = [0, 24], sizes = [128, 8], strides = [1, 1]} : vector<128x32xbf16> to vector<128x8xbf16>
    %cst_77 = arith.constant dense<0.000000e+00> : vector<8x128xf32>
    %132 = tpu.matmul %130, %131, %cst_77 {dimension_numbers = #tpu.dot_dimension_numbers<[1], [1], [0], [0], [0, 0, 1, 0], [], []>} : vector<8x8xbf16>, vector<128x8xbf16>, vector<8x128xf32> -> vector<8x128xf32>
    %133 = arith.addf %132, %13 : vector<8x128xf32>
    %c3 = arith.constant 3 : index
    %c0_78 = arith.constant 0 : index
    %c0_79 = arith.constant 0 : index
    %134 = vector.load %arg33[%c3, %c0_78, %c0_79] : memref<4x8x1xf32, #tpu.memory_space<vmem>>, vector<1x8x1xf32>
    %135 = vector.shape_cast %134 : vector<1x8x1xf32> to vector<8x1xf32>
    %cst_80 = arith.constant dense<0xFF800000> : vector<8xf32>
    %136 = vector.multi_reduction <maximumf>, %133, %cst_80 [1] : vector<8x128xf32> to vector<8xf32>
    %137 = vector.shape_cast %136 : vector<8xf32> to vector<8x1xf32>
    %138 = arith.maximumf %135, %137 : vector<8x1xf32>
    %139 = arith.subf %135, %138 : vector<8x1xf32>
    %140 = math.exp %139 : vector<8x1xf32>
    %141 = vector.broadcast %138 : vector<8x1xf32> to vector<8x128xf32>
    %142 = arith.subf %133, %141 : vector<8x128xf32>
    %143 = math.exp %142 : vector<8x128xf32>
    %c3_81 = arith.constant 3 : index
    %c0_82 = arith.constant 0 : index
    %c0_83 = arith.constant 0 : index
    %144 = vector.load %arg34[%c3_81, %c0_82, %c0_83] : memref<4x8x1xf32, #tpu.memory_space<vmem>>, vector<1x8x1xf32>
    %145 = vector.shape_cast %144 : vector<1x8x1xf32> to vector<8x1xf32>
    %146 = arith.mulf %140, %145 : vector<8x1xf32>
    %cst_84 = arith.constant dense<0.000000e+00> : vector<8xf32>
    %147 = vector.multi_reduction <add>, %143, %cst_84 [1] : vector<8x128xf32> to vector<8xf32>
    %148 = vector.shape_cast %147 : vector<8xf32> to vector<8x1xf32>
    %149 = arith.addf %146, %148 : vector<8x1xf32>
    %c3_85 = arith.constant 3 : index
    %c0_86 = arith.constant 0 : index
    %c0_87 = arith.constant 0 : index
    %150 = vector.load %arg34[%c3_85, %c0_86, %c0_87] : memref<4x8x1xf32, #tpu.memory_space<vmem>>, vector<1x8x1xf32>
    %151 = vector.shape_cast %150 : vector<1x8x1xf32> to vector<8x1xf32>
    %152 = vector.shape_cast %149 : vector<8x1xf32> to vector<1x8x1xf32>
    tpu.vector_store %arg34[%c3_85, %c0_86, %c0_87], %152 {strides = array<i32>} : memref<4x8x1xf32, #tpu.memory_space<vmem>>, vector<1x8x1xf32>,
    %c3_88 = arith.constant 3 : index
    %c0_89 = arith.constant 0 : index
    %c0_90 = arith.constant 0 : index
    %153 = vector.load %arg35[%c3_88, %c0_89, %c0_90] : memref<4x8x8xf32, #tpu.memory_space<vmem>>, vector<1x8x8xf32>
    %154 = vector.shape_cast %153 : vector<1x8x8xf32> to vector<8x8xf32>
    %155 = vector.broadcast %140 : vector<8x1xf32> to vector<8x8xf32>
    %156 = arith.mulf %155, %154 : vector<8x8xf32>
    %157 = arith.truncf %143 : vector<8x128xf32> to vector<8x128xbf16>
    %158 = vector.extract_strided_slice %11 {offsets = [0, 24], sizes = [128, 8], strides = [1, 1]} : vector<128x32xbf16> to vector<128x8xbf16>
    %cst_91 = arith.constant dense<0.000000e+00> : vector<8x8xf32>
    %159 = tpu.matmul %157, %158, %cst_91 {dimension_numbers = #tpu.dot_dimension_numbers<[1], [0], [0], [1], [0, 0, 1, 1], [], []>} : vector<8x128xbf16>, vector<128x8xbf16>, vector<8x8xf32> -> vector<8x8xf32>
    %160 = arith.addf %156, %159 : vector<8x8xf32>
    %c3_92 = arith.constant 3 : index
    %c0_93 = arith.constant 0 : index
    %c0_94 = arith.constant 0 : index
    %161 = vector.load %arg35[%c3_92, %c0_93, %c0_94] : memref<4x8x8xf32, #tpu.memory_space<vmem>>, vector<1x8x8xf32>
    %162 = vector.shape_cast %161 : vector<1x8x8xf32> to vector<8x8xf32>
    %163 = vector.shape_cast %160 : vector<8x8xf32> to vector<1x8x8xf32>
    tpu.vector_store %arg35[%c3_92, %c0_93, %c0_94], %163 {strides = array<i32>} : memref<4x8x8xf32, #tpu.memory_space<vmem>>, vector<1x8x8xf32>,
    %c3_95 = arith.constant 3 : index
    %c0_96 = arith.constant 0 : index
    %c0_97 = arith.constant 0 : index
    %164 = vector.load %arg33[%c3_95, %c0_96, %c0_97] : memref<4x8x1xf32, #tpu.memory_space<vmem>>, vector<1x8x1xf32>
    %165 = vector.shape_cast %164 : vector<1x8x1xf32> to vector<8x1xf32>
    %166 = vector.shape_cast %138 : vector<8x1xf32> to vector<1x8x1xf32>
    tpu.vector_store %arg33[%c3_95, %c0_96, %c0_97], %166 {strides = array<i32>} : memref<4x8x1xf32, #tpu.memory_space<vmem>>, vector<1x8x1xf32>,
    %c1_i32 = arith.constant 1 : i32
    %167 = arith.cmpi eq, %arg2, %c1_i32 : i32
    %168 = arith.extui %167 : i1 to i32
    %c0_i32_98 = arith.constant 0 : i32
    %169 = arith.cmpi ne, %168, %c0_i32_98 : i32
    scf.if %169 {
      %c0_99 = arith.constant 0 : index
      %c0_100 = arith.constant 0 : index
      %170 = vector.load %arg31[%c0_99, %c0_100] : memref<8x32xf32, #tpu.memory_space<vmem>>, vector<8x32xf32>
      %c0_101 = arith.constant 0 : index
      %c0_102 = arith.constant 0 : index
      %c0_103 = arith.constant 0 : index
      %171 = vector.load %arg4[%c0_101, %c0_102, %c0_103] : memref<1x8x32xf32, #tpu.memory_space<vmem>>, vector<1x8x32xf32>
      %172 = vector.shape_cast %171 : vector<1x8x32xf32> to vector<8x32xf32>
      %c0_104 = arith.constant 0 : index
      %c0_105 = arith.constant 0 : index
      %c0_106 = arith.constant 0 : index
      %173 = vector.load %arg35[%c0_104, %c0_105, %c0_106] : memref<4x8x8xf32, #tpu.memory_space<vmem>>, vector<1x8x8xf32>
      %174 = vector.shape_cast %173 : vector<1x8x8xf32> to vector<8x8xf32>
      %c0_107 = arith.constant 0 : index
      %c0_108 = arith.constant 0 : index
      %c0_109 = arith.constant 0 : index
      %175 = vector.load %arg34[%c0_107, %c0_108, %c0_109] : memref<4x8x1xf32, #tpu.memory_space<vmem>>, vector<1x8x1xf32>
      %176 = vector.shape_cast %175 : vector<1x8x1xf32> to vector<8x1xf32>
      %177 = tpu.reciprocal %176 {approx = true} : vector<8x1xf32> -> vector<8x1xf32>
      %178 = vector.broadcast %177 : vector<8x1xf32> to vector<8x8xf32>
      %179 = arith.mulf %174, %178 : vector<8x8xf32>
      %c1_110 = arith.constant 1 : index
      %c0_111 = arith.constant 0 : index
      %c0_112 = arith.constant 0 : index
      %180 = vector.load %arg35[%c1_110, %c0_111, %c0_112] : memref<4x8x8xf32, #tpu.memory_space<vmem>>, vector<1x8x8xf32>
      %181 = vector.shape_cast %180 : vector<1x8x8xf32> to vector<8x8xf32>
      %c1_113 = arith.constant 1 : index
      %c0_114 = arith.constant 0 : index
      %c0_115 = arith.constant 0 : index
      %182 = vector.load %arg34[%c1_113, %c0_114, %c0_115] : memref<4x8x1xf32, #tpu.memory_space<vmem>>, vector<1x8x1xf32>
      %183 = vector.shape_cast %182 : vector<1x8x1xf32> to vector<8x1xf32>
      %184 = tpu.reciprocal %183 {approx = true} : vector<8x1xf32> -> vector<8x1xf32>
      %185 = vector.broadcast %184 : vector<8x1xf32> to vector<8x8xf32>
      %186 = arith.mulf %181, %185 : vector<8x8xf32>
      %c2_116 = arith.constant 2 : index
      %c0_117 = arith.constant 0 : index
      %c0_118 = arith.constant 0 : index
      %187 = vector.load %arg35[%c2_116, %c0_117, %c0_118] : memref<4x8x8xf32, #tpu.memory_space<vmem>>, vector<1x8x8xf32>
      %188 = vector.shape_cast %187 : vector<1x8x8xf32> to vector<8x8xf32>
      %c2_119 = arith.constant 2 : index
      %c0_120 = arith.constant 0 : index
      %c0_121 = arith.constant 0 : index
      %189 = vector.load %arg34[%c2_119, %c0_120, %c0_121] : memref<4x8x1xf32, #tpu.memory_space<vmem>>, vector<1x8x1xf32>
      %190 = vector.shape_cast %189 : vector<1x8x1xf32> to vector<8x1xf32>
      %191 = tpu.reciprocal %190 {approx = true} : vector<8x1xf32> -> vector<8x1xf32>
      %192 = vector.broadcast %191 : vector<8x1xf32> to vector<8x8xf32>
      %193 = arith.mulf %188, %192 : vector<8x8xf32>
      %c3_122 = arith.constant 3 : index
      %c0_123 = arith.constant 0 : index
      %c0_124 = arith.constant 0 : index
      %194 = vector.load %arg35[%c3_122, %c0_123, %c0_124] : memref<4x8x8xf32, #tpu.memory_space<vmem>>, vector<1x8x8xf32>
      %195 = vector.shape_cast %194 : vector<1x8x8xf32> to vector<8x8xf32>
      %c3_125 = arith.constant 3 : index
      %c0_126 = arith.constant 0 : index
      %c0_127 = arith.constant 0 : index
      %196 = vector.load %arg34[%c3_125, %c0_126, %c0_127] : memref<4x8x1xf32, #tpu.memory_space<vmem>>, vector<1x8x1xf32>
      %197 = vector.shape_cast %196 : vector<1x8x1xf32> to vector<8x1xf32>
      %198 = tpu.reciprocal %197 {approx = true} : vector<8x1xf32> -> vector<8x1xf32>
      %199 = vector.broadcast %198 : vector<8x1xf32> to vector<8x8xf32>
      %200 = arith.mulf %195, %199 : vector<8x8xf32>
      %201 = tpu.concatenate %179, %186, %193, %200 in 1 : vector<8x8xf32>, vector<8x8xf32>, vector<8x8xf32>, vector<8x8xf32> -> vector<8x32xf32>
      %c0_128 = arith.constant 0 : index
      %c0_129 = arith.constant 0 : index
      %202 = vector.load %arg10[%c0_128, %c0_129] : memref<32x32xf32, #tpu.memory_space<vmem>>, vector<32x32xf32>
      %cst_130 = arith.constant dense<0.000000e+00> : vector<8x32xf32>
      %203 = tpu.matmul %201, %202, %cst_130 {dimension_numbers = #tpu.dot_dimension_numbers<[1], [0], [0], [1], [0, 0, 1, 1], [], []>} : vector<8x32xf32>, vector<32x32xf32>, vector<8x32xf32> -> vector<8x32xf32>
      %c0_131 = arith.constant 0 : index
      %c0_132 = arith.constant 0 : index
      %204 = vector.load %arg11[%c0_131, %c0_132] : memref<1x32xf32, #tpu.memory_space<vmem>>, vector<1x32xf32>
      %205 = vector.broadcast %204 : vector<1x32xf32> to vector<8x32xf32>
      %206 = arith.addf %203, %205 : vector<8x32xf32>
      %207 = arith.addf %170, %206 : vector<8x32xf32>
      %c0_133 = arith.constant 0 : index
      %c0_134 = arith.constant 0 : index
      %208 = vector.load %arg12[%c0_133, %c0_134] : memref<1x32xf32, #tpu.memory_space<vmem>>, vector<1x32xf32>
      %c0_135 = arith.constant 0 : index
      %c0_136 = arith.constant 0 : index
      %209 = vector.load %arg13[%c0_135, %c0_136] : memref<1x32xf32, #tpu.memory_space<vmem>>, vector<1x32xf32>
      %cst_137 = arith.constant dense<0.000000e+00> : vector<8xf32>
      %210 = vector.multi_reduction <add>, %207, %cst_137 [1] : vector<8x32xf32> to vector<8xf32>
      %211 = vector.shape_cast %210 : vector<8xf32> to vector<8x1xf32>
      %cst_138 = arith.constant 3.200000e+01 : f32
      %212 = vector.broadcast %cst_138 : f32 to vector<8x1xf32>
      %213 = arith.divf %211, %212 : vector<8x1xf32>
      %214 = vector.broadcast %213 : vector<8x1xf32> to vector<8x32xf32>
      %215 = arith.subf %207, %214 : vector<8x32xf32>
      %216 = arith.mulf %215, %215 : vector<8x32xf32>
      %cst_139 = arith.constant dense<0.000000e+00> : vector<8xf32>
      %217 = vector.multi_reduction <add>, %216, %cst_139 [1] : vector<8x32xf32> to vector<8xf32>
      %218 = vector.shape_cast %217 : vector<8xf32> to vector<8x1xf32>
      %cst_140 = arith.constant 3.200000e+01 : f32
      %219 = vector.broadcast %cst_140 : f32 to vector<8x1xf32>
      %220 = arith.divf %218, %219 : vector<8x1xf32>
      %221 = vector.broadcast %213 : vector<8x1xf32> to vector<8x32xf32>
      %222 = arith.subf %207, %221 : vector<8x32xf32>
      %cst_141 = arith.constant 9.99999974E-6 : f32
      %223 = vector.broadcast %cst_141 : f32 to vector<8x1xf32>
      %224 = arith.addf %220, %223 : vector<8x1xf32>
      %225 = math.rsqrt %224 : vector<8x1xf32>
      %226 = vector.broadcast %225 : vector<8x1xf32> to vector<8x32xf32>
      %227 = arith.mulf %222, %226 : vector<8x32xf32>
      %228 = vector.broadcast %208 : vector<1x32xf32> to vector<8x32xf32>
      %229 = arith.mulf %227, %228 : vector<8x32xf32>
      %230 = vector.broadcast %209 : vector<1x32xf32> to vector<8x32xf32>
      %231 = arith.addf %229, %230 : vector<8x32xf32>
      %232 = arith.addf %231, %172 : vector<8x32xf32>
      %c0_142 = arith.constant 0 : index
      %c0_143 = arith.constant 0 : index
      %233 = vector.load %arg14[%c0_142, %c0_143] : memref<32x32xf32, #tpu.memory_space<vmem>>, vector<32x32xf32>
      %cst_144 = arith.constant dense<0.000000e+00> : vector<8x32xf32>
      %234 = tpu.matmul %232, %233, %cst_144 {dimension_numbers = #tpu.dot_dimension_numbers<[1], [0], [0], [1], [0, 0, 1, 1], [], []>} : vector<8x32xf32>, vector<32x32xf32>, vector<8x32xf32> -> vector<8x32xf32>
      %c0_145 = arith.constant 0 : index
      %c0_146 = arith.constant 0 : index
      %235 = vector.load %arg15[%c0_145, %c0_146] : memref<1x32xf32, #tpu.memory_space<vmem>>, vector<1x32xf32>
      %236 = vector.broadcast %235 : vector<1x32xf32> to vector<8x32xf32>
      %237 = arith.addf %234, %236 : vector<8x32xf32>
      %c0_147 = arith.constant 0 : index
      %c0_148 = arith.constant 0 : index
      %238 = vector.load %arg16[%c0_147, %c0_148] : memref<32x32xf32, #tpu.memory_space<vmem>>, vector<32x32xf32>
      %cst_149 = arith.constant dense<0.000000e+00> : vector<8x32xf32>
      %239 = tpu.matmul %232, %238, %cst_149 {dimension_numbers = #tpu.dot_dimension_numbers<[1], [0], [0], [1], [0, 0, 1, 1], [], []>} : vector<8x32xf32>, vector<32x32xf32>, vector<8x32xf32> -> vector<8x32xf32>
      %c0_150 = arith.constant 0 : index
      %c0_151 = arith.constant 0 : index
      %240 = vector.load %arg17[%c0_150, %c0_151] : memref<1x32xf32, #tpu.memory_space<vmem>>, vector<1x32xf32>
      %241 = vector.broadcast %240 : vector<1x32xf32> to vector<8x32xf32>
      %242 = arith.addf %239, %241 : vector<8x32xf32>
      %c0_152 = arith.constant 0 : index
      %c0_153 = arith.constant 0 : index
      %243 = vector.load %arg18[%c0_152, %c0_153] : memref<32x32xf32, #tpu.memory_space<vmem>>, vector<32x32xf32>
      %cst_154 = arith.constant dense<0.000000e+00> : vector<8x32xf32>
      %244 = tpu.matmul %231, %243, %cst_154 {dimension_numbers = #tpu.dot_dimension_numbers<[1], [0], [0], [1], [0, 0, 1, 1], [], []>} : vector<8x32xf32>, vector<32x32xf32>, vector<8x32xf32> -> vector<8x32xf32>
      %c0_155 = arith.constant 0 : index
      %c0_156 = arith.constant 0 : index
      %245 = vector.load %arg19[%c0_155, %c0_156] : memref<1x32xf32, #tpu.memory_space<vmem>>, vector<1x32xf32>
      %246 = vector.broadcast %245 : vector<1x32xf32> to vector<8x32xf32>
      %247 = arith.addf %244, %246 : vector<8x32xf32>
      %c0_157 = arith.constant 0 : index
      %c0_158 = arith.constant 0 : index
      %248 = vector.load %arg20[%c0_157, %c0_158] : memref<32x32xf32, #tpu.memory_space<vmem>>, vector<32x32xf32>
      %c0_159 = arith.constant 0 : index
      %c0_160 = arith.constant 0 : index
      %249 = vector.load %arg21[%c0_159, %c0_160] : memref<1x32xf32, #tpu.memory_space<vmem>>, vector<1x32xf32>
      %250 = vector.extract_strided_slice %237 {offsets = [0, 0], sizes = [8, 8], strides = [1, 1]} : vector<8x32xf32> to vector<8x8xf32>
      %cst_161 = arith.constant 0.353553385 : f32
      %251 = vector.broadcast %cst_161 : f32 to vector<8x8xf32>
      %252 = arith.mulf %250, %251 : vector<8x8xf32>
      %253 = vector.extract_strided_slice %242 {offsets = [0, 0], sizes = [8, 8], strides = [1, 1]} : vector<8x32xf32> to vector<8x8xf32>
      %254 = vector.extract_strided_slice %247 {offsets = [0, 0], sizes = [8, 8], strides = [1, 1]} : vector<8x32xf32> to vector<8x8xf32>
      %cst_162 = arith.constant dense<0.000000e+00> : vector<8x8xf32>
      %255 = tpu.matmul %252, %253, %cst_162 {dimension_numbers = #tpu.dot_dimension_numbers<[1], [1], [0], [0], [0, 0, 1, 0], [], []>} : vector<8x8xf32>, vector<8x8xf32>, vector<8x8xf32> -> vector<8x8xf32>
      %cst_163 = arith.constant dense<0xFF800000> : vector<8xf32>
      %256 = vector.multi_reduction <maximumf>, %255, %cst_163 [1] : vector<8x8xf32> to vector<8xf32>
      %257 = vector.shape_cast %256 : vector<8xf32> to vector<8x1xf32>
      %258 = vector.broadcast %257 : vector<8x1xf32> to vector<8x8xf32>
      %259 = arith.subf %255, %258 : vector<8x8xf32>
      %260 = math.exp %259 : vector<8x8xf32>
      %cst_164 = arith.constant dense<0.000000e+00> : vector<8xf32>
      %261 = vector.multi_reduction <add>, %260, %cst_164 [1] : vector<8x8xf32> to vector<8xf32>
      %262 = vector.shape_cast %261 : vector<8xf32> to vector<8x1xf32>
      %cst_165 = arith.constant dense<0.000000e+00> : vector<8x8xf32>
      %263 = tpu.matmul %260, %254, %cst_165 {dimension_numbers = #tpu.dot_dimension_numbers<[1], [0], [0], [1], [0, 0, 1, 1], [], []>} : vector<8x8xf32>, vector<8x8xf32>, vector<8x8xf32> -> vector<8x8xf32>
      %264 = tpu.reciprocal %262 {approx = true} : vector<8x1xf32> -> vector<8x1xf32>
      %265 = vector.broadcast %264 : vector<8x1xf32> to vector<8x8xf32>
      %266 = arith.mulf %263, %265 : vector<8x8xf32>
      %267 = vector.extract_strided_slice %237 {offsets = [0, 8], sizes = [8, 8], strides = [1, 1]} : vector<8x32xf32> to vector<8x8xf32>
      %cst_166 = arith.constant 0.353553385 : f32
      %268 = vector.broadcast %cst_166 : f32 to vector<8x8xf32>
      %269 = arith.mulf %267, %268 : vector<8x8xf32>
      %270 = vector.extract_strided_slice %242 {offsets = [0, 8], sizes = [8, 8], strides = [1, 1]} : vector<8x32xf32> to vector<8x8xf32>
      %271 = vector.extract_strided_slice %247 {offsets = [0, 8], sizes = [8, 8], strides = [1, 1]} : vector<8x32xf32> to vector<8x8xf32>
      %cst_167 = arith.constant dense<0.000000e+00> : vector<8x8xf32>
      %272 = tpu.matmul %269, %270, %cst_167 {dimension_numbers = #tpu.dot_dimension_numbers<[1], [1], [0], [0], [0, 0, 1, 0], [], []>} : vector<8x8xf32>, vector<8x8xf32>, vector<8x8xf32> -> vector<8x8xf32>
      %cst_168 = arith.constant dense<0xFF800000> : vector<8xf32>
      %273 = vector.multi_reduction <maximumf>, %272, %cst_168 [1] : vector<8x8xf32> to vector<8xf32>
      %274 = vector.shape_cast %273 : vector<8xf32> to vector<8x1xf32>
      %275 = vector.broadcast %274 : vector<8x1xf32> to vector<8x8xf32>
      %276 = arith.subf %272, %275 : vector<8x8xf32>
      %277 = math.exp %276 : vector<8x8xf32>
      %cst_169 = arith.constant dense<0.000000e+00> : vector<8xf32>
      %278 = vector.multi_reduction <add>, %277, %cst_169 [1] : vector<8x8xf32> to vector<8xf32>
      %279 = vector.shape_cast %278 : vector<8xf32> to vector<8x1xf32>
      %cst_170 = arith.constant dense<0.000000e+00> : vector<8x8xf32>
      %280 = tpu.matmul %277, %271, %cst_170 {dimension_numbers = #tpu.dot_dimension_numbers<[1], [0], [0], [1], [0, 0, 1, 1], [], []>} : vector<8x8xf32>, vector<8x8xf32>, vector<8x8xf32> -> vector<8x8xf32>
      %281 = tpu.reciprocal %279 {approx = true} : vector<8x1xf32> -> vector<8x1xf32>
      %282 = vector.broadcast %281 : vector<8x1xf32> to vector<8x8xf32>
      %283 = arith.mulf %280, %282 : vector<8x8xf32>
      %284 = vector.extract_strided_slice %237 {offsets = [0, 16], sizes = [8, 8], strides = [1, 1]} : vector<8x32xf32> to vector<8x8xf32>
      %cst_171 = arith.constant 0.353553385 : f32
      %285 = vector.broadcast %cst_171 : f32 to vector<8x8xf32>
      %286 = arith.mulf %284, %285 : vector<8x8xf32>
      %287 = vector.extract_strided_slice %242 {offsets = [0, 16], sizes = [8, 8], strides = [1, 1]} : vector<8x32xf32> to vector<8x8xf32>
      %288 = vector.extract_strided_slice %247 {offsets = [0, 16], sizes = [8, 8], strides = [1, 1]} : vector<8x32xf32> to vector<8x8xf32>
      %cst_172 = arith.constant dense<0.000000e+00> : vector<8x8xf32>
      %289 = tpu.matmul %286, %287, %cst_172 {dimension_numbers = #tpu.dot_dimension_numbers<[1], [1], [0], [0], [0, 0, 1, 0], [], []>} : vector<8x8xf32>, vector<8x8xf32>, vector<8x8xf32> -> vector<8x8xf32>
      %cst_173 = arith.constant dense<0xFF800000> : vector<8xf32>
      %290 = vector.multi_reduction <maximumf>, %289, %cst_173 [1] : vector<8x8xf32> to vector<8xf32>
      %291 = vector.shape_cast %290 : vector<8xf32> to vector<8x1xf32>
      %292 = vector.broadcast %291 : vector<8x1xf32> to vector<8x8xf32>
      %293 = arith.subf %289, %292 : vector<8x8xf32>
      %294 = math.exp %293 : vector<8x8xf32>
      %cst_174 = arith.constant dense<0.000000e+00> : vector<8xf32>
      %295 = vector.multi_reduction <add>, %294, %cst_174 [1] : vector<8x8xf32> to vector<8xf32>
      %296 = vector.shape_cast %295 : vector<8xf32> to vector<8x1xf32>
      %cst_175 = arith.constant dense<0.000000e+00> : vector<8x8xf32>
      %297 = tpu.matmul %294, %288, %cst_175 {dimension_numbers = #tpu.dot_dimension_numbers<[1], [0], [0], [1], [0, 0, 1, 1], [], []>} : vector<8x8xf32>, vector<8x8xf32>, vector<8x8xf32> -> vector<8x8xf32>
      %298 = tpu.reciprocal %296 {approx = true} : vector<8x1xf32> -> vector<8x1xf32>
      %299 = vector.broadcast %298 : vector<8x1xf32> to vector<8x8xf32>
      %300 = arith.mulf %297, %299 : vector<8x8xf32>
      %301 = vector.extract_strided_slice %237 {offsets = [0, 24], sizes = [8, 8], strides = [1, 1]} : vector<8x32xf32> to vector<8x8xf32>
      %cst_176 = arith.constant 0.353553385 : f32
      %302 = vector.broadcast %cst_176 : f32 to vector<8x8xf32>
      %303 = arith.mulf %301, %302 : vector<8x8xf32>
      %304 = vector.extract_strided_slice %242 {offsets = [0, 24], sizes = [8, 8], strides = [1, 1]} : vector<8x32xf32> to vector<8x8xf32>
      %305 = vector.extract_strided_slice %247 {offsets = [0, 24], sizes = [8, 8], strides = [1, 1]} : vector<8x32xf32> to vector<8x8xf32>
      %cst_177 = arith.constant dense<0.000000e+00> : vector<8x8xf32>
      %306 = tpu.matmul %303, %304, %cst_177 {dimension_numbers = #tpu.dot_dimension_numbers<[1], [1], [0], [0], [0, 0, 1, 0], [], []>} : vector<8x8xf32>, vector<8x8xf32>, vector<8x8xf32> -> vector<8x8xf32>
      %cst_178 = arith.constant dense<0xFF800000> : vector<8xf32>
      %307 = vector.multi_reduction <maximumf>, %306, %cst_178 [1] : vector<8x8xf32> to vector<8xf32>
      %308 = vector.shape_cast %307 : vector<8xf32> to vector<8x1xf32>
      %309 = vector.broadcast %308 : vector<8x1xf32> to vector<8x8xf32>
      %310 = arith.subf %306, %309 : vector<8x8xf32>
      %311 = math.exp %310 : vector<8x8xf32>
      %cst_179 = arith.constant dense<0.000000e+00> : vector<8xf32>
      %312 = vector.multi_reduction <add>, %311, %cst_179 [1] : vector<8x8xf32> to vector<8xf32>
      %313 = vector.shape_cast %312 : vector<8xf32> to vector<8x1xf32>
      %cst_180 = arith.constant dense<0.000000e+00> : vector<8x8xf32>
      %314 = tpu.matmul %311, %305, %cst_180 {dimension_numbers = #tpu.dot_dimension_numbers<[1], [0], [0], [1], [0, 0, 1, 1], [], []>} : vector<8x8xf32>, vector<8x8xf32>, vector<8x8xf32> -> vector<8x8xf32>
      %315 = tpu.reciprocal %313 {approx = true} : vector<8x1xf32> -> vector<8x1xf32>
      %316 = vector.broadcast %315 : vector<8x1xf32> to vector<8x8xf32>
      %317 = arith.mulf %314, %316 : vector<8x8xf32>
      %318 = tpu.concatenate %266, %283, %300, %317 in 1 : vector<8x8xf32>, vector<8x8xf32>, vector<8x8xf32>, vector<8x8xf32> -> vector<8x32xf32>
      %cst_181 = arith.constant dense<0.000000e+00> : vector<8x32xf32>
      %319 = tpu.matmul %318, %248, %cst_181 {dimension_numbers = #tpu.dot_dimension_numbers<[1], [0], [0], [1], [0, 0, 1, 1], [], []>} : vector<8x32xf32>, vector<32x32xf32>, vector<8x32xf32> -> vector<8x32xf32>
      %320 = vector.broadcast %249 : vector<1x32xf32> to vector<8x32xf32>
      %321 = arith.addf %319, %320 : vector<8x32xf32>
      %322 = arith.addf %231, %321 : vector<8x32xf32>
      %c0_182 = arith.constant 0 : index
      %c0_183 = arith.constant 0 : index
      %323 = vector.load %arg22[%c0_182, %c0_183] : memref<1x32xf32, #tpu.memory_space<vmem>>, vector<1x32xf32>
      %c0_184 = arith.constant 0 : index
      %c0_185 = arith.constant 0 : index
      %324 = vector.load %arg23[%c0_184, %c0_185] : memref<1x32xf32, #tpu.memory_space<vmem>>, vector<1x32xf32>
      %cst_186 = arith.constant dense<0.000000e+00> : vector<8xf32>
      %325 = vector.multi_reduction <add>, %322, %cst_186 [1] : vector<8x32xf32> to vector<8xf32>
      %326 = vector.shape_cast %325 : vector<8xf32> to vector<8x1xf32>
      %cst_187 = arith.constant 3.200000e+01 : f32
      %327 = vector.broadcast %cst_187 : f32 to vector<8x1xf32>
      %328 = arith.divf %326, %327 : vector<8x1xf32>
      %329 = vector.broadcast %328 : vector<8x1xf32> to vector<8x32xf32>
      %330 = arith.subf %322, %329 : vector<8x32xf32>
      %331 = arith.mulf %330, %330 : vector<8x32xf32>
      %cst_188 = arith.constant dense<0.000000e+00> : vector<8xf32>
      %332 = vector.multi_reduction <add>, %331, %cst_188 [1] : vector<8x32xf32> to vector<8xf32>
      %333 = vector.shape_cast %332 : vector<8xf32> to vector<8x1xf32>
      %cst_189 = arith.constant 3.200000e+01 : f32
      %334 = vector.broadcast %cst_189 : f32 to vector<8x1xf32>
      %335 = arith.divf %333, %334 : vector<8x1xf32>
      %336 = vector.broadcast %328 : vector<8x1xf32> to vector<8x32xf32>
      %337 = arith.subf %322, %336 : vector<8x32xf32>
      %cst_190 = arith.constant 9.99999974E-6 : f32
      %338 = vector.broadcast %cst_190 : f32 to vector<8x1xf32>
      %339 = arith.addf %335, %338 : vector<8x1xf32>
      %340 = math.rsqrt %339 : vector<8x1xf32>
      %341 = vector.broadcast %340 : vector<8x1xf32> to vector<8x32xf32>
      %342 = arith.mulf %337, %341 : vector<8x32xf32>
      %343 = vector.broadcast %323 : vector<1x32xf32> to vector<8x32xf32>
      %344 = arith.mulf %342, %343 : vector<8x32xf32>
      %345 = vector.broadcast %324 : vector<1x32xf32> to vector<8x32xf32>
      %346 = arith.addf %344, %345 : vector<8x32xf32>
      %c0_191 = arith.constant 0 : index
      %c0_192 = arith.constant 0 : index
      %347 = vector.load %arg24[%c0_191, %c0_192] : memref<32x64xf32, #tpu.memory_space<vmem>>, vector<32x64xf32>
      %cst_193 = arith.constant dense<0.000000e+00> : vector<8x64xf32>
      %348 = tpu.matmul %346, %347, %cst_193 {dimension_numbers = #tpu.dot_dimension_numbers<[1], [0], [0], [1], [0, 0, 1, 1], [], []>} : vector<8x32xf32>, vector<32x64xf32>, vector<8x64xf32> -> vector<8x64xf32>
      %c0_194 = arith.constant 0 : index
      %c0_195 = arith.constant 0 : index
      %349 = vector.load %arg25[%c0_194, %c0_195] : memref<1x64xf32, #tpu.memory_space<vmem>>, vector<1x64xf32>
      %350 = vector.broadcast %349 : vector<1x64xf32> to vector<8x64xf32>
      %351 = arith.addf %348, %350 : vector<8x64xf32>
      %cst_196 = arith.constant 0.000000e+00 : f32
      %352 = vector.broadcast %cst_196 : f32 to vector<8x64xf32>
      %353 = arith.maximumf %351, %352 : vector<8x64xf32>
      %c0_197 = arith.constant 0 : index
      %c0_198 = arith.constant 0 : index
      %354 = vector.load %arg26[%c0_197, %c0_198] : memref<64x32xf32, #tpu.memory_space<vmem>>, vector<64x32xf32>
      %cst_199 = arith.constant dense<0.000000e+00> : vector<8x32xf32>
      %355 = tpu.matmul %353, %354, %cst_199 {dimension_numbers = #tpu.dot_dimension_numbers<[1], [0], [0], [1], [0, 0, 1, 1], [], []>} : vector<8x64xf32>, vector<64x32xf32>, vector<8x32xf32> -> vector<8x32xf32>
      %c0_200 = arith.constant 0 : index
      %c0_201 = arith.constant 0 : index
      %356 = vector.load %arg27[%c0_200, %c0_201] : memref<1x32xf32, #tpu.memory_space<vmem>>, vector<1x32xf32>
      %357 = vector.broadcast %356 : vector<1x32xf32> to vector<8x32xf32>
      %358 = arith.addf %355, %357 : vector<8x32xf32>
      %359 = arith.addf %346, %358 : vector<8x32xf32>
      %c0_202 = arith.constant 0 : index
      %c0_203 = arith.constant 0 : index
      %360 = vector.load %arg28[%c0_202, %c0_203] : memref<1x32xf32, #tpu.memory_space<vmem>>, vector<1x32xf32>
      %c0_204 = arith.constant 0 : index
      %c0_205 = arith.constant 0 : index
      %361 = vector.load %arg29[%c0_204, %c0_205] : memref<1x32xf32, #tpu.memory_space<vmem>>, vector<1x32xf32>
      %cst_206 = arith.constant dense<0.000000e+00> : vector<8xf32>
      %362 = vector.multi_reduction <add>, %359, %cst_206 [1] : vector<8x32xf32> to vector<8xf32>
      %363 = vector.shape_cast %362 : vector<8xf32> to vector<8x1xf32>
      %cst_207 = arith.constant 3.200000e+01 : f32
      %364 = vector.broadcast %cst_207 : f32 to vector<8x1xf32>
      %365 = arith.divf %363, %364 : vector<8x1xf32>
      %366 = vector.broadcast %365 : vector<8x1xf32> to vector<8x32xf32>
      %367 = arith.subf %359, %366 : vector<8x32xf32>
      %368 = arith.mulf %367, %367 : vector<8x32xf32>
      %cst_208 = arith.constant dense<0.000000e+00> : vector<8xf32>
      %369 = vector.multi_reduction <add>, %368, %cst_208 [1] : vector<8x32xf32> to vector<8xf32>
      %370 = vector.shape_cast %369 : vector<8xf32> to vector<8x1xf32>
      %cst_209 = arith.constant 3.200000e+01 : f32
      %371 = vector.broadcast %cst_209 : f32 to vector<8x1xf32>
      %372 = arith.divf %370, %371 : vector<8x1xf32>
      %373 = vector.broadcast %365 : vector<8x1xf32> to vector<8x32xf32>
      %374 = arith.subf %359, %373 : vector<8x32xf32>
      %cst_210 = arith.constant 9.99999974E-6 : f32
      %375 = vector.broadcast %cst_210 : f32 to vector<8x1xf32>
      %376 = arith.addf %372, %375 : vector<8x1xf32>
      %377 = math.rsqrt %376 : vector<8x1xf32>
      %378 = vector.broadcast %377 : vector<8x1xf32> to vector<8x32xf32>
      %379 = arith.mulf %374, %378 : vector<8x32xf32>
      %380 = vector.broadcast %360 : vector<1x32xf32> to vector<8x32xf32>
      %381 = arith.mulf %379, %380 : vector<8x32xf32>
      %382 = vector.broadcast %361 : vector<1x32xf32> to vector<8x32xf32>
      %383 = arith.addf %381, %382 : vector<8x32xf32>
      %c0_211 = arith.constant 0 : index
      %c0_212 = arith.constant 0 : index
      %384 = vector.load %arg31[%c0_211, %c0_212] : memref<8x32xf32, #tpu.memory_space<vmem>>, vector<8x32xf32>
      tpu.vector_store %arg31[%c0_211, %c0_212], %383 {strides = array<i32>} : memref<8x32xf32, #tpu.memory_space<vmem>>, vector<8x32xf32>,
      %c0_213 = arith.constant 0 : index
      %c0_214 = arith.constant 0 : index
      %c0_215 = arith.constant 0 : index
      %385 = vector.load %arg30[%c0_213, %c0_214, %c0_215] : memref<1x8x32xf32, #tpu.memory_space<vmem>>, vector<1x8x32xf32>
      %386 = vector.shape_cast %385 : vector<1x8x32xf32> to vector<8x32xf32>
      %387 = vector.shape_cast %383 : vector<8x32xf32> to vector<1x8x32xf32>
      tpu.vector_store %arg30[%c0_213, %c0_214, %c0_215], %387 {strides = array<i32>} : memref<1x8x32xf32, #tpu.memory_space<vmem>>, vector<1x8x32xf32>,
    } else {
    }
    return
  }
  func.func @transform_0(%arg0: i32, %arg1: i32, %arg2: i32) -> (i32, i32, i32) {
    %c0_i32 = arith.constant 0 : i32
    %c0_i32_0 = arith.constant 0 : i32
    %c0_i32_1 = arith.constant 0 : i32
    return %arg0, %c0_i32, %c0_i32_0 : i32, i32, i32
  }
  func.func @transform_1(%arg0: i32, %arg1: i32, %arg2: i32) -> (i32, i32, i32) {
    %c0_i32 = arith.constant 0 : i32
    %c0_i32_0 = arith.constant 0 : i32
    %c0_i32_1 = arith.constant 0 : i32
    return %arg0, %c0_i32, %c0_i32_0 : i32, i32, i32
  }
  func.func @transform_2(%arg0: i32, %arg1: i32, %arg2: i32) -> (i32, i32, i32) {
    %c0_i32 = arith.constant 0 : i32
    %c0_i32_0 = arith.constant 0 : i32
    return %arg0, %arg2, %c0_i32 : i32, i32, i32
  }
  func.func @transform_3(%arg0: i32, %arg1: i32, %arg2: i32) -> (i32, i32, i32) {
    %c0_i32 = arith.constant 0 : i32
    %c0_i32_0 = arith.constant 0 : i32
    return %arg0, %arg2, %c0_i32 : i32, i32, i32
  }
  func.func @transform_4(%arg0: i32, %arg1: i32, %arg2: i32) -> (i32, i32, i32) {
    %c0_i32 = arith.constant 0 : i32
    %c0_i32_0 = arith.constant 0 : i32
    return %arg0, %c0_i32, %arg2 : i32, i32, i32
  }
  func.func @transform_5(%arg0: i32, %arg1: i32, %arg2: i32) -> (i32, i32) {
    %c0_i32 = arith.constant 0 : i32
    %c0_i32_0 = arith.constant 0 : i32
    %c0_i32_1 = arith.constant 0 : i32
    return %c0_i32, %c0_i32_0 : i32, i32
  }
  func.func @transform_6(%arg0: i32, %arg1: i32, %arg2: i32) -> (i32, i32) {
    %c0_i32 = arith.constant 0 : i32
    %c0_i32_0 = arith.constant 0 : i32
    %c0_i32_1 = arith.constant 0 : i32
    return %c0_i32, %c0_i32_0 : i32, i32
  }
  func.func @transform_7(%arg0: i32, %arg1: i32, %arg2: i32) -> (i32, i32) {
    %c0_i32 = arith.constant 0 : i32
    %c0_i32_0 = arith.constant 0 : i32
    %c0_i32_1 = arith.constant 0 : i32
    return %c0_i32, %c0_i32_0 : i32, i32
  }
  func.func @transform_8(%arg0: i32, %arg1: i32, %arg2: i32) -> (i32, i32) {
    %c0_i32 = arith.constant 0 : i32
    %c0_i32_0 = arith.constant 0 : i32
    %c0_i32_1 = arith.constant 0 : i32
    return %c0_i32, %c0_i32_0 : i32, i32
  }
  func.func @transform_9(%arg0: i32, %arg1: i32, %arg2: i32) -> (i32, i32) {
    %c0_i32 = arith.constant 0 : i32
    %c0_i32_0 = arith.constant 0 : i32
    %c0_i32_1 = arith.constant 0 : i32
    return %c0_i32, %c0_i32_0 : i32, i32
  }
  func.func @transform_10(%arg0: i32, %arg1: i32, %arg2: i32) -> (i32, i32) {
    %c0_i32 = arith.constant 0 : i32
    %c0_i32_0 = arith.constant 0 : i32
    %c0_i32_1 = arith.constant 0 : i32
    return %c0_i32, %c0_i32_0 : i32, i32
  }
  func.func @transform_11(%arg0: i32, %arg1: i32, %arg2: i32) -> (i32, i32) {
    %c0_i32 = arith.constant 0 : i32
    %c0_i32_0 = arith.constant 0 : i32
    %c0_i32_1 = arith.constant 0 : i32
    return %c0_i32, %c0_i32_0 : i32, i32
  }
  func.func @transform_12(%arg0: i32, %arg1: i32, %arg2: i32) -> (i32, i32) {
    %c0_i32 = arith.constant 0 : i32
    %c0_i32_0 = arith.constant 0 : i32
    %c0_i32_1 = arith.constant 0 : i32
    return %c0_i32, %c0_i32_0 : i32, i32
  }
  func.func @transform_13(%arg0: i32, %arg1: i32, %arg2: i32) -> (i32, i32) {
    %c0_i32 = arith.constant 0 : i32
    %c0_i32_0 = arith.constant 0 : i32
    %c0_i32_1 = arith.constant 0 : i32
    return %c0_i32, %c0_i32_0 : i32, i32
  }
  func.func @transform_14(%arg0: i32, %arg1: i32, %arg2: i32) -> (i32, i32) {
    %c0_i32 = arith.constant 0 : i32
    %c0_i32_0 = arith.constant 0 : i32
    %c0_i32_1 = arith.constant 0 : i32
    return %c0_i32, %c0_i32_0 : i32, i32
  }
  func.func @transform_15(%arg0: i32, %arg1: i32, %arg2: i32) -> (i32, i32) {
    %c0_i32 = arith.constant 0 : i32
    %c0_i32_0 = arith.constant 0 : i32
    %c0_i32_1 = arith.constant 0 : i32
    return %c0_i32, %c0_i32_0 : i32, i32
  }
  func.func @transform_16(%arg0: i32, %arg1: i32, %arg2: i32) -> (i32, i32) {
    %c0_i32 = arith.constant 0 : i32
    %c0_i32_0 = arith.constant 0 : i32
    %c0_i32_1 = arith.constant 0 : i32
    return %c0_i32, %c0_i32_0 : i32, i32
  }
  func.func @transform_17(%arg0: i32, %arg1: i32, %arg2: i32) -> (i32, i32) {
    %c0_i32 = arith.constant 0 : i32
    %c0_i32_0 = arith.constant 0 : i32
    %c0_i32_1 = arith.constant 0 : i32
    return %c0_i32, %c0_i32_0 : i32, i32
  }
  func.func @transform_18(%arg0: i32, %arg1: i32, %arg2: i32) -> (i32, i32) {
    %c0_i32 = arith.constant 0 : i32
    %c0_i32_0 = arith.constant 0 : i32
    %c0_i32_1 = arith.constant 0 : i32
    return %c0_i32, %c0_i32_0 : i32, i32
  }
  func.func @transform_19(%arg0: i32, %arg1: i32, %arg2: i32) -> (i32, i32) {
    %c0_i32 = arith.constant 0 : i32
    %c0_i32_0 = arith.constant 0 : i32
    %c0_i32_1 = arith.constant 0 : i32
    return %c0_i32, %c0_i32_0 : i32, i32
  }
  func.func @transform_20(%arg0: i32, %arg1: i32, %arg2: i32) -> (i32, i32) {
    %c0_i32 = arith.constant 0 : i32
    %c0_i32_0 = arith.constant 0 : i32
    %c0_i32_1 = arith.constant 0 : i32
    return %c0_i32, %c0_i32_0 : i32, i32
  }
  func.func @transform_21(%arg0: i32, %arg1: i32, %arg2: i32) -> (i32, i32) {
    %c0_i32 = arith.constant 0 : i32
    %c0_i32_0 = arith.constant 0 : i32
    %c0_i32_1 = arith.constant 0 : i32
    return %c0_i32, %c0_i32_0 : i32, i32
  }
  func.func @transform_22(%arg0: i32, %arg1: i32, %arg2: i32) -> (i32, i32) {
    %c0_i32 = arith.constant 0 : i32
    %c0_i32_0 = arith.constant 0 : i32
    %c0_i32_1 = arith.constant 0 : i32
    return %c0_i32, %c0_i32_0 : i32, i32
  }
  func.func @transform_23(%arg0: i32, %arg1: i32, %arg2: i32) -> (i32, i32) {
    %c0_i32 = arith.constant 0 : i32
    %c0_i32_0 = arith.constant 0 : i32
    %c0_i32_1 = arith.constant 0 : i32
    return %c0_i32, %c0_i32_0 : i32, i32
  }
  func.func @transform_24(%arg0: i32, %arg1: i32, %arg2: i32) -> (i32, i32) {
    %c0_i32 = arith.constant 0 : i32
    %c0_i32_0 = arith.constant 0 : i32
    %c0_i32_1 = arith.constant 0 : i32
    return %c0_i32, %c0_i32_0 : i32, i32
  }
  func.func @transform_25(%arg0: i32, %arg1: i32, %arg2: i32) -> (i32, i32) {
    %c0_i32 = arith.constant 0 : i32
    %c0_i32_0 = arith.constant 0 : i32
    %c0_i32_1 = arith.constant 0 : i32
    return %c0_i32, %c0_i32_0 : i32, i32
  }
  func.func @transform_26(%arg0: i32, %arg1: i32, %arg2: i32) -> (i32, i32) {
    %c0_i32 = arith.constant 0 : i32
    %c0_i32_0 = arith.constant 0 : i32
    %c0_i32_1 = arith.constant 0 : i32
    return %c0_i32, %c0_i32_0 : i32, i32
  }
  func.func @transform_27(%arg0: i32, %arg1: i32, %arg2: i32) -> (i32, i32, i32) {
    %c0_i32 = arith.constant 0 : i32
    %c0_i32_0 = arith.constant 0 : i32
    %c0_i32_1 = arith.constant 0 : i32
    return %arg0, %c0_i32, %c0_i32_0 : i32, i32, i32
  }
}

</mosaic_0001>

<bundles_post_ra>
// kernel: tpu_custom_call.1
= control target key start
LH: loop header
LB: loop body
LE: loop exit
PB: predicated region body
PF: predicated region fallthrough
CT: control target
= control target key end

     0   :  { %s5272_s0 = inlined_call_operand.vmem [shape: f32[2,8,32], index: 0, kind: input, shape index: {}]   ;;  %s5273_s1 = inlined_call_operand.vmem [shape: f32[2,8,32], index: 1, kind: input, shape index: {}]   ;;  %s5274_s2 = inlined_call_operand.vmem [shape: bf16[2,256,32], index: 2, kind: input, shape index: {}]   ;;  %s5275_s3 = inlined_call_operand.vmem [shape: bf16[2,256,32], index: 3, kind: input, shape index: {}]   ;;  %s5276_s4 = inlined_call_operand.vmem [shape: f32[2,8,256], index: 4, kind: input, shape index: {}]   ;;  %s5277_s5 = inlined_call_operand.vmem [shape: f32[32,32], index: 5, kind: input, shape index: {}]   ;;  %s5278_s6 = inlined_call_operand.vmem [shape: f32[1,32], index: 6, kind: input, shape index: {}]   ;;  %s5279_s7 = inlined_call_operand.vmem [shape: f32[32,32], index: 7, kind: input, shape index: {}]   ;;  %s5280_s8 = inlined_call_operand.vmem [shape: f32[1,32], index: 8, kind: input, shape index: {}]   ;;  %s5281_s9 = inlined_call_operand.vmem [shape: f32[1,32], index: 9, kind: input, shape index: {}]   ;;  %s5282_s10 = inlined_call_operand.vmem [shape: f32[1,32], index: 10, kind: input, shape index: {}]   ;;  %s5283_s11 = inlined_call_operand.vmem [shape: f32[32,32], index: 11, kind: input, shape index: {}]   ;;  %s5284_s12 = inlined_call_operand.vmem [shape: f32[1,32], index: 12, kind: input, shape index: {}]   ;;  %s5285_s13 = inlined_call_operand.vmem [shape: f32[32,32], index: 13, kind: input, shape index: {}]   ;;  %s5286_s14 = inlined_call_operand.vmem [shape: f32[1,32], index: 14, kind: input, shape index: {}]   ;;  %s5287_s15 = inlined_call_operand.vmem [shape: f32[32,32], index: 15, kind: input, shape index: {}]   ;;  %s5288_s16 = inlined_call_operand.vmem [shape: f32[1,32], index: 16, kind: input, shape index: {}]   ;;  %s5289_s17 = inlined_call_operand.vmem [shape: f32[32,32], index: 17, kind: input, shape index: {}]   ;;  %s5290_s18 = inlined_call_operand.vmem [shape: f32[1,32], index: 18, kind: input, shape index: {}]   ;;  %s5291_s19 = inlined_call_operand.vmem [shape: f32[1,32], index: 19, kind: input, shape index: {}]   ;;  %s5292_s20 = inlined_call_operand.vmem [shape: f32[1,32], index: 20, kind: input, shape index: {}]   ;;  %s5293_s21 = inlined_call_operand.vmem [shape: f32[32,64], index: 21, kind: input, shape index: {}]   ;;  %s5294_s22 = inlined_call_operand.vmem [shape: f32[1,64], index: 22, kind: input, shape index: {}]   ;;  %s5295_s23 = inlined_call_operand.vmem [shape: f32[64,32], index: 23, kind: input, shape index: {}]   ;;  %s5296_s24 = inlined_call_operand.vmem [shape: f32[1,32], index: 24, kind: input, shape index: {}]   ;;  %s5297_s25 = inlined_call_operand.vmem [shape: f32[1,32], index: 25, kind: input, shape index: {}]   ;;  %s5298_s26 = inlined_call_operand.vmem [shape: f32[1,32], index: 26, kind: input, shape index: {}]   ;;  %s5299_s27 = inlined_call_operand.hbm [shape: f32[2,8,32], index: 27, kind: output, shape index: {}]  }
   0x1   :  { %5320 = sst [smem:[#allocation24_spill]] %s5272_s0 }
   0x2   :  { %5321 = sst [smem:[#allocation25_spill]] %s5273_s1 }
   0x3   :  { %5322 = sst [smem:[#allocation26_spill]] %s5274_s2 }
   0x4   :  { %5323 = sst [smem:[#allocation27_spill]] %s5275_s3 }
   0x5   :  { %5324 = sst [smem:[#allocation28_spill]] %s5276_s4 }
   0x6   :  { %5325 = sst [smem:[#allocation29_spill]] %s5277_s5 }
   0x7   :  { %5326 = sst [smem:[#allocation30_spill]] %s5278_s6 }
   0x8   :  { %5327 = sst [smem:[#allocation31_spill]] %s5279_s7 }
   0x9   :  { %5328 = sst [smem:[#allocation32_spill]] %s5280_s8 }
   0xa   :  { %5329 = sst [smem:[#allocation33_spill]] %s5281_s9 }
   0xb   :  { %5330 = sst [smem:[#allocation34_spill]] %s5282_s10 }
   0xc   :  { %5331 = sst [smem:[#allocation35_spill]] %s5283_s11 }
   0xd   :  { %5332 = sst [smem:[#allocation36_spill]] %s5290_s18 }
   0xe   :  { %5333 = sst [smem:[#allocation37_spill]] %s5291_s19 }
   0xf   :  { %5334 = sst [smem:[#allocation38_spill]] %s5292_s20 }
  0x10   :  { %5335 = sst [smem:[#allocation39_spill]] %s5293_s21 }
  0x11   :  { %5336 = sst [smem:[#allocation40_spill]] %s5294_s22 }
  0x12   :  { %5337 = sst [smem:[#allocation41_spill]] %s5295_s23 }
  0x13   :  { %5338 = sst [smem:[#allocation42_spill]] %s5296_s24 }
  0x14   :  { %5339 = sst [smem:[#allocation43_spill]] %s5297_s25 }
  0x15   :  { %5340 = sst [smem:[#allocation44_spill]] %s5298_s26 }
  0x16   :  { %5341 = sst [smem:[#allocation45_spill]] %s5299_s27 }
  0x17   :  { %32 = vsyncpa [#allocation8], 0 }
  0x18   :  { %34 = vsyncpa [#allocation8 + $0x1], 0  ;;  %s4463_s7 = smov 0   ;;  %s4465_s4 = smov 0  }
  0x19   :  { %s4467_s8 = smov 0   ;;  %s4469_s30 = smov 0  }
  0x1a   :  { %s4471_s9 = smov 0   ;;  %s4473_s5 = smov 0  }
  0x1b   :  { %s4475_s28 = smov 0   ;;  %s4477_s0 = smov 0  }
  0x1c   :  { %s4479_s10 = smov 0   ;;  %s4481_s29 = smov 0  }
  0x1d LB: > { %5342 = sst [smem:[#allocation10_spill]] %s4264_s7  ;;  %s3460_s1 = sadd.s32 4294967295, %s4300_s29   ;;  %s4300_s29 = sphi %s4481_s29, %s40_s29   ;;  %s4296_s10 = sphi %s4479_s10, %s5396_s10   ;;  %s4292_s0 = sphi %s4477_s0, %s5395_s0   ;;  %s4288_s28 = sphi %s4475_s28, %s5394_s28   ;;  %s4284_s5 = sphi %s4473_s5, %s5393_s5   ;;  %s4280_s9 = sphi %s4471_s9, %s5392_s9   ;;  %s4276_s30 = sphi %s4469_s30, %s5391_s30   ;;  %s4272_s8 = sphi %s4467_s8, %s5390_s8   ;;  %s4268_s4 = sphi %s4465_s4, %s5389_s4   ;;  %s4264_s7 = sphi %s4463_s7, %s5388_s7  }
  0x1e   : > { %5343 = sst [smem:[#allocation11_spill]] %s4268_s4  ;;  %s3461_s6 = sadd.s32 4294967294, %s4300_s29  }
  0x1f   : > { %5344 = sst [smem:[#allocation12_spill]] %s4272_s8  ;;  %s52_s11 = sadd.s32 1, %s4288_s28 }
  0x20   : > { %5345 = sst [smem:[#allocation13_spill]] %s4284_s5  ;;  %p53_p0 = scmp.ge.s32.totalorder %s52_s11, 2 }
  0x21   : > { %5346 = sst [smem:[#allocation14_spill]] %s4288_s28  ;;  %s55_s2 = sadd.s32 1, %s4292_s0 }
  0x22   : > { %5347 = sst [smem:[#allocation15_spill]] %s4292_s0  ;;  %s59_s3 = sadd.s32 1, %s4296_s10 }
  0x23   : > { %5348 = sst [smem:[#allocation16_spill]] %s4296_s10  ;;  %p674_p1 = scmp.ne.s32.totalorder %s4272_s8, %s4268_s4 }
  0x24   : > { %5349 = sst [smem:[#allocation17_spill]] %s4300_s29  ;;  %s5398_s11 = smov (%p53_p0, %s52_s11), 0 }
  0x25   : > { %5350 = sst [smem:[#allocation18_spill]] %s5398_s11  ;;  %s5400_s2 = smov (!%p53_p0, %s55_s2), %s4292_s0 }
  0x26   : > { %p675_p2 = scmp.eq.s32.totalorder %s3460_s1, 7  ;;  %p680_p3 = scmp.ne.s32.totalorder %s4268_s4, %s4264_s7 }
  0x27   : > { %p57_p4 = scmp.ge.s32.totalorder %s5400_s2, 2  ;;  %p681_p5 = scmp.eq.s32.totalorder %s3461_s6, 7 }
  0x28   : > { %p4525_p6 = por %p675_p2, %p674_p1  ;;  %p3464_p7 = scmp.ge.s32.totalorder %s4300_s29, 1 }
  0x29   : > { %s5402_s2 = smov (%p57_p4, %s5400_s2), 0  ;;  %s5404_s3 = smov (!%p57_p4, %s59_s3), %s4296_s10 }
  0x2a   : > { %s5351_s27 = scalar_select %p4525_p6, 1, 0 }
  0x2b   : > { %5353 = sst [smem:[#allocation20_spill]] %s5402_s2  ;;  %p4533_p8 = por %p681_p5, %p680_p3 }
  0x2c   : > { %5352 = sst [smem:[#allocation19_spill]] %s5351_s27  ;;  %p816_p9 = scmp.lt.s32.totalorder %s4300_s29, 9 }
  0x2d   : > { %s5354_s28 = scalar_select %p4533_p8, 1, 0 }
  0x2e   : > { %p61_p10 = scmp.ge.s32.totalorder %s5404_s3, 2  ;;  %p817_p11 = pnand %p3464_p7, %p816_p9 }
  0x2f   : > { %5355 = sst [smem:[#allocation21_spill]] %s5354_s28  ;;  %s664_s6 = sadd.s32 1, %s4272_s8 }
  0x30   : > { %s5406_s3 = smov (%p61_p10, %s5404_s3), 0  ;;  %820 = sbr.rel (%p817_p11) target bundleno = 5873 (0x16f1), region = 128 }
  0x31   : > { %5356 = sst [smem:[#allocation22_spill]] %s5406_s3  ;;  %s661_s1 = ssub.s32 %s4296_s10, %s5406_s3 }
  0x32   : > { %p662_p12 = scmp.eq.s32.totalorder %s661_s1, 0  ;;  %s5316_s2 = sand.u32 (!%p817_p11), 1, %s4268_s4  }
  0x33   : > { %p917_p13 = scmp.lt.s32.totalorder (!%p817_p11), %s4284_s5, 1  ;;  %s4550_s0 = sshll.u32 (!%p817_p11), %s5316_s2, 3 }
  0x34   : > { %s4544_s11 = scalar_select %p662_p12, %s4272_s8, %s664_s6  }
  0x35   : > { %s3468_s28 = sshll.u32 (!%p817_p11), %s4276_s30, 4  ;;  %s5358_s8 = sld [smem:[#allocation24_spill]] (!%p817_p11) }
  0x36   : > { %5357 = sst [smem:[#allocation23_spill]] %s4544_s11  ;;  %p928_p0 = scmp.lt.s32.totalorder (!%p817_p11), %s3468_s28, 31 }
  0x37   : > { %s918_s1 = scalar_select %p917_p13, %s4284_s5, 1 }
  0x38   : > { %s5408_s28 = smov (!%p928_p0, %s3468_s28), 31  ;;  %s5359_s26 = sld [smem:[#allocation25_spill]] }
  0x39   : > { %s3466_s6 = sshll.u32 %s918_s1, 3  ;;  %s3469_s3 = sshll.u32 %s918_s1, 5 }
  0x3a   : > { %s931_s2 = sadd.s32 %s3469_s3, %s5408_s28  ;;  %p947_p1 = scmp.lt.s32.totalorder %s4276_s30, 1 }
  0x3b   : > { %s920_s7 = scalar_lea.vmem %s5358_s8, %s3466_s6  ;;  %s3470_s25 = sshll.u32 %s931_s2, 2 }
  0x3c   : > { %s3474_s24 = sshll.u32 %s918_s1, 1  ;;  %s5360_s5 = sld [smem:[#allocation26_spill]] }
  0x3d   : > { %s5361_s18 = sld [smem:[#allocation27_spill]]  ;;  %p954_p2 = scmp.eq.s32.totalorder %s4280_s9, 0 }
  0x3e   : > { %s4560_s4 = scalar_lea.vmem %s5359_s26, %s3466_s6  ;;  %p955_p3 = scmp.eq.s32.totalorder %s4276_s30, 0 }
  0x3f   : > { %s948_s8 = scalar_select %p947_p1, %s4276_s30, 1 }
  0x40   : > { %p956_p4 = pnand %p955_p3, %p954_p2  ;;  %s5362_s11 = sld [smem:[#allocation28_spill]] }
  0x41   : > { %s950_s27 = sadd.s32 %s3474_s24, %s948_s8  ;;  %s916_s3 = scalar_lea.vmem [#allocation7], %s4550_s0  ;;  %v960_v0 = vld [vmem:[%s920_s7] sm:$0xff] (!%p956_p4)  ;;  %vm961_vm0 = vcmask (!%p956_p4), 261120  }
  0x42   : > { %s4566_s19 = scalar_lea.vmem %s5360_s5, %s3470_s25  ;;  %s3475_s26 = sshll.u32 %s950_s27, 3  ;;  %962 = vst.msk [vmem:[#allocation2] sm:$0xff] (!%p956_p4), %vm961_vm0, %v960_v0 }
  0x43   : > { %s4571_s10 = scalar_lea.vmem %s5361_s18, %s3470_s25  ;;  %959 = sbr.rel (%p956_p4) target bundleno = 74 (0x4a), region = 132 }
  0x46   : > { %s4579_s2 = scalar_lea.vmem %s5362_s11, %s3475_s26 }
  0x4a PF: > { %p3476_p5 = scmp.ne.s32.totalorder %s4276_s30, 0 }
  0x4b   : > { %s5363_s21 = sld [smem:[#allocation29_spill]] (!%p3476_p5)  ;;  %vm966_vm1 = vcmask (!%p3476_p5), 7168   ;;  %v4302_v4 = vmov (!%p3476_p5), 0.0|0.0   ;;  %v4303_v7 = vmov (!%p3476_p5), -inf   ;;  %vm975_vm2 = vcmask (!%p3476_p5), 64512   ;;  %v980_v10 = vld [vmem:[#allocation2] sm:$0xff] (!%p3476_p5) }
  0x4c   : > { %965 = sbr.rel (%p3476_p5) target bundleno = 308 (0x134), region = 136  ;;  %3964 = vmatprep.subr.bf16.mxu0 (!%p3476_p5), %v4302_v4  ;;  %967 = vst.msk [vmem:[#allocation4] sm:$0xff] (!%p3476_p5), %vm966_vm1, %v4303_v7  ;;  %968 = vst.msk [vmem:[#allocation4 + $0x8] sm:$0xff] (!%p3476_p5), %vm966_vm1, %v4303_v7  ;;  %v4304_v8 = vmov (!%p3476_p5), 0.0   ;;  %vm4305_vm3 = vmmov (!%p3476_p5), 0   ;;  %v981_v11 = vld [vmem:[%s4560_s4] sm:$0xff] (!%p3476_p5) }
  0x4d   : > { %969 = vst.msk [vmem:[#allocation4 + $0x10] sm:$0xff] (!%p3476_p5), %vm966_vm1, %v4303_v7  ;;  %970 = vst.msk [vmem:[#allocation4 + $0x18] sm:$0xff] (!%p3476_p5), %vm966_vm1, %v4303_v7  ;;  %3676 = vmatprep.mubr.msk.f32.mxu0 (!%p3476_p5), %vm4305_vm3, %v4304_v8  ;;  %v982_v12 = vadd.f32 (!%p3476_p5), %v981_v11, %v980_v10  ;;  %vm994_vm4 = vcmask (!%p3476_p5), 261120   ;;  %s5364_s6 = sld [smem:[#allocation30_spill]] (!%p3476_p5) }
  0x4e   : > { %971 = vst.msk [vmem:[#allocation5] sm:$0xff] (!%p3476_p5), %vm966_vm1, %v4304_v8  ;;  %972 = vst.msk [vmem:[#allocation5 + $0x8] sm:$0xff] (!%p3476_p5), %vm966_vm1, %v4304_v8 }
  0x4f   : > { %973 = vst.msk [vmem:[#allocation5 + $0x10] sm:$0xff] (!%p3476_p5), %vm966_vm1, %v4304_v8  ;;  %974 = vst.msk [vmem:[#allocation5 + $0x18] sm:$0xff] (!%p3476_p5), %vm966_vm1, %v4304_v8 }
  0x50   : > { %976 = vst.msk [vmem:[#allocation6] sm:$0xff] (!%p3476_p5), %vm975_vm2, %v4304_v8  ;;  %977 = vst.msk [vmem:[#allocation6 + $0x8] sm:$0xff] (!%p3476_p5), %vm975_vm2, %v4304_v8 }
  0x51   : > { %v983_v1 = vld [vmem:[%s5363_s21] sm:$0xff] (!%p3476_p5)  ;;  %v984_v2 = vld [vmem:[%s5363_s21 + $0x8] sm:$0xff] (!%p3476_p5)  ;;  %v985_v3 = vld [vmem:[%s5363_s21 + $0x10] sm:$0xff] (!%p3476_p5)  ;;  %978 = vst.msk [vmem:[#allocation6 + $0x10] sm:$0xff] (!%p3476_p5), %vm975_vm2, %v4304_v8 }
  0x52   : > { %v3965_v5 = vpack.c.bf16 (!%p3476_p5), %v984_v2, %v983_v1  ;;  %v986_v6 = vld [vmem:[%s5363_s21 + $0x18] sm:$0xff] (!%p3476_p5)  ;;  %979 = vst.msk [vmem:[#allocation6 + $0x18] sm:$0xff] (!%p3476_p5), %vm975_vm2, %v4304_v8 }
  0x53   : > { %v3968_v9 = vpack.c.bf16 %v986_v6, %v985_v3  ;;  %v3477_v13 = vld [vmem:[%s5364_s6] ss:$0 sm:$0xff] }
  0x54   : > { %3966 = vmatpush3.bf16.msra.mxu0 %v3965_v5 }
  0x55   : > { %3967 = vmatprep.subr.bf16.mxu0 %v4302_v4 }
  0x58   : > { %3969 = vmatpush3.bf16.msra.mxu0 %v3968_v9 }
  0x5b   : > { %3677 = vmatmul.mubr.msk.f32.vlgmr.msra.gmra.mrb[0].mxu0 %vm994_vm4, %v982_v12 }
 0x12e   : > { %v1064_v14 = vpop.f32.mrb[0].mxu0 }
 0x12f   : > { %v1065_v15 = vadd.f32 %v3477_v13, %v1064_v14  ;;  %v3678_v16 = vpop.f32.mrb[1].mxu0 }
 0x131   : > { %v1068_v17 = vmul.f32 0.35355338, %v1065_v15 }
 0x133   : > { %1069 = vst.msk [vmem:[#allocation3] sm:$0xff] %vm994_vm4, %v1068_v17 }
 0x134 PF: > { %v4600_v18 = vld [vmem:[%s4566_s19] sm:$0xff]   ;;  %v4306_v19 = vmov 0.0   ;;  %vm1145_vm5 = vcmask 64512   ;;  %v4608_v21 = vld [vmem:[%s4566_s19 + $0x8] sm:$0xff]   ;;  %vm4307_vm6 = vmmov 0   ;;  %v4617_v23 = vld [vmem:[%s4566_s19 + $0x10] sm:$0xff]  }
 0x135   : > { %3679 = vmatprep.subr.bf16.mxu0 %v4306_v19  ;;  %3699 = vmatprep.subr.bf16.mxu1 %v4306_v19  ;;  %v1150_v20 = vsel %vm1145_vm5, %v4600_v18, 0  ;;  %v1153_v22 = vsel %vm1145_vm5, %v4608_v21, 0  ;;  %v1156_v24 = vsel %vm1145_vm5, %v4617_v23, 0  ;;  %v4624_v25 = vld [vmem:[%s4566_s19 + $0x18] sm:$0xff]   ;;  %v4630_v27 = vld [vmem:[%s4566_s19 + $0x20] sm:$0xff]   ;;  %v4636_v29 = vld [vmem:[%s4566_s19 + $0x28] sm:$0xff]  }
 0x136   : > { %3680 = vmatpush3.bf16.xpose.msra.mxu0 %v1150_v20  ;;  %3695 = vmatprep.mubr.msk.bf16.mxu0 %vm4307_vm6, %v4306_v19  ;;  %v1159_v26 = vsel %vm1145_vm5, %v4624_v25, 0  ;;  %v1162_v28 = vsel %vm1145_vm5, %v4630_v27, 0  ;;  %v1165_v30 = vsel %vm1145_vm5, %v4636_v29, 0  ;;  %v4642_v31 = vld [vmem:[%s4566_s19 + $0x30] sm:$0xff]   ;;  %v4648_v33 = vld [vmem:[%s4566_s19 + $0x38] sm:$0xff]   ;;  %v4660_v37 = vld [vmem:[%s4579_s2] sm:$0xff] }
 0x137   : > { %3681 = vmatprep.subr.bf16.mxu0 %v4306_v19  ;;  %3715 = vmatprep.mubr.msk.bf16.mxu1 %vm4307_vm6, %v4306_v19  ;;  %v1168_v32 = vsel %vm1145_vm5, %v4642_v31, 0  ;;  %v1171_v34 = vsel %vm1145_vm5, %v4648_v33, 0  ;;  %v4308_v43 = vmov 0   ;;  %v4664_v44 = vld [vmem:[%s4571_s10] sm:$0xff]   ;;  %s4309_s19 = smov 120   ;;  %v4670_v45 = vld [vmem:[%s4571_s10 + $0x8] sm:$0xff]  }
 0x138   : > { %4125 = vset.pattern.permute.xlu0 %v4308_v43  ;;  %1337 = vrot.lane.b32.xlu1 %v4600_v18, %s4309_s19  ;;  %v4677_v46 = vld [vmem:[%s4571_s10 + $0x10] sm:$0xff]   ;;  %v4684_v47 = vld [vmem:[%s4571_s10 + $0x18] sm:$0xff]   ;;  %v4691_v48 = vld [vmem:[%s4571_s10 + $0x20] sm:$0xff]   ;;  %vm1233_vm7 = vcmask 7168   ;;  %s4311_s8 = smov 104   ;;  %p3499_p7 = scmp.ne.s32.totalorder %s4276_s30, 1 }
 0x139   : > { %3700 = vmatpush3.bf16.msra.mxu1 %v4664_v44  ;;  %v4706_v49 = vld [vmem:[#allocation4] sm:$0xff]  ;;  %v4712_v52 = vld [vmem:[%s4571_s10 + $0x28] sm:$0xff]   ;;  %v4726_v55 = vld [vmem:[%s4571_s10 + $0x38] sm:$0xff]   ;;  %s5365_s26 = sld [smem:[#allocation31_spill]] (!%p3499_p7)  ;;  %vm4314_vm8 = vmmov (!%p3499_p7), 0   ;;  %s4316_s22 = smov (!%p3499_p7), 8  }
 0x13a   : > { %v1103_v35 = vld [vmem:[#allocation3] sm:$0xff]  ;;  %3701 = vmatprep.subr.bf16.mxu1 %v4306_v19  ;;  %v4722_v54 = vld [vmem:[%s4571_s10 + $0x30] sm:$0xff]   ;;  %s4310_s10 = smov 112   ;;  %s4317_s23 = smov (!%p3499_p7), 16   ;;  %vm1942_vm9 = vcmask (!%p3499_p7), 130048   ;;  %vm1944_vm10 = vcmask (!%p3499_p7), 195584  }
 0x13b   : > { %v4653_v36 = vpack.c.bf16 %v1103_v35, %v1103_v35  ;;  %s4318_s24 = smov (!%p3499_p7), 24   ;;  %vm1957_vm11 = vcmask (!%p3499_p7), 261120   ;;  %s5366_s9 = sld [smem:[#allocation32_spill]] (!%p3499_p7)  ;;  %vm3198_vm12 = vcmask (!%p3499_p7), 523264  }
 0x13c   : > { %1339 = vrot.lane.b32.xlu1 %v4608_v21, %s4309_s19  ;;  %s5367_s6 = sld [smem:[#allocation35_spill]] (!%p3499_p7)  ;;  %s5369_s30 = sld [smem:[#allocation34_spill]] (!%p3499_p7) }
 0x13d   : > { %3702 = vmatpush3.bf16.msra.mxu1 %v4670_v45  ;;  %s4319_s1 = smov (!%p3499_p7), 120   ;;  %s5373_s11 = sld [smem:[#allocation41_spill]] (!%p3499_p7) }
 0x13e   : > { %3682 = vmatpush3.bf16.xpose.msra.mxu0 %v1153_v22  ;;  %3703 = vmatprep.subr.bf16.mxu1 %v4306_v19  ;;  %s5375_s27 = sld [smem:[#allocation38_spill]] (!%p3499_p7)  ;;  %s5378_s5 = sld [smem:[#allocation43_spill]] (!%p3499_p7) }
 0x13f   : > { %3683 = vmatprep.subr.bf16.mxu0 %v4306_v19 }
 0x140   : > { %1341 = vrot.lane.b32.xlu1 %v4617_v23, %s4309_s19 }
 0x141   : > { %3704 = vmatpush3.bf16.msra.mxu1 %v4677_v46 }
 0x142   : > { %3705 = vmatprep.subr.bf16.mxu1 %v4306_v19 }
 0x144   : > { %1343 = vrot.lane.b32.xlu1 %v4624_v25, %s4309_s19 }
 0x145   : > { %3706 = vmatpush3.bf16.msra.mxu1 %v4684_v47 }
 0x146   : > { %3684 = vmatpush3.bf16.xpose.msra.mxu0 %v1156_v24  ;;  %3707 = vmatprep.subr.bf16.mxu1 %v4306_v19 }
 0x147   : > { %3685 = vmatprep.subr.bf16.mxu0 %v4306_v19 }
 0x148   : > { %1345 = vrot.lane.b32.xlu1 %v4630_v27, %s4309_s19 }
 0x149   : > { %3708 = vmatpush3.bf16.msra.mxu1 %v4691_v48 }
 0x14a   : > { %3709 = vmatprep.subr.bf16.mxu1 %v4306_v19 }
 0x14c   : > { %1347 = vrot.lane.b32.xlu1 %v4636_v29, %s4309_s19 }
 0x14d   : > { %3710 = vmatpush3.bf16.msra.mxu1 %v4712_v52 }
 0x14e   : > { %3686 = vmatpush3.bf16.xpose.msra.mxu0 %v1159_v26  ;;  %3711 = vmatprep.subr.bf16.mxu1 %v4306_v19 }
 0x14f   : > { %3687 = vmatprep.subr.bf16.mxu0 %v4306_v19 }
 0x150   : > { %1349 = vrot.lane.b32.xlu1 %v4642_v31, %s4309_s19 }
 0x151   : > { %3712 = vmatpush3.bf16.msra.mxu1 %v4722_v54 }
 0x152   : > { %3713 = vmatprep.subr.bf16.mxu1 %v4306_v19 }
 0x154   : > { %1351 = vrot.lane.b32.xlu1 %v4648_v33, %s4309_s19 }
 0x155   : > { %3714 = vmatpush3.bf16.msra.mxu1 %v4726_v55 }
 0x156   : > { %3688 = vmatpush3.bf16.xpose.msra.mxu0 %v1162_v28  ;;  %3719 = vmatprep.subr.bf16.mxu1 %v4306_v19 }
 0x157   : > { %3689 = vmatprep.subr.bf16.mxu0 %v4306_v19 }
 0x158   : > { %1335 = vrot.lane.b32.xlu1 %v4653_v36, %s4309_s19 }
 0x15e   : > { %3690 = vmatpush3.bf16.xpose.msra.mxu0 %v1165_v30 }
 0x15f   : > { %3691 = vmatprep.subr.bf16.mxu0 %v4306_v19 }
 0x166   : > { %3692 = vmatpush3.bf16.xpose.msra.mxu0 %v1168_v32 }
 0x167   : > { %3693 = vmatprep.subr.bf16.mxu0 %v4306_v19 }
 0x16e   : > { %3694 = vmatpush3.bf16.xpose.msra.mxu0 %v1171_v34 }
 0x16f   : > { %3739 = vmatprep.subr.bf16.mxu0 %v4306_v19 }
 0x175   : > { %3696 = vmatmul.mubr.msk.bf16.vlgmr.msra.gmra.mrb[0].mxu0 %vm1145_vm5, %v4653_v36 }
 0x176   : > { %3755 = vmatprep.mubr.msk.bf16.mxu0 %vm4307_vm6, %v4306_v19 }
 0x1aa   : > { %v1338_v59 = vpop.permute.xlu1 %1337 }
 0x1ab   : > { %v1357_v61 = vsel %vm1145_vm5, %v1338_v59, 0 }
 0x1ae   : > { %v1340_v63 = vpop.permute.xlu1 %1339 }
 0x1af   : > { %v1360_v0 = vsel %vm1145_vm5, %v1340_v63, 0 }
 0x1b2   : > { %v1342_v1 = vpop.permute.xlu1 %1341 }
 0x1b3   : > { %v1363_v2 = vsel %vm1145_vm5, %v1342_v1, 0 }
 0x1b6   : > { %v1344_v3 = vpop.permute.xlu1 %1343 }
 0x1b7   : > { %v1366_v4 = vsel %vm1145_vm5, %v1344_v3, 0 }
 0x1ba   : > { %v1346_v5 = vpop.permute.xlu1 %1345 }
 0x1bb   : > { %v1369_v6 = vsel %vm1145_vm5, %v1346_v5, 0 }
 0x1be   : > { %v1348_v7 = vpop.permute.xlu1 %1347 }
 0x1bf   : > { %v1372_v8 = vsel %vm1145_vm5, %v1348_v7, 0 }
 0x1c2   : > { %v1350_v9 = vpop.permute.xlu1 %1349 }
 0x1c3   : > { %v1375_v10 = vsel %vm1145_vm5, %v1350_v9, 0 }
 0x1c6   : > { %v1352_v11 = vpop.permute.xlu1 %1351 }
 0x1c7   : > { %v1378_v12 = vsel %vm1145_vm5, %v1352_v11, 0 }
 0x1ca   : > { %v1336_v13 = vpop.permute.xlu1 %1335 }
 0x248   : > { %v1207_v38 = vpop.f32.mrb[0].mxu0 }
 0x249   : > { %v1208_v39 = vadd.f32 %v1207_v38, %v4660_v37  ;;  %v3697_v40 = vpop.f32.mrb[1].mxu0  ;;  %v4779_v38 = vld [vmem:[#allocation4 + $0x8] sm:$0xff] }
 0x24a   : > { %v1210_v41 = vpop.f32.mrb[2].mxu0 }
 0x24b   : > { %1214 = vmax.xlane.f32.xlu0 %v1208_v39  ;;  %v3698_v42 = vpop.f32.mrb[3].mxu0 }
 0x2d8   : > { %v1215_v50 = vpop.xlane.xlu0 %1214 }
 0x2d9   : > { %v4709_v51 = vmax.f32 %v4706_v49, %v1215_v50 }
 0x2db   : > { %v1217_v53 = vsub.f32 %v4706_v49, %v4709_v51  ;;  %1333 = vst.msk [vmem:[#allocation4] sm:$0xff] %vm1233_vm7, %v4709_v51  ;;  %1222 = vperm.xlu0 %4125, %v4709_v51  }
 0x2df   : > { %1452 = vrot.lane.b32.xlu0 %v4664_v44, %s4309_s19 }
 0x2e3   : > { %1454 = vrot.lane.b32.xlu0 %v4670_v45, %s4309_s19 }
 0x2e7   : > { %1456 = vrot.lane.b32.xlu0 %v4677_v46, %s4309_s19 }
 0x2eb   : > { %1458 = vrot.lane.b32.xlu0 %v4684_v47, %s4309_s19 }
 0x35a   : > { %v1223_v56 = vpop.permute.xlu0 %1222 }
 0x35b   : > { %v1225_v57 = vsub.f32 %v1208_v39, %v1223_v56 }
 0x35d   : > { %v1226_v58 = vmul.f32 1.442695, %v1225_v57 }
 0x35e   : > { %v1453_v30 = vpop.permute.xlu0 %1452 }
 0x35f   : > { %4142 = vpow2.f32 %v1226_v58  ;;  %3740 = vmatpush3.bf16.msra.mxu0 %v1453_v30 }
 0x360   : > { %3741 = vmatprep.subr.bf16.mxu0 %v4306_v19 }
 0x362   : > { %v1455_v32 = vpop.permute.xlu0 %1454 }
 0x363   : > { %3742 = vmatpush3.bf16.msra.mxu0 %v1455_v32 }
 0x364   : > { %3743 = vmatprep.subr.bf16.mxu0 %v4306_v19 }
 0x366   : > { %v1457_v34 = vpop.permute.xlu0 %1456 }
 0x367   : > { %3744 = vmatpush3.bf16.msra.mxu0 %v1457_v34 }
 0x368   : > { %3745 = vmatprep.subr.bf16.mxu0 %v4306_v19 }
 0x369   : > { %v4739_v60 = vpop.eup %4142 }
 0x36a   : > { %v1242_v62 = vpack.c.bf16 %v4739_v60, %v4739_v60  ;;  %v1459_v35 = vpop.permute.xlu0 %1458 }
 0x36b   : > { %3746 = vmatpush3.bf16.msra.mxu0 %v1459_v35 }
 0x36c   : > { %3716 = vmatmul.mubr.bf16.vlgmr.msra.gmra.mrb[0].mxu1 %v1242_v62  ;;  %3747 = vmatprep.subr.bf16.mxu0 %v4306_v19 }
 0x36d   : > { %3720 = vmatpush3.bf16.xpose.msra.mxu1 %v1357_v61  ;;  %3735 = vmatprep.mubr.msk.bf16.mxu1 %vm4307_vm6, %v4306_v19 }
 0x36e   : > { %3721 = vmatprep.subr.bf16.mxu1 %v4306_v19 }
 0x375   : > { %3722 = vmatpush3.bf16.xpose.msra.mxu1 %v1360_v0 }
 0x376   : > { %3723 = vmatprep.subr.bf16.mxu1 %v4306_v19 }
 0x37d   : > { %3724 = vmatpush3.bf16.xpose.msra.mxu1 %v1363_v2 }
 0x37e   : > { %3725 = vmatprep.subr.bf16.mxu1 %v4306_v19 }
 0x385   : > { %3726 = vmatpush3.bf16.xpose.msra.mxu1 %v1366_v4 }
 0x386   : > { %3727 = vmatprep.subr.bf16.mxu1 %v4306_v19 }
 0x38d   : > { %3728 = vmatpush3.bf16.xpose.msra.mxu1 %v1369_v6 }
 0x38e   : > { %3729 = vmatprep.subr.bf16.mxu1 %v4306_v19 }
 0x395   : > { %3730 = vmatpush3.bf16.xpose.msra.mxu1 %v1372_v8 }
 0x396   : > { %3731 = vmatprep.subr.bf16.mxu1 %v4306_v19 }
 0x39d   : > { %3732 = vmatpush3.bf16.xpose.msra.mxu1 %v1375_v10 }
 0x39e   : > { %3733 = vmatprep.subr.bf16.mxu1 %v4306_v19 }
 0x3a5   : > { %3734 = vmatpush3.bf16.xpose.msra.mxu1 %v1378_v12 }
 0x3a6   : > { %3779 = vmatprep.subr.bf16.mxu1 %v4306_v19 }
 0x3ac   : > { %3736 = vmatmul.mubr.msk.bf16.vlgmr.msra.gmra.mrb[4].mxu1 %vm1145_vm5, %v1336_v13 }
 0x3ad   : > { %3795 = vmatprep.mubr.msk.bf16.mxu1 %vm4307_vm6, %v4306_v19 }
 0x43f   : > { %v4764_v14 = vpop.f32.mrb[0].mxu1 }
 0x440   : > { %v3717_v15 = vpop.f32.mrb[1].mxu1 }
 0x441   : > { %v1328_v16 = vpop.f32.mrb[2].mxu1 }
 0x442   : > { %v3718_v17 = vpop.f32.mrb[3].mxu1 }
 0x47f   : > { %v1414_v20 = vpop.f32.mrb[4].mxu1 }
 0x480   : > { %v1415_v22 = vadd.f32 %v1414_v20, %v4660_v37  ;;  %v3737_v24 = vpop.f32.mrb[5].mxu1 }
 0x481   : > { %v1417_v26 = vpop.f32.mrb[6].mxu1 }
 0x482   : > { %1422 = vmax.xlane.f32.xlu1 %v1415_v22  ;;  %v3738_v28 = vpop.f32.mrb[7].mxu1 }
 0x493   : > { %1464 = vrot.lane.b32.xlu1 %v4722_v54, %s4309_s19 }
 0x497   : > { %1527 = vrot.lane.b32.xlu1 %v4624_v25, %s4310_s10 }
 0x49b   : > { %1531 = vrot.lane.b32.xlu1 %v4636_v29, %s4310_s10 }
 0x49f   : > { %1535 = vrot.lane.b32.xlu1 %v4648_v33, %s4310_s10 }
 0x50f   : > { %v1423_v39 = vpop.xlane.xlu1 %1422 }
 0x510   : > { %v4782_v40 = vmax.f32 %v4779_v38, %v1423_v39 }
 0x512   : > { %v1425_v41 = vsub.f32 %v4779_v38, %v4782_v40  ;;  %1518 = vst.msk [vmem:[#allocation4 + $0x8] sm:$0xff] %vm1233_vm7, %v4782_v40  ;;  %1430 = vperm.xlu0 %4125, %v4782_v40  }
 0x513   : > { %v1465_v58 = vpop.permute.xlu1 %1464 }
 0x516   : > { %1460 = vrot.lane.b32.xlu0 %v4691_v48, %s4309_s19 }
 0x517   : > { %v1528_v5 = vpop.permute.xlu1 %1527 }
 0x518   : > { %v1550_v6 = vsel %vm1145_vm5, %v1528_v5, 0 }
 0x51a   : > { %1462 = vrot.lane.b32.xlu0 %v4712_v52, %s4309_s19 }
 0x51b   : > { %v1532_v9 = vpop.permute.xlu1 %1531 }
 0x51c   : > { %v1556_v10 = vsel %vm1145_vm5, %v1532_v9, 0 }
 0x51e   : > { %1466 = vrot.lane.b32.xlu0 %v4726_v55, %s4309_s19  ;;  %s5368_s19 = sld [smem:[#allocation33_spill]] (!%p3499_p7) }
 0x51f   : > { %v1536_v13 = vpop.permute.xlu1 %1535 }
 0x520   : > { %v1562_v15 = vsel %vm1145_vm5, %v1536_v13, 0 }
 0x522   : > { %1521 = vrot.lane.b32.xlu0 %v4600_v18, %s4310_s10 }
 0x526   : > { %1523 = vrot.lane.b32.xlu0 %v4608_v21, %s4310_s10 }
 0x52a   : > { %1525 = vrot.lane.b32.xlu0 %v4617_v23, %s4310_s10 }
 0x52e   : > { %1529 = vrot.lane.b32.xlu0 %v4630_v27, %s4310_s10 }
 0x532   : > { %1533 = vrot.lane.b32.xlu0 %v4642_v31, %s4310_s10 }
 0x536   : > { %1519 = vrot.lane.b32.xlu0 %v4653_v36, %s4310_s10 }
 0x53a   : > { %1636 = vrot.lane.b32.xlu0 %v4664_v44, %s4310_s10 }
 0x53e   : > { %1638 = vrot.lane.b32.xlu0 %v4670_v45, %s4310_s10 }
 0x542   : > { %1640 = vrot.lane.b32.xlu0 %v4677_v46, %s4310_s10 }
 0x546   : > { %1642 = vrot.lane.b32.xlu0 %v4684_v47, %s4310_s10 }
 0x591   : > { %v1431_v42 = vpop.permute.xlu0 %1430 }
 0x592   : > { %v1433_v43 = vsub.f32 %v1415_v22, %v1431_v42 }
 0x594   : > { %v1434_v50 = vmul.f32 1.442695, %v1433_v43 }
 0x595   : > { %v1461_v56 = vpop.permute.xlu0 %1460 }
 0x596   : > { %4144 = vpow2.f32 %v1434_v50  ;;  %3748 = vmatpush3.bf16.msra.mxu0 %v1461_v56 }
 0x597   : > { %3749 = vmatprep.subr.bf16.mxu0 %v4306_v19 }
 0x599   : > { %v1463_v57 = vpop.permute.xlu0 %1462 }
 0x59a   : > { %3750 = vmatpush3.bf16.msra.mxu0 %v1463_v57 }
 0x59b   : > { %3751 = vmatprep.subr.bf16.mxu0 %v4306_v19 }
 0x59d   : > { %v1467_v59 = vpop.permute.xlu0 %1466 }
 0x59e   : > { %3752 = vmatpush3.bf16.msra.mxu0 %v1465_v58 }
 0x59f   : > { %3753 = vmatprep.subr.bf16.mxu0 %v4306_v19 }
 0x5a0   : > { %v4818_v61 = vpop.eup %4144 }
 0x5a1   : > { %v1451_v62 = vpack.c.bf16 %v4818_v61, %v4818_v61  ;;  %v1522_v63 = vpop.permute.xlu0 %1521 }
 0x5a2   : > { %3754 = vmatpush3.bf16.msra.mxu0 %v1467_v59  ;;  %v1541_v0 = vsel %vm1145_vm5, %v1522_v63, 0 }
 0x5a3   : > { %3759 = vmatprep.subr.bf16.mxu0 %v4306_v19 }
 0x5a5   : > { %3756 = vmatmul.mubr.bf16.vlgmr.msra.gmra.mrb[4].mxu0 %v1451_v62  ;;  %v1524_v1 = vpop.permute.xlu0 %1523 }
 0x5a6   : > { %3775 = vmatprep.mubr.msk.bf16.mxu0 %vm4307_vm6, %v4306_v19  ;;  %v1544_v2 = vsel %vm1145_vm5, %v1524_v1, 0 }
 0x5a9   : > { %v1526_v3 = vpop.permute.xlu0 %1525 }
 0x5aa   : > { %v1547_v4 = vsel %vm1145_vm5, %v1526_v3, 0 }
 0x5ab   : > { %3760 = vmatpush3.bf16.xpose.msra.mxu0 %v1541_v0 }
 0x5ac   : > { %3761 = vmatprep.subr.bf16.mxu0 %v4306_v19 }
 0x5ad   : > { %v1530_v7 = vpop.permute.xlu0 %1529 }
 0x5ae   : > { %v1553_v8 = vsel %vm1145_vm5, %v1530_v7, 0 }
 0x5b1   : > { %v1534_v11 = vpop.permute.xlu0 %1533 }
 0x5b2   : > { %v1559_v12 = vsel %vm1145_vm5, %v1534_v11, 0 }
 0x5b3   : > { %3762 = vmatpush3.bf16.xpose.msra.mxu0 %v1544_v2 }
 0x5b4   : > { %3763 = vmatprep.subr.bf16.mxu0 %v4306_v19 }
 0x5b5   : > { %v1520_v16 = vpop.permute.xlu0 %1519 }
 0x5b9   : > { %v1637_v35 = vpop.permute.xlu0 %1636 }
 0x5ba   : > { %3780 = vmatpush3.bf16.msra.mxu1 %v1637_v35 }
 0x5bb   : > { %3764 = vmatpush3.bf16.xpose.msra.mxu0 %v1547_v4  ;;  %3781 = vmatprep.subr.bf16.mxu1 %v4306_v19 }
 0x5bc   : > { %3765 = vmatprep.subr.bf16.mxu0 %v4306_v19 }
 0x5bd   : > { %v1639_v39 = vpop.permute.xlu0 %1638 }
 0x5be   : > { %3782 = vmatpush3.bf16.msra.mxu1 %v1639_v39 }
 0x5bf   : > { %3783 = vmatprep.subr.bf16.mxu1 %v4306_v19 }
 0x5c1   : > { %v1641_v42 = vpop.permute.xlu0 %1640 }
 0x5c2   : > { %3784 = vmatpush3.bf16.msra.mxu1 %v1641_v42  ;;  %v1228_v42 = vld [vmem:[#allocation5] sm:$0xff] }
 0x5c3   : > { %3766 = vmatpush3.bf16.xpose.msra.mxu0 %v1550_v6  ;;  %3785 = vmatprep.subr.bf16.mxu1 %v4306_v19 }
 0x5c4   : > { %3767 = vmatprep.subr.bf16.mxu0 %v4306_v19 }
 0x5c5   : > { %v1643_v43 = vpop.permute.xlu0 %1642 }
 0x5c6   : > { %3786 = vmatpush3.bf16.msra.mxu1 %v1643_v43 }
 0x5c7   : > { %3787 = vmatprep.subr.bf16.mxu1 %v4306_v19 }
 0x5cb   : > { %3768 = vmatpush3.bf16.xpose.msra.mxu0 %v1553_v8 }
 0x5cc   : > { %3769 = vmatprep.subr.bf16.mxu0 %v4306_v19 }
 0x5d3   : > { %3770 = vmatpush3.bf16.xpose.msra.mxu0 %v1556_v10 }
 0x5d4   : > { %3771 = vmatprep.subr.bf16.mxu0 %v4306_v19 }
 0x5db   : > { %3772 = vmatpush3.bf16.xpose.msra.mxu0 %v1559_v12 }
 0x5dc   : > { %3773 = vmatprep.subr.bf16.mxu0 %v4306_v19 }
 0x5e3   : > { %3774 = vmatpush3.bf16.xpose.msra.mxu0 %v1562_v15 }
 0x5e4   : > { %3819 = vmatprep.subr.bf16.mxu0 %v4306_v19 }
 0x5ea   : > { %3776 = vmatmul.mubr.msk.bf16.vlgmr.msra.gmra.mrb[8].mxu0 %vm1145_vm5, %v1520_v16 }
 0x5eb   : > { %3835 = vmatprep.mubr.msk.bf16.mxu0 %vm4307_vm6, %v4306_v19 }
 0x678   : > { %v4844_v17 = vpop.f32.mrb[4].mxu0 }
 0x679   : > { %v3757_v20 = vpop.f32.mrb[5].mxu0 }
 0x67a   : > { %v1513_v22 = vpop.f32.mrb[6].mxu0 }
 0x67b   : > { %v3758_v24 = vpop.f32.mrb[7].mxu0 }
 0x6bd   : > { %v1598_v26 = vpop.f32.mrb[8].mxu0 }
 0x6be   : > { %v1599_v28 = vadd.f32 %v1598_v26, %v4660_v37  ;;  %v3777_v30 = vpop.f32.mrb[9].mxu0 }
 0x6bf   : > { %v1601_v32 = vpop.f32.mrb[10].mxu0 }
 0x6c0   : > { %1606 = vmax.xlane.f32.xlu1 %v1599_v28  ;;  %v3778_v34 = vpop.f32.mrb[11].mxu0 }
 0x6c1   : > { %v1789_v34 = vld [vmem:[#allocation4 + $0x18] sm:$0xff] }
 0x6d1   : > { %1705 = vrot.lane.b32.xlu1 %v4600_v18, %s4311_s8  ;;  %v4857_v18 = vld [vmem:[#allocation4 + $0x10] sm:$0xff] }
 0x6d5   : > { %1715 = vrot.lane.b32.xlu1 %v4636_v29, %s4311_s8 }
 0x6d9   : > { %1719 = vrot.lane.b32.xlu1 %v4648_v33, %s4311_s8 }
 0x74d   : > { %v1607_v29 = vpop.xlane.xlu1 %1606 }
 0x74e   : > { %v4860_v33 = vmax.f32 %v4857_v18, %v1607_v29  ;;  %v1437_v29 = vld [vmem:[#allocation5 + $0x8] sm:$0xff] }
 0x750   : > { %v1609_v50 = vsub.f32 %v4857_v18, %v4860_v33  ;;  %1702 = vst.msk [vmem:[#allocation4 + $0x10] sm:$0xff] %vm1233_vm7, %v4860_v33  ;;  %1614 = vperm.xlu0 %4125, %v4860_v33   ;;  %v1621_v33 = vld [vmem:[#allocation5 + $0x10] sm:$0xff] }
 0x754   : > { %1644 = vrot.lane.b32.xlu0 %v4691_v48, %s4310_s10 }
 0x758   : > { %1646 = vrot.lane.b32.xlu0 %v4712_v52, %s4310_s10 }
 0x75c   : > { %1648 = vrot.lane.b32.xlu0 %v4722_v54, %s4310_s10 }
 0x760   : > { %1650 = vrot.lane.b32.xlu0 %v4726_v55, %s4310_s10  ;;  %s5374_s10 = sld [smem:[#allocation37_spill]] (!%p3499_p7) }
 0x764   : > { %1707 = vrot.lane.b32.xlu0 %v4608_v21, %s4311_s8 }
 0x768   : > { %1709 = vrot.lane.b32.xlu0 %v4617_v23, %s4311_s8 }
 0x76c   : > { %1711 = vrot.lane.b32.xlu0 %v4624_v25, %s4311_s8 }
 0x770   : > { %1713 = vrot.lane.b32.xlu0 %v4630_v27, %s4311_s8 }
 0x774   : > { %1717 = vrot.lane.b32.xlu0 %v4642_v31, %s4311_s8 }
 0x778   : > { %1703 = vrot.lane.b32.xlu0 %v4653_v36, %s4311_s8 }
 0x77c   : > { %1820 = vrot.lane.b32.xlu0 %v4664_v44, %s4311_s8 }
 0x780   : > { %1822 = vrot.lane.b32.xlu0 %v4670_v45, %s4311_s8  ;;  %v1706_v45 = vpop.permute.xlu1 %1705 }
 0x781   : > { %v1725_v58 = vsel %vm1145_vm5, %v1706_v45, 0 }
 0x784   : > { %v1716_v5 = vpop.permute.xlu1 %1715 }
 0x785   : > { %v1740_v6 = vsel %vm1145_vm5, %v1716_v5, 0 }
 0x788   : > { %v1720_v9 = vpop.permute.xlu1 %1719 }
 0x789   : > { %v1746_v10 = vsel %vm1145_vm5, %v1720_v9, 0 }
 0x7cf   : > { %v1615_v21 = vpop.permute.xlu0 %1614 }
 0x7d0   : > { %v1617_v23 = vsub.f32 %v1599_v28, %v1615_v21 }
 0x7d2   : > { %v1618_v56 = vmul.f32 1.442695, %v1617_v23 }
 0x7d3   : > { %v1645_v57 = vpop.permute.xlu0 %1644 }
 0x7d4   : > { %4146 = vpow2.f32 %v1618_v56  ;;  %3788 = vmatpush3.bf16.msra.mxu1 %v1645_v57 }
 0x7d5   : > { %3789 = vmatprep.subr.bf16.mxu1 %v4306_v19 }
 0x7d7   : > { %v1647_v25 = vpop.permute.xlu0 %1646 }
 0x7d8   : > { %3790 = vmatpush3.bf16.msra.mxu1 %v1647_v25 }
 0x7d9   : > { %3791 = vmatprep.subr.bf16.mxu1 %v4306_v19 }
 0x7db   : > { %v1649_v27 = vpop.permute.xlu0 %1648 }
 0x7dc   : > { %3792 = vmatpush3.bf16.msra.mxu1 %v1649_v27 }
 0x7dd   : > { %3793 = vmatprep.subr.bf16.mxu1 %v4306_v19 }
 0x7de   : > { %v4147_v31 = vpop.eup %4146 }
 0x7df   : > { %v1651_v36 = vpop.permute.xlu0 %1650  ;;  %v1635_v44 = vpack.c.bf16 %v4147_v31, %v4147_v31 }
 0x7e0   : > { %3794 = vmatpush3.bf16.msra.mxu1 %v1651_v36 }
 0x7e1   : > { %3799 = vmatprep.subr.bf16.mxu1 %v4306_v19 }
 0x7e3   : > { %3796 = vmatmul.mubr.bf16.vlgmr.msra.gmra.mrb[8].mxu1 %v1635_v44  ;;  %v1708_v59 = vpop.permute.xlu0 %1707 }
 0x7e4   : > { %3815 = vmatprep.mubr.msk.bf16.mxu1 %vm4307_vm6, %v4306_v19  ;;  %v1728_v62 = vsel %vm1145_vm5, %v1708_v59, 0  ;;  %v1235_v59 = vld [vmem:[#allocation6] sm:$0xff] }
 0x7e7   : > { %v1710_v63 = vpop.permute.xlu0 %1709 }
 0x7e8   : > { %v1731_v0 = vsel %vm1145_vm5, %v1710_v63, 0 }
 0x7e9   : > { %3800 = vmatpush3.bf16.xpose.msra.mxu1 %v1725_v58 }
 0x7ea   : > { %3801 = vmatprep.subr.bf16.mxu1 %v4306_v19 }
 0x7eb   : > { %v1712_v1 = vpop.permute.xlu0 %1711 }
 0x7ec   : > { %v1734_v2 = vsel %vm1145_vm5, %v1712_v1, 0 }
 0x7ef   : > { %v1714_v3 = vpop.permute.xlu0 %1713 }
 0x7f0   : > { %v1737_v4 = vsel %vm1145_vm5, %v1714_v3, 0 }
 0x7f1   : > { %3802 = vmatpush3.bf16.xpose.msra.mxu1 %v1728_v62 }
 0x7f2   : > { %3803 = vmatprep.subr.bf16.mxu1 %v4306_v19 }
 0x7f3   : > { %v1718_v7 = vpop.permute.xlu0 %1717 }
 0x7f4   : > { %v1743_v8 = vsel %vm1145_vm5, %v1718_v7, 0 }
 0x7f7   : > { %v1704_v11 = vpop.permute.xlu0 %1703 }
 0x7f9   : > { %3804 = vmatpush3.bf16.xpose.msra.mxu1 %v1731_v0  ;;  %v1444_v0 = vld [vmem:[#allocation6 + $0x8] sm:$0xff] }
 0x7fa   : > { %3805 = vmatprep.subr.bf16.mxu1 %v4306_v19 }
 0x7fb   : > { %v1821_v30 = vpop.permute.xlu0 %1820 }
 0x7fc   : > { %3820 = vmatpush3.bf16.msra.mxu0 %v1821_v30  ;;  %v4312_v30 = vmov (!%p3499_p7), 0  }
 0x7fd   : > { %3821 = vmatprep.subr.bf16.mxu0 %v4306_v19  ;;  %4159 = vset.pattern.permute.xlu1 (!%p3499_p7), %v4312_v30 }
 0x7ff   : > { %v1823_v32 = vpop.permute.xlu0 %1822 }
 0x800   : > { %3822 = vmatpush3.bf16.msra.mxu0 %v1823_v32 }
 0x801   : > { %3806 = vmatpush3.bf16.xpose.msra.mxu1 %v1734_v2  ;;  %3823 = vmatprep.subr.bf16.mxu0 %v4306_v19 }
 0x802   : > { %3807 = vmatprep.subr.bf16.mxu1 %v4306_v19 }
 0x809   : > { %3808 = vmatpush3.bf16.xpose.msra.mxu1 %v1737_v4  ;;  %v1628_v4 = vld [vmem:[#allocation6 + $0x10] sm:$0xff] }
 0x80a   : > { %3809 = vmatprep.subr.bf16.mxu1 %v4306_v19 }
 0x811   : > { %3810 = vmatpush3.bf16.xpose.msra.mxu1 %v1740_v6 }
 0x812   : > { %3811 = vmatprep.subr.bf16.mxu1 %v4306_v19 }
 0x819   : > { %3812 = vmatpush3.bf16.xpose.msra.mxu1 %v1743_v8  ;;  %v1805_v8 = vld [vmem:[#allocation5 + $0x18] sm:$0xff] }
 0x81a   : > { %3813 = vmatprep.subr.bf16.mxu1 %v4306_v19 }
 0x821   : > { %3814 = vmatpush3.bf16.xpose.msra.mxu1 %v1746_v10 }
 0x828   : > { %3816 = vmatmul.mubr.msk.bf16.vlgmr.msra.gmra.mrb[12].mxu1 %vm1145_vm5, %v1704_v11 }
 0x8b6   : > { %v4913_v12 = vpop.f32.mrb[8].mxu1 }
 0x8b7   : > { %v3797_v13 = vpop.f32.mrb[9].mxu1 }
 0x8b8   : > { %v1697_v15 = vpop.f32.mrb[10].mxu1 }
 0x8b9   : > { %v3798_v16 = vpop.f32.mrb[11].mxu1 }
 0x8fb   : > { %v1782_v20 = vpop.f32.mrb[12].mxu1 }
 0x8fc   : > { %v1783_v22 = vadd.f32 %v1782_v20, %v4660_v37  ;;  %v3817_v24 = vpop.f32.mrb[13].mxu1  ;;  %v1218_v37 = vmul.f32 1.442695, %v1217_v53 }
 0x8fd   : > { %v1785_v26 = vpop.f32.mrb[14].mxu1 }
 0x8fe   : > { %1790 = vmax.xlane.f32.xlu1 %v1783_v22  ;;  %v3818_v28 = vpop.f32.mrb[15].mxu1  ;;  %4148 = vpow2.f32 %v1218_v37 }
 0x902   : > { %1230 = vadd.xlane.f32.xlu1 %v4739_v60  ;;  %v1426_v60 = vmul.f32 1.442695, %v1425_v41 }
 0x904   : > { %4150 = vpow2.f32 %v1426_v60 }
 0x906   : > { %1439 = vadd.xlane.f32.xlu1 %v4818_v61  ;;  %v1610_v61 = vmul.f32 1.442695, %v1609_v50 }
 0x908   : > { %4152 = vpow2.f32 %v1610_v61  ;;  %v4149_v35 = vpop.eup %4148 }
 0x909   : > { %v1229_v49 = vmul.f32 %v4149_v35, %v1228_v42  ;;  %v4313_v42 = vmov (!%p3499_p7), 0.0|0.0  }
 0x90a   : > { %1623 = vadd.xlane.f32.xlu1 %v4147_v31  ;;  %3970 = vmatprep.subr.bf16.mxu1 (!%p3499_p7), %v4313_v42 }
 0x90e   : > { %v4151_v51 = vpop.eup %4150 }
 0x90f   : > { %v1438_v40 = vmul.f32 %v4151_v51, %v1437_v29  ;;  %v4315_v29 = vmov (!%p3499_p7), 0.0  }
 0x910   : > { %3847 = vmatprep.mubr.msk.f32.mxu1 (!%p3499_p7), %vm4314_vm8, %v4315_v29 }
 0x912   : > { %v4153_v41 = vpop.eup %4152 }
 0x913   : > { %v1622_v21 = vmul.f32 %v4153_v41, %v1621_v33 }
 0x98b   : > { %v1791_v39 = vpop.xlane.xlu1 %1790 }
 0x98c   : > { %v1792_v43 = vmax.f32 %v1789_v34, %v1791_v39  ;;  %v1947_v39 = vld [vmem:[%s5365_s26 + $0x8] sm:$0xff] (!%p3499_p7) }
 0x98e   : > { %1886 = vst.msk [vmem:[#allocation4 + $0x18] sm:$0xff] %vm1233_vm7, %v1792_v43  ;;  %1798 = vperm.xlu0 %4125, %v1792_v43  }
 0x98f   : > { %v1231_v53 = vpop.xlane.xlu1 %1230 }
 0x990   : > { %v1232_v38 = vadd.f32 %v1231_v53, %v1229_v49  ;;  %v1948_v49 = vld [vmem:[%s5365_s26 + $0x10] sm:$0xff] (!%p3499_p7) }
 0x992   : > { %1234 = vst.msk [vmem:[#allocation5] sm:$0xff] %vm1233_vm7, %v1232_v38  ;;  %1824 = vrot.lane.b32.xlu0 %v4677_v46, %s4311_s8  ;;  %v1793_v46 = vsub.f32 %v1789_v34, %v1792_v43 }
 0x993   : > { %v1440_v18 = vpop.xlane.xlu1 %1439 }
 0x994   : > { %v1441_v50 = vadd.f32 %v1440_v18, %v1438_v40  ;;  %v1794_v57 = vmul.f32 1.442695, %v1793_v46 }
 0x996   : > { %1442 = vst.msk [vmem:[#allocation5 + $0x8] sm:$0xff] %vm1233_vm7, %v1441_v50  ;;  %1826 = vrot.lane.b32.xlu0 %v4684_v47, %s4311_s8  ;;  %4154 = vpow2.f32 %v1794_v57 }
 0x997   : > { %v1624_v23 = vpop.xlane.xlu1 %1623 }
 0x998   : > { %v1625_v56 = vadd.f32 %v1624_v23, %v1622_v21 }
 0x999   : > { %v1894_v32 = vld [vmem:[#allocation5] sm:$0xff] (!%p3499_p7) }
 0x99a   : > { %1626 = vst.msk [vmem:[#allocation5 + $0x10] sm:$0xff] %vm1233_vm7, %v1625_v56  ;;  %1828 = vrot.lane.b32.xlu0 %v4691_v48, %s4311_s8 }
 0x99e   : > { %1830 = vrot.lane.b32.xlu0 %v4712_v52, %s4311_s8 }
 0x9a0   : > { %v4155_v47 = vpop.eup %4154 }
 0x9a1   : > { %v1806_v9 = vmul.f32 %v4155_v47, %v1805_v8  ;;  %v1912_v28 = vld [vmem:[#allocation5 + $0x10] sm:$0xff] (!%p3499_p7) }
 0x9a2   : > { %1832 = vrot.lane.b32.xlu0 %v4722_v54, %s4311_s8 }
 0x9a6   : > { %1834 = vrot.lane.b32.xlu0 %v4726_v55, %s4311_s8  ;;  %s4320_s8 = smov (!%p3499_p7), 112  }
 0x9aa   : > { %1238 = vperm.xlu0 %4125, %v4149_v35   ;;  %v1946_v35 = vld [vmem:[%s5365_s26] sm:$0xff] (!%p3499_p7) }
 0x9ab   : > { %v3971_v43 = vpack.c.bf16 (!%p3499_p7), %v1947_v39, %v1946_v35  ;;  %v2230_v35 = vld [vmem:[%s5287_s15 + $0x10] sm:$0xff] (!%p3499_p7)  ;;  %v2231_v39 = vld [vmem:[%s5287_s15 + $0x18] sm:$0xff] (!%p3499_p7) }
 0x9ad   : > { %3972 = vmatpush3.bf16.msra.mxu1 (!%p3499_p7), %v3971_v43  ;;  %v3992_v43 = vpack.c.bf16 (!%p3499_p7), %v2231_v39, %v2230_v35  ;;  %v2313_v35 = vld [vmem:[%s5289_s17 + $0x8] sm:$0xff] (!%p3499_p7) }
 0x9ae   : > { %1447 = vperm.xlu0 %4125, %v4151_v51   ;;  %3973 = vmatprep.subr.bf16.mxu1 (!%p3499_p7), %v4313_v42  ;;  %v1949_v51 = vld [vmem:[%s5365_s26 + $0x18] sm:$0xff] (!%p3499_p7) }
 0x9af   : > { %v3974_v53 = vpack.c.bf16 (!%p3499_p7), %v1949_v51, %v1948_v49  ;;  %v3504_v49 = vld [vmem:[%s5284_s12] ss:$0 sm:$0xff] (!%p3499_p7) }
 0x9b0   : > { %v3506_v51 = vld [vmem:[%s5286_s14] ss:$0 sm:$0xff] (!%p3499_p7) }
 0x9b1   : > { %3975 = vmatpush3.bf16.msra.mxu1 (!%p3499_p7), %v3974_v53 }
 0x9b2   : > { %1631 = vperm.xlu0 %4125, %v4153_v41   ;;  %3976 = vmatprep.subr.bf16.mxu1 (!%p3499_p7), %v4313_v42 }
 0x9b6   : > { %1815 = vperm.xlu0 %4125, %v4155_v47  }
 0x9ba   : > { %4158 = vset.pattern.permute.xlu0 (!%p3499_p7), %v4312_v30  ;;  %v2228_v30 = vld [vmem:[%s5287_s15] sm:$0xff] (!%p3499_p7) }
 0xa0d   : > { %v1799_v25 = vpop.permute.xlu0 %1798 }
 0xa0e   : > { %v1801_v27 = vsub.f32 %v1783_v22, %v1799_v25 }
 0xa10   : > { %v1802_v48 = vmul.f32 1.442695, %v1801_v27 }
 0xa11   : > { %v1825_v31 = vpop.permute.xlu0 %1824 }
 0xa12   : > { %4156 = vpow2.f32 %v1802_v48  ;;  %3824 = vmatpush3.bf16.msra.mxu0 %v1825_v31 }
 0xa13   : > { %3825 = vmatprep.subr.bf16.mxu0 %v4306_v19 }
 0xa15   : > { %v1827_v52 = vpop.permute.xlu0 %1826 }
 0xa16   : > { %3826 = vmatpush3.bf16.msra.mxu0 %v1827_v52 }
 0xa17   : > { %3827 = vmatprep.subr.bf16.mxu0 %v4306_v19 }
 0xa19   : > { %v1829_v54 = vpop.permute.xlu0 %1828 }
 0xa1a   : > { %3828 = vmatpush3.bf16.msra.mxu0 %v1829_v54 }
 0xa1b   : > { %3829 = vmatprep.subr.bf16.mxu0 %v4306_v19 }
 0xa1c   : > { %v4157_v55 = vpop.eup %4156 }
 0xa1d   : > { %1807 = vadd.xlane.f32.xlu1 %v4157_v55  ;;  %v1831_v36 = vpop.permute.xlu0 %1830  ;;  %v1819_v58 = vpack.c.bf16 %v4157_v55, %v4157_v55  ;;  %v3500_v55 = vld [vmem:[%s5366_s9] ss:$0 sm:$0xff] (!%p3499_p7)  ;;  %s5371_s9 = sld [smem:[#allocation39_spill]] (!%p3499_p7) }
 0xa1e   : > { %3830 = vmatpush3.bf16.msra.mxu0 %v1831_v36 }
 0xa1f   : > { %3831 = vmatprep.subr.bf16.mxu0 %v4306_v19 }
 0xa21   : > { %v1833_v44 = vpop.permute.xlu0 %1832 }
 0xa22   : > { %3832 = vmatpush3.bf16.msra.mxu0 %v1833_v44  ;;  %v1891_v44 = vld [vmem:[#allocation2] sm:$0xff] (!%p3499_p7) }
 0xa23   : > { %3833 = vmatprep.subr.bf16.mxu0 %v4306_v19 }
 0xa25   : > { %v1835_v45 = vpop.permute.xlu0 %1834 }
 0xa26   : > { %3834 = vmatpush3.bf16.msra.mxu0 %v1835_v45 }
 0xa27   : > { %3982 = vmatprep.subr.bf16.mxu0 (!%p3499_p7), %v4313_v42 }
 0xa29   : > { %3836 = vmatmul.mubr.bf16.vlgmr.msra.gmra.mrb[12].mxu0 %v1819_v58  ;;  %v1239_v62 = vpop.permute.xlu0 %1238 }
 0xa2a   : > { %v1241_v63 = vmul.f32 %v1239_v62, %v1235_v59  ;;  %3869 = vmatprep.mubr.msk.f32.mxu0 (!%p3499_p7), %vm4314_vm8, %v4315_v29 }
 0xa2c   : > { %v1331_v1 = vadd.f32 %v4764_v14, %v1241_v63  ;;  %v1812_v14 = vld [vmem:[#allocation6 + $0x18] sm:$0xff] }
 0xa2d   : > { %v1448_v2 = vpop.permute.xlu0 %1447 }
 0xa2e   : > { %1332 = vst.msk [vmem:[#allocation6] sm:$0xff] %vm1145_vm5, %v1331_v1  ;;  %v1450_v3 = vmul.f32 %v1448_v2, %v1444_v0 }
 0xa30   : > { %v1516_v5 = vadd.f32 %v4844_v17, %v1450_v3 }
 0xa31   : > { %v1632_v6 = vpop.permute.xlu0 %1631 }
 0xa32   : > { %1517 = vst.msk [vmem:[#allocation6 + $0x8] sm:$0xff] %vm1145_vm5, %v1516_v5  ;;  %v1634_v19 = vmul.f32 %v1632_v6, %v1628_v4  ;;  %v2063_v4 = vld [vmem:[%s5367_s6] sm:$0xff] (!%p3499_p7)  ;;  %v2064_v5 = vld [vmem:[%s5367_s6 + $0x8] sm:$0xff] (!%p3499_p7) }
 0xa33   : > { %v3977_v6 = vpack.c.bf16 (!%p3499_p7), %v2064_v5, %v2063_v4 }
 0xa34   : > { %v1700_v7 = vadd.f32 %v4913_v12, %v1634_v19  ;;  %v1903_v12 = vld [vmem:[#allocation5 + $0x8] sm:$0xff] (!%p3499_p7)  ;;  %v2147_v19 = vld [vmem:[%s5285_s13] sm:$0xff] (!%p3499_p7) }
 0xa35   : > { %v1816_v13 = vpop.permute.xlu0 %1815  ;;  %4160 = vrcp.f32 (!%p3499_p7), %v1903_v12  ;;  %v1893_v57 = vld [vmem:[#allocation6] sm:$0xff] (!%p3499_p7) }
 0xa36   : > { %1701 = vst.msk [vmem:[#allocation6 + $0x10] sm:$0xff] %vm1145_vm5, %v1700_v7  ;;  %v1818_v15 = vmul.f32 %v1816_v13, %v1812_v14  ;;  %v2148_v7 = vld [vmem:[%s5285_s13 + $0x8] sm:$0xff] (!%p3499_p7)  ;;  %v2149_v14 = vld [vmem:[%s5285_s13 + $0x10] sm:$0xff] (!%p3499_p7)  ;;  %v2150_v13 = vld [vmem:[%s5285_s13 + $0x18] sm:$0xff] (!%p3499_p7) }
 0xa37   : > { %v3983_v8 = vpack.c.bf16 (!%p3499_p7), %v2148_v7, %v2147_v19 }
 0xa39   : > { %v1902_v38 = vld [vmem:[#allocation6 + $0x8] sm:$0xff] (!%p3499_p7)  ;;  %3984 = vmatpush3.bf16.msra.mxu0 (!%p3499_p7), %v3983_v8 }
 0xa3a   : > { %3985 = vmatprep.subr.bf16.mxu0 (!%p3499_p7), %v4313_v42 }
 0xa3d   : > { %v1911_v50 = vld [vmem:[#allocation6 + $0x10] sm:$0xff] (!%p3499_p7) }
 0xa3f   : > { %v4161_v37 = vpop.eup (!%p3499_p7), %4160 }
 0xa40   : > { %1907 = vperm.xlu0 (!%p3499_p7), %4158, %v4161_v37   ;;  %v1892_v37 = vld [vmem:[%s4560_s4] sm:$0xff] (!%p3499_p7)  ;;  %s5377_s4 = sld [smem:[#allocation42_spill]] (!%p3499_p7) }
 0xaaa   : > { %v1808_v10 = vpop.xlane.xlu1 %1807 }
 0xaab   : > { %v1809_v11 = vadd.f32 %v1808_v10, %v1806_v9  ;;  %v2065_v9 = vld [vmem:[%s5367_s6 + $0x10] sm:$0xff] (!%p3499_p7)  ;;  %v2066_v10 = vld [vmem:[%s5367_s6 + $0x18] sm:$0xff] (!%p3499_p7) }
 0xaad   : > { %1810 = vst.msk [vmem:[#allocation5 + $0x18] sm:$0xff] %vm1233_vm7, %v1809_v11  ;;  %v3980_v11 = vpack.c.bf16 (!%p3499_p7), %v2066_v10, %v2065_v9 }
 0xab4   : > { %v1921_v26 = vld [vmem:[#allocation5 + $0x18] sm:$0xff] (!%p3499_p7) }
 0xab5   : > { %4162 = vrcp.f32 (!%p3499_p7), %v1921_v26  ;;  %v3503_v26 = vld [vmem:[%s5369_s30] ss:$0 sm:$0xff] (!%p3499_p7)  ;;  %s4321_s30 = smov (!%p3499_p7), 104  }
 0xab6   : > { %4164 = vrcp.f32 (!%p3499_p7), %v1912_v28 }
 0xab7   : > { %4166 = vrcp.f32 (!%p3499_p7), %v1894_v32  ;;  %v2229_v32 = vld [vmem:[%s5287_s15 + $0x8] sm:$0xff] (!%p3499_p7) }
 0xabf   : > { %v4163_v60 = vpop.eup (!%p3499_p7), %4162  ;;  %v1908_v40 = vpop.permute.xlu0 (!%p3499_p7), %1907 }
 0xac0   : > { %v4165_v61 = vpop.eup (!%p3499_p7), %4164  ;;  %1925 = vperm.xlu1 (!%p3499_p7), %4159, %v4163_v60   ;;  %v1910_v18 = vmul.f32 (!%p3499_p7), %v1908_v40, %v1902_v38 }
 0xac1   : > { %v4167_v34 = vpop.eup (!%p3499_p7), %4166  ;;  %1916 = vperm.xlu0 (!%p3499_p7), %4158, %v4165_v61   ;;  %v3989_v61 = vpack.c.bf16 (!%p3499_p7), %v2229_v32, %v2228_v30 }
 0xac4   : > { %1898 = vperm.xlu1 (!%p3499_p7), %4159, %v4167_v34  }
 0xac5   : > { %1930 = vrot.lane.b32.xlu0 (!%p3499_p7), %v1910_v18, %s4316_s22 }
 0xaf9   : > { %1890 = sbr.rel (%p3499_p7) target bundleno = 5848 (0x16d8), region = 140 }
 0xafc   : > { %v1878_v16 = vpop.f32.mrb[12].mxu0 }
 0xafd   : > { %v1884_v20 = vadd.f32 %v1878_v16, %v1818_v15  ;;  %v3837_v17 = vpop.f32.mrb[13].mxu0  ;;  %v3986_v15 = vpack.c.bf16 (!%p3499_p7), %v2150_v13, %v2149_v14 }
 0xafe   : > { %v1881_v22 = vpop.f32.mrb[14].mxu0 }
 0xaff   : > { %1885 = vst.msk [vmem:[#allocation6 + $0x18] sm:$0xff] %vm1145_vm5, %v1884_v20  ;;  %v3838_v24 = vpop.f32.mrb[15].mxu0  ;;  %3987 = vmatpush3.bf16.msra.mxu0 (!%p3499_p7), %v3986_v15 }
 0xb00   : > { %3883 = vmatprep.subr.mxu0 %v4315_v29  ;;  %v3502_v24 = vld [vmem:[%s5368_s19] ss:$0 sm:$0xff] }
 0xb06   : > { %v1920_v41 = vld [vmem:[#allocation6 + $0x18] sm:$0xff] }
 0xb3f   : > { %v1926_v33 = vpop.permute.xlu1 %1925 }
 0xb40   : > { %v1928_v21 = vmul.f32 %v1926_v33, %v1920_v41  ;;  %v1917_v23 = vpop.permute.xlu0 %1916 }
 0xb41   : > { %v1919_v56 = vmul.f32 %v1917_v23, %v1911_v50 }
 0xb42   : > { %1938 = vrot.lane.b32.xlu0 %v1928_v21, %s4318_s24  ;;  %v3508_v21 = vld [vmem:[%s5288_s16] ss:$0 sm:$0xff] }
 0xb43   : > { %1934 = vrot.lane.b32.xlu1 %v1919_v56, %s4317_s23  ;;  %v1899_v46 = vpop.permute.xlu1 %1898 }
 0xb44   : > { %v1931_v47 = vpop.permute.xlu0 %1930  ;;  %v1901_v25 = vmul.f32 %v1899_v46, %v1893_v57 }
 0xb46   : > { %v1941_v27 = vsel %vm1145_vm5, %v1901_v25, %v1931_v47 }
 0xbb4   : > { %v1939_v31 = vpop.permute.xlu0 %1938 }
 0xbb5   : > { %v1935_v48 = vpop.permute.xlu1 %1934 }
 0xbb6   : > { %v1943_v52 = vsel %vm1942_vm9, %v1941_v27, %v1935_v48 }
 0xbb7   : > { %v1945_v54 = vsel %vm1944_vm10, %v1943_v52, %v1939_v31 }
 0xbb8   : > { %3848 = vmatmul.mubr.msk.f32.vlgmr.msra.gmra.mrb[0].mxu1 %vm1957_vm11, %v1945_v54 }
 0xbb9   : > { %3858 = vmatprep.mubr.msk.f32.mxu1 %vm4314_vm8, %v4315_v29  ;;  %3978 = vmatpush3.bf16.msra.mxu1 %v3977_v6 }
 0xbba   : > { %3979 = vmatprep.subr.bf16.mxu1 %v4313_v42 }
 0xbbd   : > { %3981 = vmatpush3.bf16.msra.mxu1 %v3980_v11 }
 0xbbe   : > { %3988 = vmatprep.subr.bf16.mxu1 %v4313_v42 }
 0xc8b   : > { %v2027_v36 = vpop.f32.mrb[0].mxu1 }
 0xc8c   : > { %v2028_v45 = vadd.f32 %v3500_v55, %v2027_v36  ;;  %v3849_v58 = vpop.f32.mrb[1].mxu1 }
 0xc8e   : > { %v2031_v59 = vadd.f32 %v2028_v45, %v1891_v44 }
 0xc90   : > { %v2034_v62 = vsel %vm1957_vm11, %v2031_v59, 0.0 }
 0xc91   : > { %2035 = vadd.xlane.f32.xlu1 %v2034_v62 }
 0xd1e   : > { %v2036_v63 = vpop.xlane.xlu1 %2035 }
 0xd1f   : > { %v2038_v0 = vmul.f32 0.03125, %v2036_v63 }
 0xd21   : > { %v2039_v1 = vsub.f32 %v2031_v59, %v2038_v0 }
 0xd23   : > { %v2040_v2 = vmul.f32 %v2039_v1, %v2039_v1 }
 0xd25   : > { %v2041_v3 = vsel %vm1957_vm11, %v2040_v2, 0.0 }
 0xd26   : > { %2042 = vadd.xlane.f32.xlu0 %v2041_v3 }
 0xdb3   : > { %v2043_v16 = vpop.xlane.xlu0 %2042 }
 0xdb4   : > { %v2044_v20 = vmul.f32 0.03125, %v2043_v16 }
 0xdb6   : > { %v2045_v17 = vadd.f32 1e-05, %v2044_v20 }
 0xdb8   : > { %4168 = vrsqrt.f32 %v2045_v17 }
 0xdc2   : > { %v4169_v22 = vpop.eup %4168 }
 0xdc3   : > { %v2047_v12 = vmul.f32 %v4169_v22, %v2039_v1 }
 0xdc5   : > { %v2054_v28 = vmul.f32 %v3502_v24, %v2047_v12 }
 0xdc7   : > { %v5034_v60 = vadd.f32 %v3503_v26, %v2054_v28 }
 0xdc9   : > { %v2062_v34 = vadd.f32 %v5034_v60, %v1892_v37 }
 0xdcb   : > { %3859 = vmatmul.mubr.msk.f32.vlgmr.msra.gmra.mrb[2].mxu1 %vm1957_vm11, %v2062_v34  ;;  %3870 = vmatmul.mubr.msk.f32.vlgmr.msra.gmra.mrb[0].mxu0 %vm1957_vm11, %v2062_v34  ;;  %v2312_v34 = vld [vmem:[%s5289_s17] sm:$0xff] }
 0xdcc   : > { %3990 = vmatpush3.bf16.msra.mxu1 %v3989_v61  ;;  %3880 = vmatprep.mubr.msk.f32.mxu1 %vm4314_vm8, %v4315_v29  ;;  %v3995_v39 = vpack.c.bf16 %v2313_v35, %v2312_v34  ;;  %v3190_v35 = vld [vmem:[%s5373_s11 + $0x38] sm:$0xff] }
 0xdcd   : > { %3991 = vmatprep.subr.bf16.mxu1 %v4313_v42  ;;  %3885 = vmatprep.mubr.msk.f32.mxu0 %vm4314_vm8, %v4315_v29 }
 0xdd0   : > { %3993 = vmatpush3.bf16.msra.mxu1 %v3992_v43 }
 0xdd1   : > { %3888 = vmatprep.subr.mxu1 %v4315_v29 }
 0xdd3   : > { %3881 = vmatmul.mubr.msk.f32.vlgmr.msra.gmra.mrb[4].mxu1 %vm1957_vm11, %v5034_v60 }
 0xdd4   : > { %3890 = vmatprep.mubr.msk.f32.mxu1 %vm4314_vm8, %v4315_v29 }
 0xe9e   : > { %v2143_v53 = vpop.f32.mrb[2].mxu1  ;;  %v2224_v38 = vpop.f32.mrb[0].mxu0 }
 0xe9f   : > { %v2144_v40 = vadd.f32 %v3504_v49, %v2143_v53  ;;  %v2225_v41 = vadd.f32 %v3506_v51, %v2224_v38  ;;  %v3860_v18 = vpop.f32.mrb[3].mxu1  ;;  %v3871_v33 = vpop.f32.mrb[1].mxu0  ;;  %v2314_v49 = vld [vmem:[%s5289_s17 + $0x10] sm:$0xff]  ;;  %v2315_v51 = vld [vmem:[%s5289_s17 + $0x18] sm:$0xff] }
 0xea0   : > { %v3998_v38 = vpack.c.bf16 %v2315_v51, %v2314_v49 }
 0xea1   : > { %v2317_v50 = vmul.f32 0.35355338, %v2144_v40  ;;  %2480 = vrot.lane.b32.xlu0 %v2225_v41, %s4319_s1  ;;  %3884 = vmatpush3.xpose.msk.msra.mxu0 %vm1145_vm5, %v2225_v41 }
 0xea2   : > { %3893 = vmatprep.subr.mxu0 %v4315_v29 }
 0xea3   : > { %2478 = vrot.lane.b32.xlu1 %v2317_v50, %s4319_s1 }
 0xea4   : > { %3886 = vmatmul.mubr.msk.f32.vlgmr.msra.gmra.mrb[2].mxu0 %vm1145_vm5, %v2317_v50 }
 0xea5   : > { %2644 = vrot.lane.b32.xlu0 %v2317_v50, %s4320_s8  ;;  %3895 = vmatprep.mubr.msk.f32.mxu0 %vm4314_vm8, %v4315_v29 }
 0xea6   : > { %v2308_v23 = vpop.f32.mrb[4].mxu1 }
 0xea7   : > { %v2309_v56 = vadd.f32 %v3508_v21, %v2308_v23  ;;  %v3882_v46 = vpop.f32.mrb[5].mxu1  ;;  %2646 = vrot.lane.b32.xlu1 %v2225_v41, %s4320_s8 }
 0xea9   : > { %3889 = vmatpush3.msra.mxu1 %v2309_v56  ;;  %2809 = vrot.lane.b32.xlu0 %v2317_v50, %s4321_s30 }
 0xeaa   : > { %3898 = vmatprep.subr.mxu1 %v4315_v29 }
 0xeab   : > { %2811 = vrot.lane.b32.xlu1 %v2225_v41, %s4321_s30 }
 0xf13   : > { %v2481_v57 = vpop.permute.xlu0 %2480 }
 0xf14   : > { %3894 = vmatpush3.xpose.msk.msra.mxu0 %vm1145_vm5, %v2481_v57 }
 0xf15   : > { %v2479_v47 = vpop.permute.xlu1 %2478  ;;  %3903 = vmatprep.subr.mxu0 %v4315_v29 }
 0xf17   : > { %3896 = vmatmul.mubr.msk.f32.vlgmr.msra.gmra.mrb[4].mxu0 %vm1145_vm5, %v2479_v47  ;;  %v2645_v27 = vpop.permute.xlu0 %2644 }
 0xf18   : > { %3905 = vmatprep.mubr.msk.f32.mxu0 %vm4314_vm8, %v4315_v29 }
 0xf19   : > { %v2647_v25 = vpop.permute.xlu1 %2646 }
 0xf1a   : > { %3904 = vmatpush3.xpose.msk.msra.mxu0 %vm1145_vm5, %v2647_v25 }
 0xf1b   : > { %3913 = vmatprep.subr.mxu0 %v4315_v29  ;;  %v2810_v31 = vpop.permute.xlu0 %2809 }
 0xf1d   : > { %v2812_v48 = vpop.permute.xlu1 %2811  ;;  %3906 = vmatmul.mubr.msk.f32.vlgmr.msra.gmra.mrb[6].mxu0 %vm1145_vm5, %v2645_v27 }
 0xf1e   : > { %3914 = vmatpush3.xpose.msk.msra.mxu0 %vm1145_vm5, %v2812_v48  ;;  %3915 = vmatprep.mubr.msk.f32.mxu0 %vm4314_vm8, %v4315_v29 }
 0xf1f   : > { %3994 = vmatprep.subr.bf16.mxu0 %v4313_v42 }
 0xf21   : > { %3916 = vmatmul.mubr.msk.f32.vlgmr.msra.gmra.mrb[8].mxu0 %vm1145_vm5, %v2810_v31 }
 0xf22   : > { %3931 = vmatprep.mubr.msk.f32.mxu0 %vm4314_vm8, %v4315_v29  ;;  %3996 = vmatpush3.bf16.msra.mxu0 %v3995_v39 }
 0xf23   : > { %3997 = vmatprep.subr.bf16.mxu0 %v4313_v42 }
 0xf26   : > { %3999 = vmatpush3.bf16.msra.mxu0 %v3998_v38 }
 0xf27   : > { %4006 = vmatprep.subr.bf16.mxu0 %v4313_v42 }
 0xf77   : > { %v2390_v52 = vpop.f32.mrb[2].mxu0 }
 0xf78   : > { %v3887_v54 = vpop.f32.mrb[3].mxu0  ;;  %v2394_v55 = vsel %vm1145_vm5, %v2390_v52, -inf }
 0xf79   : > { %2395 = vmax.xlane.f32.xlu1 %v2394_v55 }
 0xf8a   : > { %2731 = vrot.lane.b32.xlu1 %v2309_v56, %s4320_s8  ;;  %s5379_s8 = sld [smem:[#allocation44_spill]] }
 0xfea   : > { %v2552_v36 = vpop.f32.mrb[4].mxu0 }
 0xfeb   : > { %v3897_v44 = vpop.f32.mrb[5].mxu0  ;;  %v2556_v45 = vsel %vm1145_vm5, %v2552_v36, -inf }
 0xfec   : > { %2557 = vmax.xlane.f32.xlu0 %v2556_v45 }
 0xff0   : > { %v2718_v58 = vpop.f32.mrb[6].mxu0 }
 0xff1   : > { %v3907_v59 = vpop.f32.mrb[7].mxu0  ;;  %v2722_v62 = vsel %vm1145_vm5, %v2718_v58, -inf }
 0xff2   : > { %2723 = vmax.xlane.f32.xlu0 %v2722_v62 }
 0xff4   : > { %v2883_v63 = vpop.f32.mrb[8].mxu0 }
 0xff5   : > { %v3917_v0 = vpop.f32.mrb[9].mxu0  ;;  %v2887_v1 = vsel %vm1145_vm5, %v2883_v63, -inf }
 0xff6   : > { %2888 = vmax.xlane.f32.xlu1 %v2887_v1 }
0x1006   : > { %v2396_v2 = vpop.xlane.xlu1 %2395 }
0x1007   : > { %v2397_v3 = vsub.f32 %v2390_v52, %v2396_v2  ;;  %2896 = vrot.lane.b32.xlu1 %v2309_v56, %s4321_s30 }
0x1008   : > { %2566 = vrot.lane.b32.xlu0 %v2309_v56, %s4319_s1  ;;  %s5372_s1 = smov %s5371_s9 }
0x1009   : > { %v2398_v4 = vmul.f32 1.442695, %v2397_v3 }
0x100a   : > { %v2732_v8 = vpop.permute.xlu1 %2731 }
0x100b   : > { %4170 = vpow2.f32 %v2398_v4 }
0x1015   : > { %v4171_v5 = vpop.eup %4170 }
0x1016   : > { %3891 = vmatmul.mubr.msk.f32.vlgmr.msra.gmra.mrb[6].mxu1 %vm1145_vm5, %v4171_v5  ;;  %v2400_v30 = vsel %vm1145_vm5, %v4171_v5, 0.0 }
0x1017   : > { %3900 = vmatprep.mubr.msk.f32.mxu1 %vm4314_vm8, %v4315_v29 }
0x1079   : > { %v2558_v6 = vpop.xlane.xlu0 %2557 }
0x107a   : > { %v2559_v19 = vsub.f32 %v2552_v36, %v2558_v6 }
0x107c   : > { %v2560_v7 = vmul.f32 1.442695, %v2559_v19  ;;  %v3099_v19 = vld [vmem:[%s5372_s1 + $0x8] sm:$0xff] }
0x107e   : > { %4172 = vpow2.f32 %v2560_v7 }
0x107f   : > { %v2724_v9 = vpop.xlane.xlu0 %2723 }
0x1080   : > { %v2725_v10 = vsub.f32 %v2718_v58, %v2724_v9 }
0x1082   : > { %v2726_v11 = vmul.f32 1.442695, %v2725_v10  ;;  %v3183_v10 = vld [vmem:[%s5373_s11] sm:$0xff] }
0x1083   : > { %v2889_v14 = vpop.xlane.xlu1 %2888  ;;  %v2567_v13 = vpop.permute.xlu0 %2566 }
0x1084   : > { %4174 = vpow2.f32 %v2726_v11  ;;  %v2890_v15 = vsub.f32 %v2883_v63, %v2889_v14  ;;  %3899 = vmatpush3.msra.mxu1 %v2567_v13  ;;  %v3184_v11 = vld [vmem:[%s5373_s11 + $0x8] sm:$0xff]  ;;  %v3185_v14 = vld [vmem:[%s5373_s11 + $0x10] sm:$0xff] }
0x1085   : > { %3908 = vmatprep.subr.mxu1 %v4315_v29  ;;  %v4007_v13 = vpack.c.bf16 %v3184_v11, %v3183_v10 }
0x1086   : > { %v2891_v16 = vmul.f32 1.442695, %v2890_v15  ;;  %v3186_v15 = vld [vmem:[%s5373_s11 + $0x18] sm:$0xff] }
0x1087   : > { %v2897_v24 = vpop.permute.xlu1 %2896 }
0x1088   : > { %v4173_v20 = vpop.eup %4172  ;;  %4176 = vpow2.f32 %v2891_v16  ;;  %v4010_v16 = vpack.c.bf16 %v3186_v15, %v3185_v14 }
0x1089   : > { %3901 = vmatmul.mubr.msk.f32.vlgmr.msra.gmra.mrb[8].mxu1 %vm1145_vm5, %v4173_v20  ;;  %v2562_v17 = vsel %vm1145_vm5, %v4173_v20, 0.0  ;;  %v3187_v20 = vld [vmem:[%s5373_s11 + $0x20] sm:$0xff] }
0x108a   : > { %3909 = vmatpush3.msra.mxu1 %v2732_v8  ;;  %2563 = vadd.xlane.f32.xlu0 %v2562_v17  ;;  %v3101_v8 = vld [vmem:[%s5372_s1 + $0x18] sm:$0xff]  ;;  %v3188_v17 = vld [vmem:[%s5373_s11 + $0x28] sm:$0xff] }
0x108b   : > { %3910 = vmatprep.mubr.msk.f32.mxu1 %vm4314_vm8, %v4315_v29  ;;  %3918 = vmatprep.subr.mxu1 %v4315_v29 }
0x108e   : > { %v4175_v22 = vpop.eup %4174 }
0x108f   : > { %3911 = vmatmul.mubr.msk.f32.vlgmr.msra.gmra.mrb[10].mxu1 %vm1145_vm5, %v4175_v22  ;;  %v2728_v12 = vsel %vm1145_vm5, %v4175_v22, 0.0  ;;  %v4013_v22 = vpack.c.bf16 %v3188_v17, %v3187_v20 }
0x1090   : > { %3919 = vmatpush3.msra.mxu1 %v2897_v24  ;;  %2729 = vadd.xlane.f32.xlu1 %v2728_v12 }
0x1091   : > { %3920 = vmatprep.mubr.msk.f32.mxu1 %vm4314_vm8, %v4315_v29  ;;  %4000 = vmatprep.subr.bf16.mxu1 %v4313_v42 }
0x1092   : > { %v4177_v26 = vpop.eup %4176 }
0x1093   : > { %3921 = vmatmul.mubr.msk.f32.vlgmr.msra.gmra.mrb[12].mxu1 %vm1145_vm5, %v4177_v26  ;;  %v2893_v28 = vsel %vm1145_vm5, %v4177_v26, 0.0 }
0x1094   : > { %2894 = vadd.xlane.f32.xlu0 %v2893_v28  ;;  %3942 = vmatprep.mubr.msk.f32.mxu1 %vm4314_vm8, %v4315_v29 }
0x1098   : > { %2401 = vadd.xlane.f32.xlu0 %v2400_v30  ;;  %v3524_v30 = vld [vmem:[%s5374_s10] ss:$0 sm:$0xff] }
0x10e9   : > { %v2472_v32 = vpop.f32.mrb[6].mxu1 }
0x10ea   : > { %v3892_v37 = vpop.f32.mrb[7].mxu1 }
0x10eb   : > { %v3525_v37 = vld [vmem:[%s5375_s27] ss:$0 sm:$0xff] }
0x1117   : > { %v2564_v61 = vpop.xlane.xlu0 %2563 }
0x1118   : > { %4178 = vrcp.f32 %v2564_v61 }
0x111d   : > { %v2730_v43 = vpop.xlane.xlu1 %2729 }
0x111e   : > { %4180 = vrcp.f32 %v2730_v43 }
0x1121   : > { %v2895_v53 = vpop.xlane.xlu0 %2894 }
0x1122   : > { %v4179_v40 = vpop.eup %4178  ;;  %4182 = vrcp.f32 %v2895_v53 }
0x1125   : > { %v2402_v27 = vpop.xlane.xlu0 %2401 }
0x1126   : > { %4184 = vrcp.f32 %v2402_v27 }
0x1128   : > { %v4181_v50 = vpop.eup %4180 }
0x112c   : > { %v4183_v46 = vpop.eup %4182 }
0x1130   : > { %v4185_v48 = vpop.eup %4184 }
0x1131   : > { %v2477_v52 = vmul.f32 %v4185_v48, %v2472_v32 }
0x115c   : > { %v2638_v41 = vpop.f32.mrb[8].mxu1 }
0x115d   : > { %v2643_v18 = vmul.f32 %v4179_v40, %v2638_v41  ;;  %v3902_v33 = vpop.f32.mrb[9].mxu1  ;;  %v3528_v40 = vld [vmem:[%s5377_s4] ss:$0 sm:$0xff] }
0x115f   : > { %2975 = vrot.lane.b32.xlu1 %v2643_v18, %s4316_s22  ;;  %s5376_s22 = sld [smem:[#allocation40_spill]] }
0x1162   : > { %v2803_v21 = vpop.f32.mrb[10].mxu1 }
0x1163   : > { %v2808_v23 = vmul.f32 %v4181_v50, %v2803_v21  ;;  %v3912_v56 = vpop.f32.mrb[11].mxu1 }
0x1165   : > { %2979 = vrot.lane.b32.xlu0 %v2808_v23, %s4317_s23  ;;  %v3526_v43 = vld [vmem:[%s5376_s22] ss:$0 sm:$0xff] }
0x1166   : > { %v2968_v57 = vpop.f32.mrb[12].mxu1 }
0x1167   : > { %v2973_v47 = vmul.f32 %v4183_v46, %v2968_v57  ;;  %v3922_v25 = vpop.f32.mrb[13].mxu1 }
0x1169   : > { %2983 = vrot.lane.b32.xlu1 %v2973_v47, %s4318_s24  ;;  %s5370_s24 = sld [smem:[#allocation36_spill]] }
0x116f   : > { %v3522_v58 = vld [vmem:[%s5370_s24] ss:$0 sm:$0xff] }
0x11d1   : > { %v2976_v31 = vpop.permute.xlu1 %2975 }
0x11d2   : > { %v2986_v55 = vsel %vm1145_vm5, %v2477_v52, %v2976_v31  ;;  %v3530_v52 = vld [vmem:[%s5378_s5] ss:$0 sm:$0xff] }
0x11d7   : > { %v2980_v54 = vpop.permute.xlu0 %2979 }
0x11d8   : > { %v2987_v36 = vsel %vm1942_vm9, %v2986_v55, %v2980_v54  ;;  %v3531_v55 = vld [vmem:[%s5379_s8] ss:$0 sm:$0xff] }
0x11db   : > { %v2984_v44 = vpop.permute.xlu1 %2983 }
0x11dc   : > { %v2988_v45 = vsel %vm1944_vm10, %v2987_v36, %v2984_v44 }
0x11dd   : > { %3932 = vmatmul.mubr.msk.f32.vlgmr.msra.gmra.mrb[10].mxu0 %vm1957_vm11, %v2988_v45 }
0x11de   : > { %3961 = vmatprep.mubr.msk.f32.mxu0 %vm4314_vm8, %v4315_v29  ;;  %v3098_v29 = vld [vmem:[%s5371_s9] sm:$0xff]  ;;  %4008 = vmatpush3.bf16.msra.mxu0 %v4007_v13 }
0x11df   : > { %v4001_v7 = vpack.c.bf16 %v3099_v19, %v3098_v29  ;;  %4009 = vmatprep.subr.bf16.mxu0 %v4313_v42 }
0x11e1   : > { %4002 = vmatpush3.bf16.msra.mxu1 %v4001_v7 }
0x11e2   : > { %4003 = vmatprep.subr.bf16.mxu1 %v4313_v42  ;;  %4011 = vmatpush3.bf16.msra.mxu0 %v4010_v16 }
0x11e3   : > { %4012 = vmatprep.subr.bf16.mxu0 %v4313_v42 }
0x11e6   : > { %4014 = vmatpush3.bf16.msra.mxu0 %v4013_v22 }
0x11e7   : > { %4015 = vmatprep.subr.bf16.mxu0 %v4313_v42  ;;  %v3189_v42 = vld [vmem:[%s5373_s11 + $0x30] sm:$0xff] }
0x11e8   : > { %v4016_v39 = vpack.c.bf16 %v3190_v35, %v3189_v42 }
0x11ea   : > { %4017 = vmatpush3.bf16.msra.mxu0 %v4016_v39 }
0x12b0   : > { %v3064_v59 = vpop.f32.mrb[10].mxu0 }
0x12b1   : > { %v3065_v62 = vadd.f32 %v3522_v58, %v3064_v59  ;;  %v3933_v63 = vpop.f32.mrb[11].mxu0 }
0x12b3   : > { %v3068_v0 = vadd.f32 %v3065_v62, %v5034_v60  ;;  %v3100_v60 = vld [vmem:[%s5372_s1 + $0x10] sm:$0xff] }
0x12b4   : > { %v4004_v9 = vpack.c.bf16 %v3101_v8, %v3100_v60 }
0x12b5   : > { %v3071_v1 = vsel %vm1957_vm11, %v3068_v0, 0.0 }
0x12b6   : > { %3072 = vadd.xlane.f32.xlu1 %v3071_v1  ;;  %4005 = vmatpush3.bf16.msra.mxu1 %v4004_v9 }
0x1343   : > { %v3073_v2 = vpop.xlane.xlu1 %3072 }
0x1344   : > { %v3074_v3 = vmul.f32 0.03125, %v3073_v2 }
0x1346   : > { %v3075_v4 = vsub.f32 %v3068_v0, %v3074_v3 }
0x1348   : > { %v3076_v5 = vmul.f32 %v3075_v4, %v3075_v4 }
0x134a   : > { %v3077_v6 = vsel %vm1957_vm11, %v3076_v5, 0.0 }
0x134b   : > { %3078 = vadd.xlane.f32.xlu0 %v3077_v6 }
0x13d8   : > { %v3079_v24 = vpop.xlane.xlu0 %3078 }
0x13d9   : > { %v3080_v12 = vmul.f32 0.03125, %v3079_v24 }
0x13db   : > { %v3081_v26 = vadd.f32 1e-05, %v3080_v12 }
0x13dd   : > { %4186 = vrsqrt.f32 %v3081_v26 }
0x13e7   : > { %v4187_v28 = vpop.eup %4186 }
0x13e8   : > { %v3083_v32 = vmul.f32 %v4187_v28, %v3075_v4 }
0x13ea   : > { %v3090_v61 = vmul.f32 %v3524_v30, %v3083_v32 }
0x13ec   : > { %v3097_v34 = vadd.f32 %v3525_v37, %v3090_v61 }
0x13ee   : > { %3943 = vmatmul.mubr.msk.f32.vlgmr.msra.gmra.mrb[14].mxu1 %vm1957_vm11, %v3097_v34 }
0x14c1   : > { %v3178_v49 = vpop.f32.mrb[14].mxu1 }
0x14c2   : > { %v3179_v51 = vadd.f32 %v3526_v43, %v3178_v49  ;;  %v3944_v53 = vpop.f32.mrb[15].mxu1 }
0x14c4   : > { %v3182_v38 = vmax.f32 %v3179_v51, 0.0 }
0x14c6   : > { %3962 = vmatmul.mubr.msk.f32.vlgmr.msra.gmra.mrb[12].mxu0 %vm3198_vm12, %v3182_v38 }
0x1599   : > { %v3268_v41 = vpop.f32.mrb[12].mxu0 }
0x159a   : > { %v3269_v18 = vadd.f32 %v3528_v40, %v3268_v41  ;;  %v3963_v33 = vpop.f32.mrb[13].mxu0 }
0x159c   : > { %v3272_v50 = vadd.f32 %v3269_v18, %v3097_v34 }
0x159e   : > { %v3275_v21 = vsel %vm1957_vm11, %v3272_v50, 0.0 }
0x159f   : > { %3276 = vadd.xlane.f32.xlu0 %v3275_v21 }
0x162c   : > { %v3277_v23 = vpop.xlane.xlu0 %3276 }
0x162d   : > { %v3278_v56 = vmul.f32 0.03125, %v3277_v23 }
0x162f   : > { %v3279_v46 = vsub.f32 %v3272_v50, %v3278_v56 }
0x1631   : > { %v3280_v57 = vmul.f32 %v3279_v46, %v3279_v46 }
0x1633   : > { %v3281_v47 = vsel %vm1957_vm11, %v3280_v57, 0.0 }
0x1634   : > { %3282 = vadd.xlane.f32.xlu1 %v3281_v47 }
0x16c1   : > { %v3283_v25 = vpop.xlane.xlu1 %3282 }
0x16c2   : > { %v3284_v27 = vmul.f32 0.03125, %v3283_v25 }
0x16c4   : > { %v3285_v48 = vadd.f32 1e-05, %v3284_v27 }
0x16c6   : > { %4188 = vrsqrt.f32 %v3285_v48 }
0x16d0   : > { %v4189_v31 = vpop.eup %4188 }
0x16d1   : > { %v3287_v54 = vmul.f32 %v4189_v31, %v3279_v46 }
0x16d3   : > { %v3294_v36 = vmul.f32 %v3530_v52, %v3287_v54 }
0x16d5   : > { %v3301_v44 = vadd.f32 %v3531_v55, %v3294_v36 }
0x16d7   : > { %3302 = vst.msk [vmem:[#allocation2] sm:$0xff] %vm1957_vm11, %v3301_v44  ;;  %3303 = vst.msk [vmem:[%s916_s3] sm:$0xff] %vm1957_vm11, %v3301_v44 }
0x16d8 PF: > { %s5380_s30 = sld [smem:[#allocation13_spill]]  ;;  %s5381_s27 = sld [smem:[#allocation11_spill]] }
0x16d9   : > { %s5383_s20 = sld [smem:[#allocation45_spill]]  ;;  %s3318_s22 = sshll.u32 %s916_s3, 4  ;;  %s3319_s22 = int_to_ptr.vmem [resolvable:$true] %s3318_s22 }
0x16da   : > { %s4190_s4 = scalar_lea.vmem %s3319_s22, 128  ;;  %s4322_s7 = smov [#allocation7]  }
0x16db   : > { %p4191_p9 = scmp.ne.s32.totalorder %s3319_s22, %s4190_s4  ;;  %s4194_s9 = sshll.u32 %s4322_s7, 4  ;;  %s4195_s9 = int_to_ptr.vmem [resolvable:$false] %s4194_s9 }
0x16dc   : > { %s4196_s5 = scalar_lea.vmem %s4195_s9, 256  ;;  %p4197_p12 = scmp.lt.s32.totalorder %s3319_s22, %s4195_s9 }
0x16dd   : > { %p4192_p10 = pnand %p4191_p9, %p4525_p6  ;;  %p4198_p13 = scmp.lt.s32.totalorder %s4196_s5, %s4190_s4 }
0x16de   : > { %s3533_s29 = sshll.u32 %s5380_s30, 7  ;;  %s5384_s23 = sand.u32 1, %s5381_s27  }
0x16df   : > { %s5215_s25 = scalar_lea.hbm %s5383_s20, %s3533_s29  ;;  %s3305_s24 = scalar_lea.sflag [#allocation8], %s5384_s23 }
0x16e0   : > { %p4193_p11 = pneg %p4192_p10  ;;  %p4199_p0 = por %p4198_p13, %p4197_p12 }
0x16e2   : > { %p4200_p1 = pnand %p4199_p0, %p4193_p11 }
0x16e4   : > { %4203 = shalt.err (!%p4200_p1)
}
0x16e5   : > { %s4204_s0 = scalar_lea.hbm %s5215_s25, 128  ;;  %s4208_s10 = scalar_lea.hbm %s5383_s20, 256 }
0x16e6   : > { %p4205_p2 = scmp.ne.s32.totalorder %s5215_s25, %s4204_s0  ;;  %p4209_p5 = scmp.lt.u32.totalorder %s5215_s25, %s5383_s20 }
0x16e7   : > { %p4210_p7 = scmp.lt.u32.totalorder %s4208_s10, %s4204_s0  ;;  %p4212_p10 = scmp.lt.u32.totalorder %s4204_s0, %s5215_s25 }
0x16e8   : > { %p4206_p3 = pnand %p4205_p2, %p4525_p6 }
0x16e9   : > { %p4211_p9 = por %p4210_p7, %p4209_p5 }
0x16ea   : > { %p4207_p4 = pneg %p4206_p3 }
0x16eb   : > { %p4213_p11 = por %p4212_p10, %p4211_p9 }
0x16ed   : > { %p4214_p12 = pnand %p4213_p11, %p4207_p4 }
0x16ef   : > { %4217 = shalt.err (!%p4214_p12)
}
0x16f0   : > { %4018 = dma.vmem_to_hbm [thread:$0]  (%p4525_p6), %s3319_s22, 128, %s5215_s25, %s3305_s24  }
0x16f1 PF: > { %s5385_s27 = sld [smem:[#allocation17_spill]]  ;;  %s5386_s29 = sld [smem:[#allocation10_spill]] }
0x16f7   : > { %p4024_p13 = scmp.ge.s32.totalorder %s5385_s27, 2  ;;  %s3330_s18 = sand.u32 1, %s5386_s29  }
0x16f8   : > { %s3331_s23 = scalar_lea.sflag [#allocation8], %s3330_s18 }
0x16f9   : > { %p4021_p0 = pnand %p4024_p13, %p4533_p8 }
0x16fb   : > { %4259 = dma.done.wait (!%p4021_p0), %s3331_s23, 128  }
0x16fc   : > { %4261 = vsyncadd (!%p4021_p0), %s3331_s23, 4294967168  ;;  %s40_s29 = sadd.s32 1, %s5385_s27   ;;  %s5388_s7 = sld [smem:[#allocation11_spill]] }
0x16fd   : > { %p37_p1 = scmp.ge.s32.totalorder %s40_s29, 10   ;;  %s5389_s4 = sld [smem:[#allocation12_spill]] }
0x16fe   : > { %s5390_s8 = sld [smem:[#allocation23_spill]]  ;;  %s5391_s30 = sld [smem:[#allocation14_spill]] }
0x16ff   : > { %s5392_s9 = sld [smem:[#allocation15_spill]]  ;;  %s5393_s5 = sld [smem:[#allocation16_spill]] }
0x1700   : > { %s5394_s28 = sld [smem:[#allocation18_spill]]  ;;  %s5395_s0 = sld [smem:[#allocation20_spill]] }
0x1701   : > { %s5396_s10 = sld [smem:[#allocation22_spill]]  ;;  %39 = sbr.rel (!%p37_p1) target bundleno = 29 (0x1d), region = 196 }
0x1708   :  { %3336 = vsyncpa [#allocation8], 1 }
0x1709   :  { %3338 = vsyncpa [#allocation8 + $0x1], 1 }

</bundles_post_ra>
